<compile_context>
chip_gen: v7x
topology: tpu7x:2x2x1
jax: 0.10.0
libtpu: 0.0.40
codegen_flags: <defaults>
</compile_context>

<pallas_src>
import jax
import jax.numpy as jnp
from jax.experimental import pallas as pl
from jax.experimental.pallas import tpu as pltpu

LN_EPS = 1e-5  # PyTorch nn.LayerNorm default


def _dot(a, w):
    # Shared by kernel and reference so both use the exact same MXU precision.
    return jnp.dot(a, w, preferred_element_type=jnp.float32,
                   precision=jax.lax.Precision.HIGHEST)


def _layer_norm(v, eps=LN_EPS):
    # Fused single-pass LN (biased variance, matching PyTorch).  gamma/beta are
    # default (1, 0): the module's init_weights only touches nn.Linear, so the
    # affine step is identity.  Variance clamped at 0 (cancellation guard).
    inv_d = 1.0 / v.shape[-1]
    s1 = jnp.sum(v, axis=-1, keepdims=True)
    s2 = jnp.sum(v * v, axis=-1, keepdims=True)
    mu = s1 * inv_d
    var = jnp.maximum(s2 * inv_d - mu * mu, 0.0)
    return (v - mu) * jax.lax.rsqrt(var + eps)


def resnet_kernel(x_ref, w1_ref, b1_ref, w2_ref, b2_ref, wf_ref, bf_ref, o_ref):
    num_blocks = w1_ref.shape[0]
    x = x_ref[...]                                           # (tb, D) f32
    # Fully unrolled block loop (num_blocks is small & static); all block
    # weights are VMEM-resident, so there is no per-block grid step / weight
    # streaming.  TODO(synk): if XLU/VPU saturates at larger shapes, offload
    # the LN row sums to the idle MXU (x @ ones / (x*x) @ ones).
    for i in range(num_blocks):
        xn = _layer_norm(x)                                  # feature_norm
        h = _dot(xn, w1_ref[i]) + b1_ref[i]                  # fc1
        h = jnp.maximum(_layer_norm(h), 0.0)                 # relu(ln1)
        h = _dot(h, w2_ref[i]) + b2_ref[i]                   # fc2
        h = _layer_norm(h)                                   # ln2
        x = jnp.maximum(h + xn, 0.0)                         # residual + relu
    y = _dot(x, wf_ref[...]) + bf_ref[...]                   # final_fc
    o_ref[...] = y.astype(o_ref.dtype)                       # lane-dense store


def _pick_batch_tile(B):
    # <=256 rows: one tile fills the 256-row MXU M dim on v6e/v7x and already
    # exceeds the 128-row v5e MXU; larger tiles only add vreg/VMEM pressure.
    # For bigger batches pick the largest 8-aligned divisor <= 256 so the
    # "parallel" batch axis gives >=2 tiles to shard across the 2 v7x TCs.
    if B <= 256:
        return B
    for cand in (256, 128, 64, 32, 16, 8):
        if B % cand == 0:
            return cand
    return B


def resnet_forward(x, params, *, batch_tile=None):
    w1, b1, w2, b2, wf, bf = params
    B, D = x.shape
    num_blocks = w1.shape[0]
    O = wf.shape[1]

    w1 = w1.astype(jnp.float32)
    w2 = w2.astype(jnp.float32)
    wf = wf.astype(jnp.float32)
    b1 = b1.reshape(num_blocks, 1, D).astype(jnp.float32)
    b2 = b2.reshape(num_blocks, 1, D).astype(jnp.float32)
    bf = bf.reshape(1, O).astype(jnp.float32)

    # Lane-dense output: pad output features to a multiple of 128 so the
    # epilogue does unmasked full-lane stores; slice the padding off after.
    o_pad = max(128, ((O + 127) // 128) * 128)
    if o_pad != O:
        wf = jnp.pad(wf, ((0, 0), (0, o_pad - O)))
        bf = jnp.pad(bf, ((0, 0), (0, o_pad - O)))

    tb = batch_tile or _pick_batch_tile(B)
    assert B % tb == 0, "batch must be divisible by the batch tile"
    # TODO(synk): for large D (2*num_blocks*D*D*4B no longer fitting VMEM,
    # D ~ 1-2K) switch back to streaming W1/W2 per block over a second grid
    # axis and set vmem_limit_bytes explicitly; resident weights are the right
    # call at the sizes this module is used at.

    out = pl.pallas_call(
        resnet_kernel,
        out_shape=jax.ShapeDtypeStruct((B, o_pad), jnp.float32),
        grid=(B // tb,),
        in_specs=[
            pl.BlockSpec((tb, D), lambda i: (i, 0)),                  # x batch tile
            pl.BlockSpec((num_blocks, D, D), lambda i: (0, 0, 0)),    # fc1 W (resident)
            pl.BlockSpec((num_blocks, 1, D), lambda i: (0, 0, 0)),    # fc1 b
            pl.BlockSpec((num_blocks, D, D), lambda i: (0, 0, 0)),    # fc2 W (resident)
            pl.BlockSpec((num_blocks, 1, D), lambda i: (0, 0, 0)),    # fc2 b
            pl.BlockSpec((D, o_pad), lambda i: (0, 0)),               # final_fc W
            pl.BlockSpec((1, o_pad), lambda i: (0, 0)),               # final_fc b
        ],
        out_specs=pl.BlockSpec((tb, o_pad), lambda i: (i, 0)),
        compiler_params=pltpu.CompilerParams(
            dimension_semantics=("parallel",)),
    )(x.astype(jnp.float32), w1, b1, w2, b2, wf, bf)
    return out[:, :O]


def init_params(key, input_dim, output_dim, num_blocks):
    """Mirror the PyTorch init: Linear weights ~ xavier_uniform, biases = 0."""
    def xavier(k, fan_in, fan_out, shape):
        bound = (6.0 / (fan_in + fan_out)) ** 0.5
        return jax.random.uniform(k, shape, jnp.float32, -bound, bound)

    keys = jax.random.split(key, 2 * num_blocks + 1)
    # Weights stored already transposed: y = x @ W + b  (W shape: (in, out)).
    w1 = jnp.stack([xavier(keys[2 * i], input_dim, input_dim,
                           (input_dim, input_dim)) for i in range(num_blocks)])
    w2 = jnp.stack([xavier(keys[2 * i + 1], input_dim, input_dim,
                           (input_dim, input_dim)) for i in range(num_blocks)])
    b1 = jnp.zeros((num_blocks, input_dim), jnp.float32)
    b2 = jnp.zeros((num_blocks, input_dim), jnp.float32)
    wf = xavier(keys[-1], input_dim, output_dim, (input_dim, output_dim))
    bf = jnp.zeros((1, output_dim), jnp.float32)
    return w1, b1, w2, b2, wf, bf


def resnet_reference(x, params):
    """Pure-JAX f32 reference using the same ops/precision as the kernel."""
    w1, b1, w2, b2, wf, bf = params
    for i in range(w1.shape[0]):
        xn = _layer_norm(x)
        h = jnp.maximum(_layer_norm(_dot(xn, w1[i]) + b1[i]), 0.0)
        h = _layer_norm(_dot(h, w2[i]) + b2[i])
        x = jnp.maximum(h + xn, 0.0)
    return _dot(x, wf) + bf


if __name__ == "__main__":
    batch, input_dim, output_dim, num_blocks = 64, 128, 16, 3

    key = jax.random.PRNGKey(0)
    k_x, k_p = jax.random.split(key)
    x = jax.random.normal(k_x, (batch, input_dim), jnp.float32)
    params = init_params(k_p, input_dim, output_dim, num_blocks)

    out = jax.block_until_ready(resnet_forward(x, params))

    ref = resnet_reference(x, params)
    assert out.shape == (batch, output_dim)
    max_err = float(jnp.max(jnp.abs(out - ref)))
    assert jnp.allclose(out, ref, atol=1e-3, rtol=1e-3), \
        f"mismatch vs JAX reference (max abs err {max_err})"

    print("KERNEL_OK")
</pallas_src>

<mosaic_0001>
module attributes {stable_mosaic.version = 11 : i64} {
  func.func @resnet_kernel(%arg0: i32, %arg1: memref<64x128xf32, #tpu.memory_space<vmem>>, %arg2: memref<3x128x128xf32, #tpu.memory_space<vmem>>, %arg3: memref<3x1x128xf32, #tpu.memory_space<vmem>>, %arg4: memref<3x128x128xf32, #tpu.memory_space<vmem>>, %arg5: memref<3x1x128xf32, #tpu.memory_space<vmem>>, %arg6: memref<128x128xf32, #tpu.memory_space<vmem>>, %arg7: memref<1x128xf32, #tpu.memory_space<vmem>>, %arg8: memref<64x128xf32, #tpu.memory_space<vmem>>) attributes {dimension_semantics = [#tpu.dimension_semantics<parallel>], iteration_bounds = array<i64: 1>, scalar_prefetch = 0 : i64, scratch_operands = 0 : i64, tpu.core_type = #tpu.core_type<tc>, window_params = [{transform_indices = @transform_0, window_bounds = array<i64: 64, 128>}, {pipeline_mode = #tpu.pipeline_mode<synchronous>, transform_indices = @transform_1, window_bounds = array<i64: 3, 128, 128>}, {pipeline_mode = #tpu.pipeline_mode<synchronous>, transform_indices = @transform_2, window_bounds = array<i64: 3, 1, 128>}, {pipeline_mode = #tpu.pipeline_mode<synchronous>, transform_indices = @transform_3, window_bounds = array<i64: 3, 128, 128>}, {pipeline_mode = #tpu.pipeline_mode<synchronous>, transform_indices = @transform_4, window_bounds = array<i64: 3, 1, 128>}, {pipeline_mode = #tpu.pipeline_mode<synchronous>, transform_indices = @transform_5, window_bounds = array<i64: 128, 128>}, {pipeline_mode = #tpu.pipeline_mode<synchronous>, transform_indices = @transform_6, window_bounds = array<i64: 1, 128>}, {transform_indices = @transform_7, window_bounds = array<i64: 64, 128>}]} {
    %c0 = arith.constant 0 : index
    %c0_0 = arith.constant 0 : index
    %0 = vector.load %arg1[%c0, %c0_0] : memref<64x128xf32, #tpu.memory_space<vmem>>, vector<64x128xf32>
    %cst = arith.constant dense<0.000000e+00> : vector<64xf32>
    %1 = vector.multi_reduction <add>, %0, %cst [1] : vector<64x128xf32> to vector<64xf32>
    %2 = vector.shape_cast %1 : vector<64xf32> to vector<64x1xf32>
    %3 = arith.mulf %0, %0 : vector<64x128xf32>
    %cst_1 = arith.constant dense<0.000000e+00> : vector<64xf32>
    %4 = vector.multi_reduction <add>, %3, %cst_1 [1] : vector<64x128xf32> to vector<64xf32>
    %5 = vector.shape_cast %4 : vector<64xf32> to vector<64x1xf32>
    %cst_2 = arith.constant 7.812500e-03 : f32
    %6 = vector.broadcast %cst_2 : f32 to vector<64x1xf32>
    %7 = arith.mulf %2, %6 : vector<64x1xf32>
    %cst_3 = arith.constant 7.812500e-03 : f32
    %8 = vector.broadcast %cst_3 : f32 to vector<64x1xf32>
    %9 = arith.mulf %5, %8 : vector<64x1xf32>
    %10 = arith.mulf %7, %7 : vector<64x1xf32>
    %11 = arith.subf %9, %10 : vector<64x1xf32>
    %cst_4 = arith.constant 0.000000e+00 : f32
    %12 = vector.broadcast %cst_4 : f32 to vector<64x1xf32>
    %13 = arith.maximumf %11, %12 : vector<64x1xf32>
    %14 = vector.broadcast %7 : vector<64x1xf32> to vector<64x128xf32>
    %15 = arith.subf %0, %14 : vector<64x128xf32>
    %cst_5 = arith.constant 9.99999974E-6 : f32
    %16 = vector.broadcast %cst_5 : f32 to vector<64x1xf32>
    %17 = arith.addf %13, %16 : vector<64x1xf32>
    %18 = math.rsqrt %17 : vector<64x1xf32>
    %19 = vector.broadcast %18 : vector<64x1xf32> to vector<64x128xf32>
    %20 = arith.mulf %15, %19 : vector<64x128xf32>
    %c0_6 = arith.constant 0 : index
    %c0_7 = arith.constant 0 : index
    %c0_8 = arith.constant 0 : index
    %21 = vector.load %arg2[%c0_6, %c0_7, %c0_8] : memref<3x128x128xf32, #tpu.memory_space<vmem>>, vector<1x128x128xf32>
    %22 = vector.shape_cast %21 : vector<1x128x128xf32> to vector<128x128xf32>
    %cst_9 = arith.constant dense<0.000000e+00> : vector<64x128xf32>
    %23 = tpu.matmul %20, %22, %cst_9 {dimension_numbers = #tpu.dot_dimension_numbers<[1], [0], [0], [1], [0, 0, 1, 1], [], []>, precision = #tpu.contract_precision<fp32>} : vector<64x128xf32>, vector<128x128xf32>, vector<64x128xf32> -> vector<64x128xf32>
    %c0_10 = arith.constant 0 : index
    %c0_11 = arith.constant 0 : index
    %c0_12 = arith.constant 0 : index
    %24 = vector.load %arg3[%c0_10, %c0_11, %c0_12] : memref<3x1x128xf32, #tpu.memory_space<vmem>>, vector<1x1x128xf32>
    %25 = vector.shape_cast %24 : vector<1x1x128xf32> to vector<1x128xf32>
    %26 = vector.broadcast %25 : vector<1x128xf32> to vector<64x128xf32>
    %27 = arith.addf %23, %26 : vector<64x128xf32>
    %cst_13 = arith.constant dense<0.000000e+00> : vector<64xf32>
    %28 = vector.multi_reduction <add>, %27, %cst_13 [1] : vector<64x128xf32> to vector<64xf32>
    %29 = vector.shape_cast %28 : vector<64xf32> to vector<64x1xf32>
    %30 = arith.mulf %27, %27 : vector<64x128xf32>
    %cst_14 = arith.constant dense<0.000000e+00> : vector<64xf32>
    %31 = vector.multi_reduction <add>, %30, %cst_14 [1] : vector<64x128xf32> to vector<64xf32>
    %32 = vector.shape_cast %31 : vector<64xf32> to vector<64x1xf32>
    %cst_15 = arith.constant 7.812500e-03 : f32
    %33 = vector.broadcast %cst_15 : f32 to vector<64x1xf32>
    %34 = arith.mulf %29, %33 : vector<64x1xf32>
    %cst_16 = arith.constant 7.812500e-03 : f32
    %35 = vector.broadcast %cst_16 : f32 to vector<64x1xf32>
    %36 = arith.mulf %32, %35 : vector<64x1xf32>
    %37 = arith.mulf %34, %34 : vector<64x1xf32>
    %38 = arith.subf %36, %37 : vector<64x1xf32>
    %cst_17 = arith.constant 0.000000e+00 : f32
    %39 = vector.broadcast %cst_17 : f32 to vector<64x1xf32>
    %40 = arith.maximumf %38, %39 : vector<64x1xf32>
    %41 = vector.broadcast %34 : vector<64x1xf32> to vector<64x128xf32>
    %42 = arith.subf %27, %41 : vector<64x128xf32>
    %cst_18 = arith.constant 9.99999974E-6 : f32
    %43 = vector.broadcast %cst_18 : f32 to vector<64x1xf32>
    %44 = arith.addf %40, %43 : vector<64x1xf32>
    %45 = math.rsqrt %44 : vector<64x1xf32>
    %46 = vector.broadcast %45 : vector<64x1xf32> to vector<64x128xf32>
    %47 = arith.mulf %42, %46 : vector<64x128xf32>
    %cst_19 = arith.constant 0.000000e+00 : f32
    %48 = vector.broadcast %cst_19 : f32 to vector<64x128xf32>
    %49 = arith.maximumf %47, %48 : vector<64x128xf32>
    %c0_20 = arith.constant 0 : index
    %c0_21 = arith.constant 0 : index
    %c0_22 = arith.constant 0 : index
    %50 = vector.load %arg4[%c0_20, %c0_21, %c0_22] : memref<3x128x128xf32, #tpu.memory_space<vmem>>, vector<1x128x128xf32>
    %51 = vector.shape_cast %50 : vector<1x128x128xf32> to vector<128x128xf32>
    %cst_23 = arith.constant dense<0.000000e+00> : vector<64x128xf32>
    %52 = tpu.matmul %49, %51, %cst_23 {dimension_numbers = #tpu.dot_dimension_numbers<[1], [0], [0], [1], [0, 0, 1, 1], [], []>, precision = #tpu.contract_precision<fp32>} : vector<64x128xf32>, vector<128x128xf32>, vector<64x128xf32> -> vector<64x128xf32>
    %c0_24 = arith.constant 0 : index
    %c0_25 = arith.constant 0 : index
    %c0_26 = arith.constant 0 : index
    %53 = vector.load %arg5[%c0_24, %c0_25, %c0_26] : memref<3x1x128xf32, #tpu.memory_space<vmem>>, vector<1x1x128xf32>
    %54 = vector.shape_cast %53 : vector<1x1x128xf32> to vector<1x128xf32>
    %55 = vector.broadcast %54 : vector<1x128xf32> to vector<64x128xf32>
    %56 = arith.addf %52, %55 : vector<64x128xf32>
    %cst_27 = arith.constant dense<0.000000e+00> : vector<64xf32>
    %57 = vector.multi_reduction <add>, %56, %cst_27 [1] : vector<64x128xf32> to vector<64xf32>
    %58 = vector.shape_cast %57 : vector<64xf32> to vector<64x1xf32>
    %59 = arith.mulf %56, %56 : vector<64x128xf32>
    %cst_28 = arith.constant dense<0.000000e+00> : vector<64xf32>
    %60 = vector.multi_reduction <add>, %59, %cst_28 [1] : vector<64x128xf32> to vector<64xf32>
    %61 = vector.shape_cast %60 : vector<64xf32> to vector<64x1xf32>
    %cst_29 = arith.constant 7.812500e-03 : f32
    %62 = vector.broadcast %cst_29 : f32 to vector<64x1xf32>
    %63 = arith.mulf %58, %62 : vector<64x1xf32>
    %cst_30 = arith.constant 7.812500e-03 : f32
    %64 = vector.broadcast %cst_30 : f32 to vector<64x1xf32>
    %65 = arith.mulf %61, %64 : vector<64x1xf32>
    %66 = arith.mulf %63, %63 : vector<64x1xf32>
    %67 = arith.subf %65, %66 : vector<64x1xf32>
    %cst_31 = arith.constant 0.000000e+00 : f32
    %68 = vector.broadcast %cst_31 : f32 to vector<64x1xf32>
    %69 = arith.maximumf %67, %68 : vector<64x1xf32>
    %70 = vector.broadcast %63 : vector<64x1xf32> to vector<64x128xf32>
    %71 = arith.subf %56, %70 : vector<64x128xf32>
    %cst_32 = arith.constant 9.99999974E-6 : f32
    %72 = vector.broadcast %cst_32 : f32 to vector<64x1xf32>
    %73 = arith.addf %69, %72 : vector<64x1xf32>
    %74 = math.rsqrt %73 : vector<64x1xf32>
    %75 = vector.broadcast %74 : vector<64x1xf32> to vector<64x128xf32>
    %76 = arith.mulf %71, %75 : vector<64x128xf32>
    %77 = arith.addf %76, %20 : vector<64x128xf32>
    %cst_33 = arith.constant 0.000000e+00 : f32
    %78 = vector.broadcast %cst_33 : f32 to vector<64x128xf32>
    %79 = arith.maximumf %77, %78 : vector<64x128xf32>
    %cst_34 = arith.constant dense<0.000000e+00> : vector<64xf32>
    %80 = vector.multi_reduction <add>, %79, %cst_34 [1] : vector<64x128xf32> to vector<64xf32>
    %81 = vector.shape_cast %80 : vector<64xf32> to vector<64x1xf32>
    %82 = arith.mulf %79, %79 : vector<64x128xf32>
    %cst_35 = arith.constant dense<0.000000e+00> : vector<64xf32>
    %83 = vector.multi_reduction <add>, %82, %cst_35 [1] : vector<64x128xf32> to vector<64xf32>
    %84 = vector.shape_cast %83 : vector<64xf32> to vector<64x1xf32>
    %cst_36 = arith.constant 7.812500e-03 : f32
    %85 = vector.broadcast %cst_36 : f32 to vector<64x1xf32>
    %86 = arith.mulf %81, %85 : vector<64x1xf32>
    %cst_37 = arith.constant 7.812500e-03 : f32
    %87 = vector.broadcast %cst_37 : f32 to vector<64x1xf32>
    %88 = arith.mulf %84, %87 : vector<64x1xf32>
    %89 = arith.mulf %86, %86 : vector<64x1xf32>
    %90 = arith.subf %88, %89 : vector<64x1xf32>
    %cst_38 = arith.constant 0.000000e+00 : f32
    %91 = vector.broadcast %cst_38 : f32 to vector<64x1xf32>
    %92 = arith.maximumf %90, %91 : vector<64x1xf32>
    %93 = vector.broadcast %86 : vector<64x1xf32> to vector<64x128xf32>
    %94 = arith.subf %79, %93 : vector<64x128xf32>
    %cst_39 = arith.constant 9.99999974E-6 : f32
    %95 = vector.broadcast %cst_39 : f32 to vector<64x1xf32>
    %96 = arith.addf %92, %95 : vector<64x1xf32>
    %97 = math.rsqrt %96 : vector<64x1xf32>
    %98 = vector.broadcast %97 : vector<64x1xf32> to vector<64x128xf32>
    %99 = arith.mulf %94, %98 : vector<64x128xf32>
    %c1 = arith.constant 1 : index
    %c0_40 = arith.constant 0 : index
    %c0_41 = arith.constant 0 : index
    %100 = vector.load %arg2[%c1, %c0_40, %c0_41] : memref<3x128x128xf32, #tpu.memory_space<vmem>>, vector<1x128x128xf32>
    %101 = vector.shape_cast %100 : vector<1x128x128xf32> to vector<128x128xf32>
    %cst_42 = arith.constant dense<0.000000e+00> : vector<64x128xf32>
    %102 = tpu.matmul %99, %101, %cst_42 {dimension_numbers = #tpu.dot_dimension_numbers<[1], [0], [0], [1], [0, 0, 1, 1], [], []>, precision = #tpu.contract_precision<fp32>} : vector<64x128xf32>, vector<128x128xf32>, vector<64x128xf32> -> vector<64x128xf32>
    %c1_43 = arith.constant 1 : index
    %c0_44 = arith.constant 0 : index
    %c0_45 = arith.constant 0 : index
    %103 = vector.load %arg3[%c1_43, %c0_44, %c0_45] : memref<3x1x128xf32, #tpu.memory_space<vmem>>, vector<1x1x128xf32>
    %104 = vector.shape_cast %103 : vector<1x1x128xf32> to vector<1x128xf32>
    %105 = vector.broadcast %104 : vector<1x128xf32> to vector<64x128xf32>
    %106 = arith.addf %102, %105 : vector<64x128xf32>
    %cst_46 = arith.constant dense<0.000000e+00> : vector<64xf32>
    %107 = vector.multi_reduction <add>, %106, %cst_46 [1] : vector<64x128xf32> to vector<64xf32>
    %108 = vector.shape_cast %107 : vector<64xf32> to vector<64x1xf32>
    %109 = arith.mulf %106, %106 : vector<64x128xf32>
    %cst_47 = arith.constant dense<0.000000e+00> : vector<64xf32>
    %110 = vector.multi_reduction <add>, %109, %cst_47 [1] : vector<64x128xf32> to vector<64xf32>
    %111 = vector.shape_cast %110 : vector<64xf32> to vector<64x1xf32>
    %cst_48 = arith.constant 7.812500e-03 : f32
    %112 = vector.broadcast %cst_48 : f32 to vector<64x1xf32>
    %113 = arith.mulf %108, %112 : vector<64x1xf32>
    %cst_49 = arith.constant 7.812500e-03 : f32
    %114 = vector.broadcast %cst_49 : f32 to vector<64x1xf32>
    %115 = arith.mulf %111, %114 : vector<64x1xf32>
    %116 = arith.mulf %113, %113 : vector<64x1xf32>
    %117 = arith.subf %115, %116 : vector<64x1xf32>
    %cst_50 = arith.constant 0.000000e+00 : f32
    %118 = vector.broadcast %cst_50 : f32 to vector<64x1xf32>
    %119 = arith.maximumf %117, %118 : vector<64x1xf32>
    %120 = vector.broadcast %113 : vector<64x1xf32> to vector<64x128xf32>
    %121 = arith.subf %106, %120 : vector<64x128xf32>
    %cst_51 = arith.constant 9.99999974E-6 : f32
    %122 = vector.broadcast %cst_51 : f32 to vector<64x1xf32>
    %123 = arith.addf %119, %122 : vector<64x1xf32>
    %124 = math.rsqrt %123 : vector<64x1xf32>
    %125 = vector.broadcast %124 : vector<64x1xf32> to vector<64x128xf32>
    %126 = arith.mulf %121, %125 : vector<64x128xf32>
    %cst_52 = arith.constant 0.000000e+00 : f32
    %127 = vector.broadcast %cst_52 : f32 to vector<64x128xf32>
    %128 = arith.maximumf %126, %127 : vector<64x128xf32>
    %c1_53 = arith.constant 1 : index
    %c0_54 = arith.constant 0 : index
    %c0_55 = arith.constant 0 : index
    %129 = vector.load %arg4[%c1_53, %c0_54, %c0_55] : memref<3x128x128xf32, #tpu.memory_space<vmem>>, vector<1x128x128xf32>
    %130 = vector.shape_cast %129 : vector<1x128x128xf32> to vector<128x128xf32>
    %cst_56 = arith.constant dense<0.000000e+00> : vector<64x128xf32>
    %131 = tpu.matmul %128, %130, %cst_56 {dimension_numbers = #tpu.dot_dimension_numbers<[1], [0], [0], [1], [0, 0, 1, 1], [], []>, precision = #tpu.contract_precision<fp32>} : vector<64x128xf32>, vector<128x128xf32>, vector<64x128xf32> -> vector<64x128xf32>
    %c1_57 = arith.constant 1 : index
    %c0_58 = arith.constant 0 : index
    %c0_59 = arith.constant 0 : index
    %132 = vector.load %arg5[%c1_57, %c0_58, %c0_59] : memref<3x1x128xf32, #tpu.memory_space<vmem>>, vector<1x1x128xf32>
    %133 = vector.shape_cast %132 : vector<1x1x128xf32> to vector<1x128xf32>
    %134 = vector.broadcast %133 : vector<1x128xf32> to vector<64x128xf32>
    %135 = arith.addf %131, %134 : vector<64x128xf32>
    %cst_60 = arith.constant dense<0.000000e+00> : vector<64xf32>
    %136 = vector.multi_reduction <add>, %135, %cst_60 [1] : vector<64x128xf32> to vector<64xf32>
    %137 = vector.shape_cast %136 : vector<64xf32> to vector<64x1xf32>
    %138 = arith.mulf %135, %135 : vector<64x128xf32>
    %cst_61 = arith.constant dense<0.000000e+00> : vector<64xf32>
    %139 = vector.multi_reduction <add>, %138, %cst_61 [1] : vector<64x128xf32> to vector<64xf32>
    %140 = vector.shape_cast %139 : vector<64xf32> to vector<64x1xf32>
    %cst_62 = arith.constant 7.812500e-03 : f32
    %141 = vector.broadcast %cst_62 : f32 to vector<64x1xf32>
    %142 = arith.mulf %137, %141 : vector<64x1xf32>
    %cst_63 = arith.constant 7.812500e-03 : f32
    %143 = vector.broadcast %cst_63 : f32 to vector<64x1xf32>
    %144 = arith.mulf %140, %143 : vector<64x1xf32>
    %145 = arith.mulf %142, %142 : vector<64x1xf32>
    %146 = arith.subf %144, %145 : vector<64x1xf32>
    %cst_64 = arith.constant 0.000000e+00 : f32
    %147 = vector.broadcast %cst_64 : f32 to vector<64x1xf32>
    %148 = arith.maximumf %146, %147 : vector<64x1xf32>
    %149 = vector.broadcast %142 : vector<64x1xf32> to vector<64x128xf32>
    %150 = arith.subf %135, %149 : vector<64x128xf32>
    %cst_65 = arith.constant 9.99999974E-6 : f32
    %151 = vector.broadcast %cst_65 : f32 to vector<64x1xf32>
    %152 = arith.addf %148, %151 : vector<64x1xf32>
    %153 = math.rsqrt %152 : vector<64x1xf32>
    %154 = vector.broadcast %153 : vector<64x1xf32> to vector<64x128xf32>
    %155 = arith.mulf %150, %154 : vector<64x128xf32>
    %156 = arith.addf %155, %99 : vector<64x128xf32>
    %cst_66 = arith.constant 0.000000e+00 : f32
    %157 = vector.broadcast %cst_66 : f32 to vector<64x128xf32>
    %158 = arith.maximumf %156, %157 : vector<64x128xf32>
    %cst_67 = arith.constant dense<0.000000e+00> : vector<64xf32>
    %159 = vector.multi_reduction <add>, %158, %cst_67 [1] : vector<64x128xf32> to vector<64xf32>
    %160 = vector.shape_cast %159 : vector<64xf32> to vector<64x1xf32>
    %161 = arith.mulf %158, %158 : vector<64x128xf32>
    %cst_68 = arith.constant dense<0.000000e+00> : vector<64xf32>
    %162 = vector.multi_reduction <add>, %161, %cst_68 [1] : vector<64x128xf32> to vector<64xf32>
    %163 = vector.shape_cast %162 : vector<64xf32> to vector<64x1xf32>
    %cst_69 = arith.constant 7.812500e-03 : f32
    %164 = vector.broadcast %cst_69 : f32 to vector<64x1xf32>
    %165 = arith.mulf %160, %164 : vector<64x1xf32>
    %cst_70 = arith.constant 7.812500e-03 : f32
    %166 = vector.broadcast %cst_70 : f32 to vector<64x1xf32>
    %167 = arith.mulf %163, %166 : vector<64x1xf32>
    %168 = arith.mulf %165, %165 : vector<64x1xf32>
    %169 = arith.subf %167, %168 : vector<64x1xf32>
    %cst_71 = arith.constant 0.000000e+00 : f32
    %170 = vector.broadcast %cst_71 : f32 to vector<64x1xf32>
    %171 = arith.maximumf %169, %170 : vector<64x1xf32>
    %172 = vector.broadcast %165 : vector<64x1xf32> to vector<64x128xf32>
    %173 = arith.subf %158, %172 : vector<64x128xf32>
    %cst_72 = arith.constant 9.99999974E-6 : f32
    %174 = vector.broadcast %cst_72 : f32 to vector<64x1xf32>
    %175 = arith.addf %171, %174 : vector<64x1xf32>
    %176 = math.rsqrt %175 : vector<64x1xf32>
    %177 = vector.broadcast %176 : vector<64x1xf32> to vector<64x128xf32>
    %178 = arith.mulf %173, %177 : vector<64x128xf32>
    %c2 = arith.constant 2 : index
    %c0_73 = arith.constant 0 : index
    %c0_74 = arith.constant 0 : index
    %179 = vector.load %arg2[%c2, %c0_73, %c0_74] : memref<3x128x128xf32, #tpu.memory_space<vmem>>, vector<1x128x128xf32>
    %180 = vector.shape_cast %179 : vector<1x128x128xf32> to vector<128x128xf32>
    %cst_75 = arith.constant dense<0.000000e+00> : vector<64x128xf32>
    %181 = tpu.matmul %178, %180, %cst_75 {dimension_numbers = #tpu.dot_dimension_numbers<[1], [0], [0], [1], [0, 0, 1, 1], [], []>, precision = #tpu.contract_precision<fp32>} : vector<64x128xf32>, vector<128x128xf32>, vector<64x128xf32> -> vector<64x128xf32>
    %c2_76 = arith.constant 2 : index
    %c0_77 = arith.constant 0 : index
    %c0_78 = arith.constant 0 : index
    %182 = vector.load %arg3[%c2_76, %c0_77, %c0_78] : memref<3x1x128xf32, #tpu.memory_space<vmem>>, vector<1x1x128xf32>
    %183 = vector.shape_cast %182 : vector<1x1x128xf32> to vector<1x128xf32>
    %184 = vector.broadcast %183 : vector<1x128xf32> to vector<64x128xf32>
    %185 = arith.addf %181, %184 : vector<64x128xf32>
    %cst_79 = arith.constant dense<0.000000e+00> : vector<64xf32>
    %186 = vector.multi_reduction <add>, %185, %cst_79 [1] : vector<64x128xf32> to vector<64xf32>
    %187 = vector.shape_cast %186 : vector<64xf32> to vector<64x1xf32>
    %188 = arith.mulf %185, %185 : vector<64x128xf32>
    %cst_80 = arith.constant dense<0.000000e+00> : vector<64xf32>
    %189 = vector.multi_reduction <add>, %188, %cst_80 [1] : vector<64x128xf32> to vector<64xf32>
    %190 = vector.shape_cast %189 : vector<64xf32> to vector<64x1xf32>
    %cst_81 = arith.constant 7.812500e-03 : f32
    %191 = vector.broadcast %cst_81 : f32 to vector<64x1xf32>
    %192 = arith.mulf %187, %191 : vector<64x1xf32>
    %cst_82 = arith.constant 7.812500e-03 : f32
    %193 = vector.broadcast %cst_82 : f32 to vector<64x1xf32>
    %194 = arith.mulf %190, %193 : vector<64x1xf32>
    %195 = arith.mulf %192, %192 : vector<64x1xf32>
    %196 = arith.subf %194, %195 : vector<64x1xf32>
    %cst_83 = arith.constant 0.000000e+00 : f32
    %197 = vector.broadcast %cst_83 : f32 to vector<64x1xf32>
    %198 = arith.maximumf %196, %197 : vector<64x1xf32>
    %199 = vector.broadcast %192 : vector<64x1xf32> to vector<64x128xf32>
    %200 = arith.subf %185, %199 : vector<64x128xf32>
    %cst_84 = arith.constant 9.99999974E-6 : f32
    %201 = vector.broadcast %cst_84 : f32 to vector<64x1xf32>
    %202 = arith.addf %198, %201 : vector<64x1xf32>
    %203 = math.rsqrt %202 : vector<64x1xf32>
    %204 = vector.broadcast %203 : vector<64x1xf32> to vector<64x128xf32>
    %205 = arith.mulf %200, %204 : vector<64x128xf32>
    %cst_85 = arith.constant 0.000000e+00 : f32
    %206 = vector.broadcast %cst_85 : f32 to vector<64x128xf32>
    %207 = arith.maximumf %205, %206 : vector<64x128xf32>
    %c2_86 = arith.constant 2 : index
    %c0_87 = arith.constant 0 : index
    %c0_88 = arith.constant 0 : index
    %208 = vector.load %arg4[%c2_86, %c0_87, %c0_88] : memref<3x128x128xf32, #tpu.memory_space<vmem>>, vector<1x128x128xf32>
    %209 = vector.shape_cast %208 : vector<1x128x128xf32> to vector<128x128xf32>
    %cst_89 = arith.constant dense<0.000000e+00> : vector<64x128xf32>
    %210 = tpu.matmul %207, %209, %cst_89 {dimension_numbers = #tpu.dot_dimension_numbers<[1], [0], [0], [1], [0, 0, 1, 1], [], []>, precision = #tpu.contract_precision<fp32>} : vector<64x128xf32>, vector<128x128xf32>, vector<64x128xf32> -> vector<64x128xf32>
    %c2_90 = arith.constant 2 : index
    %c0_91 = arith.constant 0 : index
    %c0_92 = arith.constant 0 : index
    %211 = vector.load %arg5[%c2_90, %c0_91, %c0_92] : memref<3x1x128xf32, #tpu.memory_space<vmem>>, vector<1x1x128xf32>
    %212 = vector.shape_cast %211 : vector<1x1x128xf32> to vector<1x128xf32>
    %213 = vector.broadcast %212 : vector<1x128xf32> to vector<64x128xf32>
    %214 = arith.addf %210, %213 : vector<64x128xf32>
    %cst_93 = arith.constant dense<0.000000e+00> : vector<64xf32>
    %215 = vector.multi_reduction <add>, %214, %cst_93 [1] : vector<64x128xf32> to vector<64xf32>
    %216 = vector.shape_cast %215 : vector<64xf32> to vector<64x1xf32>
    %217 = arith.mulf %214, %214 : vector<64x128xf32>
    %cst_94 = arith.constant dense<0.000000e+00> : vector<64xf32>
    %218 = vector.multi_reduction <add>, %217, %cst_94 [1] : vector<64x128xf32> to vector<64xf32>
    %219 = vector.shape_cast %218 : vector<64xf32> to vector<64x1xf32>
    %cst_95 = arith.constant 7.812500e-03 : f32
    %220 = vector.broadcast %cst_95 : f32 to vector<64x1xf32>
    %221 = arith.mulf %216, %220 : vector<64x1xf32>
    %cst_96 = arith.constant 7.812500e-03 : f32
    %222 = vector.broadcast %cst_96 : f32 to vector<64x1xf32>
    %223 = arith.mulf %219, %222 : vector<64x1xf32>
    %224 = arith.mulf %221, %221 : vector<64x1xf32>
    %225 = arith.subf %223, %224 : vector<64x1xf32>
    %cst_97 = arith.constant 0.000000e+00 : f32
    %226 = vector.broadcast %cst_97 : f32 to vector<64x1xf32>
    %227 = arith.maximumf %225, %226 : vector<64x1xf32>
    %228 = vector.broadcast %221 : vector<64x1xf32> to vector<64x128xf32>
    %229 = arith.subf %214, %228 : vector<64x128xf32>
    %cst_98 = arith.constant 9.99999974E-6 : f32
    %230 = vector.broadcast %cst_98 : f32 to vector<64x1xf32>
    %231 = arith.addf %227, %230 : vector<64x1xf32>
    %232 = math.rsqrt %231 : vector<64x1xf32>
    %233 = vector.broadcast %232 : vector<64x1xf32> to vector<64x128xf32>
    %234 = arith.mulf %229, %233 : vector<64x128xf32>
    %235 = arith.addf %234, %178 : vector<64x128xf32>
    %cst_99 = arith.constant 0.000000e+00 : f32
    %236 = vector.broadcast %cst_99 : f32 to vector<64x128xf32>
    %237 = arith.maximumf %235, %236 : vector<64x128xf32>
    %c0_100 = arith.constant 0 : index
    %c0_101 = arith.constant 0 : index
    %238 = vector.load %arg6[%c0_100, %c0_101] : memref<128x128xf32, #tpu.memory_space<vmem>>, vector<128x128xf32>
    %cst_102 = arith.constant dense<0.000000e+00> : vector<64x128xf32>
    %239 = tpu.matmul %237, %238, %cst_102 {dimension_numbers = #tpu.dot_dimension_numbers<[1], [0], [0], [1], [0, 0, 1, 1], [], []>, precision = #tpu.contract_precision<fp32>} : vector<64x128xf32>, vector<128x128xf32>, vector<64x128xf32> -> vector<64x128xf32>
    %c0_103 = arith.constant 0 : index
    %c0_104 = arith.constant 0 : index
    %240 = vector.load %arg7[%c0_103, %c0_104] : memref<1x128xf32, #tpu.memory_space<vmem>>, vector<1x128xf32>
    %241 = vector.broadcast %240 : vector<1x128xf32> to vector<64x128xf32>
    %242 = arith.addf %239, %241 : vector<64x128xf32>
    %c0_105 = arith.constant 0 : index
    %c0_106 = arith.constant 0 : index
    %243 = vector.load %arg8[%c0_105, %c0_106] : memref<64x128xf32, #tpu.memory_space<vmem>>, vector<64x128xf32>
    tpu.vector_store %arg8[%c0_105, %c0_106], %242 {strides = array<i32>} : memref<64x128xf32, #tpu.memory_space<vmem>>, vector<64x128xf32>,
    return
  }
  func.func @transform_0(%arg0: i32) -> (i32, i32) {
    %c0_i32 = arith.constant 0 : i32
    %c0_i32_0 = arith.constant 0 : i32
    return %arg0, %c0_i32 : i32, i32
  }
  func.func @transform_1(%arg0: i32) -> (i32, i32, i32) {
    %c0_i32 = arith.constant 0 : i32
    %c0_i32_0 = arith.constant 0 : i32
    %c0_i32_1 = arith.constant 0 : i32
    %c0_i32_2 = arith.constant 0 : i32
    return %c0_i32, %c0_i32_0, %c0_i32_1 : i32, i32, i32
  }
  func.func @transform_2(%arg0: i32) -> (i32, i32, i32) {
    %c0_i32 = arith.constant 0 : i32
    %c0_i32_0 = arith.constant 0 : i32
    %c0_i32_1 = arith.constant 0 : i32
    %c0_i32_2 = arith.constant 0 : i32
    return %c0_i32, %c0_i32_0, %c0_i32_1 : i32, i32, i32
  }
  func.func @transform_3(%arg0: i32) -> (i32, i32, i32) {
    %c0_i32 = arith.constant 0 : i32
    %c0_i32_0 = arith.constant 0 : i32
    %c0_i32_1 = arith.constant 0 : i32
    %c0_i32_2 = arith.constant 0 : i32
    return %c0_i32, %c0_i32_0, %c0_i32_1 : i32, i32, i32
  }
  func.func @transform_4(%arg0: i32) -> (i32, i32, i32) {
    %c0_i32 = arith.constant 0 : i32
    %c0_i32_0 = arith.constant 0 : i32
    %c0_i32_1 = arith.constant 0 : i32
    %c0_i32_2 = arith.constant 0 : i32
    return %c0_i32, %c0_i32_0, %c0_i32_1 : i32, i32, i32
  }
  func.func @transform_5(%arg0: i32) -> (i32, i32) {
    %c0_i32 = arith.constant 0 : i32
    %c0_i32_0 = arith.constant 0 : i32
    %c0_i32_1 = arith.constant 0 : i32
    return %c0_i32, %c0_i32_0 : i32, i32
  }
  func.func @transform_6(%arg0: i32) -> (i32, i32) {
    %c0_i32 = arith.constant 0 : i32
    %c0_i32_0 = arith.constant 0 : i32
    %c0_i32_1 = arith.constant 0 : i32
    return %c0_i32, %c0_i32_0 : i32, i32
  }
  func.func @transform_7(%arg0: i32) -> (i32, i32) {
    %c0_i32 = arith.constant 0 : i32
    %c0_i32_0 = arith.constant 0 : i32
    return %arg0, %c0_i32 : i32, i32
  }
}

</mosaic_0001>

<bundles_post_ra>
// kernel: tpu_custom_call.1
= control target key start
LH: loop header
LB: loop body
LE: loop exit
PB: predicated region body
PF: predicated region fallthrough
CT: control target
= control target key end

     0   :  { %12 = vsyncpa [#allocation3], 0  ;;  %s16985_s0 = inlined_call_operand.hbm [shape: f32[64,128], index: 0, kind: input, shape index: {}]   ;;  %s16986_s1 = inlined_call_operand.hbm [shape: f32[3,128,128], index: 1, kind: input, shape index: {}]   ;;  %s16987_s2 = inlined_call_operand.vmem [shape: f32[3,1,128], index: 2, kind: input, shape index: {}]   ;;  %s16988_s3 = inlined_call_operand.hbm [shape: f32[3,128,128], index: 3, kind: input, shape index: {}]   ;;  %s16989_s4 = inlined_call_operand.vmem [shape: f32[3,1,128], index: 4, kind: input, shape index: {}]   ;;  %s16990_s5 = inlined_call_operand.hbm [shape: f32[128,128], index: 5, kind: input, shape index: {}]   ;;  %s16991_s6 = inlined_call_operand.vmem [shape: f32[1,128], index: 6, kind: input, shape index: {}]   ;;  %s16992_s7 = inlined_call_operand.hbm [shape: f32[64,128], index: 7, kind: output, shape index: {}]  }
   0x1   :  { %13 = vsyncpa [#allocation6], 0 }
   0x2   :  { %14 = vsyncpa [#allocation9], 0 }
   0x3   :  { %15 = vsyncpa [#allocation4], 0  ;;  %s12776_s24 = smov [#allocation5]   ;;  %s12777_s26 = smov [#allocation2]  }
   0x4   :  { %s33_s25 = sshll.u32 %s12776_s24, 4  ;;  %s21_s27 = sshll.u32 %s12777_s26, 4  ;;  %s34_s25 = int_to_ptr.vmem [resolvable:$true] %s33_s25  ;;  %s12823_s27 = int_to_ptr.vmem [resolvable:$true] %s21_s27 }
   0x5   :  { %s12658_s30 = scalar_lea.hbm %s16986_s1, 6144 }
   0x6   :  { %p12659_p0 = scmp.ne.s32.totalorder %s16986_s1, %s12658_s30  ;;  %p12662_p1 = scmp.lt.u32.totalorder %s12658_s30, %s16986_s1 }
   0x8   :  { %p12664_p2 = pnand %p12662_p1, %p12659_p0 }
   0xa   :  { %12667 = shalt.err (!%p12664_p2)
}
   0xb   :  { %s12668_s12 = scalar_lea.vmem %s34_s25, 6144  ;;  %p12673_p4 = scmp.lt.s32.totalorder %s34_s25, %s34_s25 }
   0xc   :  { %p12669_p3 = scmp.ne.s32.totalorder %s34_s25, %s12668_s12  ;;  %p12674_p5 = scmp.lt.s32.totalorder %s12668_s12, %s12668_s12 }
   0xe   :  { %p12675_p6 = por %p12674_p5, %p12673_p4 }
  0x10   :  { %p12676_p7 = pnand %p12675_p6, %p12669_p3 }
  0x12   :  { %12679 = shalt.err (!%p12676_p7)
}
  0x13   :  { %s12778_s13 = smov 128   ;;  %s12779_s14 = smov 8  }
  0x14   :  { %39 = dma.hbm_to_vmem [thread:$0]  %s16986_s1, 6144, %s34_s25, [#allocation6], %s12778_s13, %s12778_s13, %s12779_s14  }
  0x15   :  { %s12680_s19 = scalar_lea.hbm %s16985_s0, 1024 }
  0x16   :  { %p12681_p8 = scmp.ne.s32.totalorder %s16985_s0, %s12680_s19  ;;  %p12684_p9 = scmp.lt.u32.totalorder %s12680_s19, %s16985_s0 }
  0x18   :  { %p12686_p10 = pnand %p12684_p9, %p12681_p8 }
  0x1a   :  { %12689 = shalt.err (!%p12686_p10)
}
  0x1b   :  { %s12690_s24 = scalar_lea.vmem %s12823_s27, 1024  ;;  %p12695_p12 = scmp.lt.s32.totalorder %s12823_s27, %s12823_s27 }
  0x1c   :  { %p12691_p11 = scmp.ne.s32.totalorder %s12823_s27, %s12690_s24  ;;  %p12696_p13 = scmp.lt.s32.totalorder %s12690_s24, %s12690_s24 }
  0x1e   :  { %p12697_p0 = por %p12696_p13, %p12695_p12 }
  0x20   :  { %p12698_p1 = pnand %p12697_p0, %p12691_p11 }
  0x22   :  { %12701 = shalt.err (!%p12698_p1)
}
  0x23   :  { %27 = dma.hbm_to_vmem [thread:$0]  %s16985_s0, 1024, %s12823_s27, [#allocation3], %s12778_s13, %s12778_s13, %s12779_s14  }
  0x24   :  { %s12780_s26 = smov [#allocation7]   ;;  %s12781_s29 = smov [#allocation8]  }
  0x25   :  { %s47_s28 = sshll.u32 %s12780_s26, 4  ;;  %s61_s30 = sshll.u32 %s12781_s29, 4  ;;  %s48_s28 = int_to_ptr.vmem [resolvable:$true] %s47_s28  ;;  %s12860_s30 = int_to_ptr.vmem [resolvable:$true] %s61_s30 }
  0x26   :  { %s12702_s10 = scalar_lea.hbm %s16988_s3, 6144 }
  0x27   :  { %p12703_p2 = scmp.ne.s32.totalorder %s16988_s3, %s12702_s10  ;;  %p12706_p3 = scmp.lt.u32.totalorder %s12702_s10, %s16988_s3 }
  0x29   :  { %p12708_p4 = pnand %p12706_p3, %p12703_p2 }
  0x2b   :  { %12711 = shalt.err (!%p12708_p4)
}
  0x2c   :  { %s12712_s0 = scalar_lea.vmem %s48_s28, 6144  ;;  %p12717_p6 = scmp.lt.s32.totalorder %s48_s28, %s48_s28 }
  0x2d   :  { %p12713_p5 = scmp.ne.s32.totalorder %s48_s28, %s12712_s0  ;;  %p12718_p7 = scmp.lt.s32.totalorder %s12712_s0, %s12712_s0 }
  0x2f   :  { %p12719_p8 = por %p12718_p7, %p12717_p6 }
  0x31   :  { %p12720_p9 = pnand %p12719_p8, %p12713_p5 }
  0x33   :  { %12723 = shalt.err (!%p12720_p9)
}
  0x34   :  { %53 = dma.hbm_to_vmem [thread:$0]  %s16988_s3, 6144, %s48_s28, [#allocation6], %s12778_s13, %s12778_s13, %s12779_s14  }
  0x35   :  { %s12724_s20 = scalar_lea.hbm %s16990_s5, 2048 }
  0x36   :  { %p12725_p10 = scmp.ne.s32.totalorder %s16990_s5, %s12724_s20  ;;  %p12728_p11 = scmp.lt.u32.totalorder %s12724_s20, %s16990_s5 }
  0x38   :  { %p12730_p12 = pnand %p12728_p11, %p12725_p10 }
  0x3a   :  { %12733 = shalt.err (!%p12730_p12)
}
  0x3b   :  { %s12734_s1 = scalar_lea.vmem %s12860_s30, 2048  ;;  %p12739_p0 = scmp.lt.s32.totalorder %s12860_s30, %s12860_s30 }
  0x3c   :  { %p12735_p13 = scmp.ne.s32.totalorder %s12860_s30, %s12734_s1  ;;  %p12740_p1 = scmp.lt.s32.totalorder %s12734_s1, %s12734_s1 }
  0x3e   :  { %p12741_p2 = por %p12740_p1, %p12739_p0 }
  0x40   :  { %p12742_p3 = pnand %p12741_p2, %p12735_p13 }
  0x42   :  { %12745 = shalt.err (!%p12742_p3)
}
  0x43   :  { %67 = dma.hbm_to_vmem [thread:$0]  %s16990_s5, 2048, %s12860_s30, [#allocation9], %s12778_s13, %s12778_s13, %s12779_s14  }
  0x44   :  { %12768 = dma.done.wait [#allocation3], 1024  }
  0x45   :  { %12769 = vsyncadd [#allocation3], 4294966272 }
  0x46   :  { %12770 = dma.done.wait [#allocation6], 12288  }
  0x47   :  { %12771 = vsyncadd [#allocation6], 4294955008 }
  0x48   :  { %12772 = dma.done.wait [#allocation9], 2048  }
  0x49   :  { %12773 = vsyncadd [#allocation9], 4294965248  ;;  %v12897_v0 = vld [vmem:[#allocation2] sm:$0xff]  ;;  %v12899_v1 = vld [vmem:[#allocation2 + $0x8] sm:$0xff]  ;;  %s12782_s0 = smov [#allocation10]  }
  0x4a   :  { %90 = vadd.xlane.f32.xlu0 %v12897_v0  ;;  %v106_v2 = vmul.f32 %v12897_v0, %v12897_v0  ;;  %v107_v3 = vmul.f32 %v12899_v1, %v12899_v1  ;;  %v12907_v4 = vld [vmem:[#allocation2 + $0x10] sm:$0xff]  ;;  %v12909_v5 = vld [vmem:[#allocation2 + $0x18] sm:$0xff]  ;;  %v12914_v7 = vld [vmem:[#allocation5] sm:$0xff]  ;;  %s7946_s27 = sshll.u32 %s12782_s0, 4  ;;  %s7947_s27 = int_to_ptr.vmem [resolvable:$true] %s7946_s27 }
  0x4b   :  { %v108_v6 = vmul.f32 %v12907_v4, %v12907_v4  ;;  %v12916_v8 = vld [vmem:[#allocation5 + $0x8] sm:$0xff]  ;;  %v109_v9 = vmul.f32 %v12909_v5, %v12909_v5  ;;  %v226_v10 = vand.u32 4294901760, %v12914_v7  ;;  %v12929_v13 = vld [vmem:[#allocation2 + $0x20] sm:$0xff]  ;;  %v12931_v14 = vld [vmem:[#allocation5 + $0x10] sm:$0xff]  ;;  %p12751_p5 = scmp.lt.s32.totalorder %s7947_s27, %s7947_s27 }
  0x4c   :  { %114 = vadd.xlane.f32.xlu1 %v106_v2  ;;  %v229_v11 = vand.u32 4294901760, %v12916_v8  ;;  %v12933_v15 = vld [vmem:[#allocation5 + $0x18] sm:$0xff]  ;;  %v232_v16 = vand.u32 4294901760, %v12931_v14  ;;  %v12938_v18 = vld [vmem:[#allocation2 + $0x28] sm:$0xff]  ;;  %v110_v19 = vmul.f32 %v12929_v13, %v12929_v13  ;;  %v12952_v21 = vld [vmem:[#allocation5 + $0x20] sm:$0xff] }
  0x4d   :  { %v235_v17 = vand.u32 4294901760, %v12933_v15  ;;  %v12954_v22 = vld [vmem:[#allocation5 + $0x28] sm:$0xff]  ;;  %v111_v23 = vmul.f32 %v12938_v18, %v12938_v18  ;;  %v238_v24 = vand.u32 4294901760, %v12952_v21  ;;  %v12971_v27 = vld [vmem:[#allocation2 + $0x30] sm:$0xff]  ;;  %v12975_v29 = vld [vmem:[#allocation5 + $0x38] sm:$0xff]  ;;  %v13064_v56 = vsub.f32 %v12914_v7, %v226_v10 }
  0x4e   :  { %92 = vadd.xlane.f32.xlu0 %v12899_v1  ;;  %v12927_v12 = vpack.c.bf16 %v229_v11, %v226_v10  ;;  %v241_v25 = vand.u32 4294901760, %v12954_v22  ;;  %v12973_v28 = vld [vmem:[#allocation5 + $0x30] sm:$0xff]  ;;  %v247_v31 = vand.u32 4294901760, %v12975_v29  ;;  %v12980_v32 = vld [vmem:[#allocation2 + $0x38] sm:$0xff]  ;;  %v112_v33 = vmul.f32 %v12971_v27, %v12971_v27  ;;  %v12994_v35 = vld [vmem:[#allocation5 + $0x40] sm:$0xff] }
  0x4f   :  { %v12949_v20 = vpack.c.bf16 %v235_v17, %v232_v16  ;;  %v244_v30 = vand.u32 4294901760, %v12973_v28  ;;  %v12996_v36 = vld [vmem:[#allocation5 + $0x48] sm:$0xff]  ;;  %v113_v37 = vmul.f32 %v12980_v32, %v12980_v32  ;;  %v250_v38 = vand.u32 4294901760, %v12994_v35  ;;  %v13013_v41 = vld [vmem:[#allocation5 + $0x50] sm:$0xff]  ;;  %v13015_v42 = vld [vmem:[#allocation5 + $0x58] sm:$0xff] }
  0x50   :  { %116 = vadd.xlane.f32.xlu1 %v107_v3  ;;  %10924 = vmatprep.subr.bf16.mxu0 %v12927_v12  ;;  %v12968_v26 = vpack.c.bf16 %v241_v25, %v238_v24  ;;  %v253_v39 = vand.u32 4294901760, %v12996_v36  ;;  %v256_v43 = vand.u32 4294901760, %v13013_v41  ;;  %v259_v44 = vand.u32 4294901760, %v13015_v42  ;;  %v13029_v46 = vld [vmem:[#allocation5 + $0x60] sm:$0xff]  ;;  %v13031_v47 = vld [vmem:[#allocation5 + $0x68] sm:$0xff]  ;;  %v13045_v51 = vld [vmem:[#allocation5 + $0x70] sm:$0xff] }
  0x51   :  { %10926 = vmatpush3.bf16.msra.mxu0 %v12927_v12  ;;  %10828 = vmatprep.subr.bf16.mxu1 %v12927_v12  ;;  %v12991_v34 = vpack.c.bf16 %v247_v31, %v244_v30  ;;  %v262_v48 = vand.u32 4294901760, %v13029_v46  ;;  %v265_v49 = vand.u32 4294901760, %v13031_v47  ;;  %v13047_v52 = vld [vmem:[#allocation5 + $0x78] sm:$0xff]  ;;  %v268_v53 = vand.u32 4294901760, %v13045_v51 }
  0x52   :  { %94 = vadd.xlane.f32.xlu0 %v12907_v4  ;;  %10830 = vmatpush3.bf16.msra.mxu1 %v12927_v12  ;;  %v13010_v40 = vpack.c.bf16 %v253_v39, %v250_v38  ;;  %v13026_v45 = vpack.c.bf16 %v259_v44, %v256_v43  ;;  %v271_v54 = vand.u32 4294901760, %v13047_v52  ;;  %v13069_v57 = vsub.f32 %v12916_v8, %v229_v11 }
  0x53   :  { %10928 = vmatprep.subr.bf16.mxu0 %v12949_v20  ;;  %10832 = vmatprep.subr.bf16.mxu1 %v12949_v20  ;;  %v13042_v50 = vpack.c.bf16 %v265_v49, %v262_v48  ;;  %v389_v58 = vand.u32 4294901760, %v13064_v56  ;;  %v13084_v63 = vsub.f32 %v12931_v14, %v232_v16  ;;  %v13089_v2 = vsub.f32 %v12933_v15, %v235_v17 }
  0x54   :  { %96 = vadd.xlane.f32.xlu1 %v12909_v5  ;;  %v13058_v55 = vpack.c.bf16 %v271_v54, %v268_v53  ;;  %v396_v59 = vand.u32 4294901760, %v13069_v57  ;;  %v13103_v15 = vsub.f32 %v12952_v21, %v238_v24  ;;  %v13108_v16 = vsub.f32 %v12954_v22, %v241_v25 }
  0x55   :  { %10930 = vmatpush3.bf16.msra.mxu0 %v12949_v20  ;;  %v390_v61 = vsub.f32 %v13064_v56, %v389_v58  ;;  %v403_v7 = vand.u32 4294901760, %v13084_v63  ;;  %v410_v8 = vand.u32 4294901760, %v13089_v2  ;;  %v430_v21 = vsub.f32 %v12973_v28, %v244_v30 }
  0x56   :  { %118 = vadd.xlane.f32.xlu0 %v108_v6  ;;  %10834 = vmatpush3.bf16.msra.mxu1 %v12949_v20  ;;  %v13076_v60 = vpack.c.bf16 %v396_v59, %v389_v58  ;;  %v397_v62 = vsub.f32 %v13069_v57, %v396_v59  ;;  %v437_v24 = vsub.f32 %v12975_v29, %v247_v31 }
  0x57   :  { %10932 = vmatprep.subr.bf16.mxu0 %v12968_v26  ;;  %10836 = vmatprep.subr.bf16.mxu1 %v12968_v26  ;;  %v391_v3 = vand.u32 4294901760, %v390_v61  ;;  %v13096_v10 = vpack.c.bf16 %v410_v8, %v403_v7  ;;  %v404_v11 = vsub.f32 %v13084_v63, %v403_v7  ;;  %v411_v14 = vsub.f32 %v13089_v2, %v410_v8 }
  0x58   :  { %120 = vadd.xlane.f32.xlu1 %v109_v9  ;;  %v398_v6 = vand.u32 4294901760, %v397_v62  ;;  %v431_v59 = vand.u32 4294901760, %v430_v21  ;;  %v438_v61 = vand.u32 4294901760, %v437_v24  ;;  %v444_v28 = vsub.f32 %v12994_v35, %v250_v38 }
  0x59   :  { %10934 = vmatpush3.bf16.msra.mxu0 %v12968_v26  ;;  %v405_v17 = vand.u32 4294901760, %v404_v11  ;;  %v451_v29 = vsub.f32 %v12996_v36, %v253_v39  ;;  %v465_v35 = vsub.f32 %v13015_v42, %v259_v44  ;;  %v479_v42 = vsub.f32 %v13031_v47, %v265_v49 }
  0x5a   :  { %98 = vadd.xlane.f32.xlu0 %v12929_v13  ;;  %10838 = vmatpush3.bf16.msra.mxu1 %v12968_v26  ;;  %v13094_v9 = vpack.c.bf16 %v398_v6, %v391_v3  ;;  %v13125_v6 = vpack.c.bf16 %v438_v61, %v431_v59  ;;  %v432_v7 = vsub.f32 %v430_v21, %v431_v59 }
  0x5b   :  { %10936 = vmatprep.subr.bf16.mxu0 %v12991_v34  ;;  %10840 = vmatprep.subr.bf16.mxu1 %v12991_v34  ;;  %v439_v8 = vsub.f32 %v437_v24, %v438_v61  ;;  %v466_v39 = vand.u32 4294901760, %v465_v35 }
  0x5c   :  { %100 = vadd.xlane.f32.xlu1 %v12938_v18  ;;  %v433_v31 = vand.u32 4294901760, %v432_v7  ;;  %v472_v7 = vsub.f32 %v13029_v46, %v262_v48  ;;  %v493_v46 = vsub.f32 %v13047_v52, %v271_v54  ;;  %v13173_v52 = vpack.c.bf16 %v13069_v57, %v13064_v56 }
  0x5d   :  { %10938 = vmatpush3.bf16.msra.mxu0 %v12991_v34  ;;  %v440_v11 = vand.u32 4294901760, %v439_v8  ;;  %v13181_v54 = vpack.c.bf16 %v13108_v16, %v13103_v15 }
  0x5e   :  { %122 = vadd.xlane.f32.xlu0 %v110_v19  ;;  %10842 = vmatpush3.bf16.msra.mxu1 %v12991_v34  ;;  %v412_v19 = vand.u32 4294901760, %v411_v14  ;;  %v445_v14 = vand.u32 4294901760, %v444_v28  ;;  %v473_v8 = vand.u32 4294901760, %v472_v7  ;;  %v494_v49 = vand.u32 4294901760, %v493_v46 }
  0x5f   :  { %10940 = vmatprep.subr.bf16.mxu0 %v13010_v40  ;;  %10844 = vmatprep.subr.bf16.mxu1 %v13010_v40 }
  0x60   :  { %124 = vadd.xlane.f32.xlu1 %v111_v23  ;;  %v417_v23 = vand.u32 4294901760, %v13103_v15 }
  0x61   :  { %10942 = vmatpush3.bf16.msra.mxu0 %v13010_v40 }
  0x62   :  { %102 = vadd.xlane.f32.xlu0 %v12971_v27  ;;  %10846 = vmatpush3.bf16.msra.mxu1 %v13010_v40  ;;  %v418_v25 = vsub.f32 %v13103_v15, %v417_v23 }
  0x63   :  { %10944 = vmatprep.subr.bf16.mxu0 %v13026_v45  ;;  %10848 = vmatprep.subr.bf16.mxu1 %v13026_v45 }
  0x64   :  { %104 = vadd.xlane.f32.xlu1 %v12980_v32  ;;  %v419_v62 = vand.u32 4294901760, %v418_v25 }
  0x65   :  { %10946 = vmatpush3.bf16.msra.mxu0 %v13026_v45 }
  0x66   :  { %126 = vadd.xlane.f32.xlu0 %v112_v33  ;;  %10850 = vmatpush3.bf16.msra.mxu1 %v13026_v45  ;;  %v424_v33 = vand.u32 4294901760, %v13108_v16 }
  0x67   :  { %10948 = vmatprep.subr.bf16.mxu0 %v13042_v50  ;;  %10852 = vmatprep.subr.bf16.mxu1 %v13042_v50 }
  0x68   :  { %128 = vadd.xlane.f32.xlu1 %v113_v37  ;;  %v13113_v37 = vpack.c.bf16 %v412_v19, %v405_v17  ;;  %v13121_v22 = vpack.c.bf16 %v424_v33, %v417_v23  ;;  %v425_v58 = vsub.f32 %v13108_v16, %v424_v33  ;;  %v452_v17 = vand.u32 4294901760, %v451_v29 }
  0x69   :  { %10950 = vmatpush3.bf16.msra.mxu0 %v13042_v50  ;;  %v13135_v19 = vpack.c.bf16 %v440_v11, %v433_v31  ;;  %v446_v23 = vsub.f32 %v444_v28, %v445_v14  ;;  %v458_v33 = vsub.f32 %v13013_v41, %v256_v43  ;;  %v480_v31 = vand.u32 4294901760, %v479_v42 }
  0x6a   :  { %10854 = vmatpush3.bf16.msra.mxu1 %v13042_v50  ;;  %10952 = vmatprep.subr.bf16.mxu0 %v13058_v55  ;;  %v426_v3 = vand.u32 4294901760, %v425_v58  ;;  %v13143_v38 = vpack.c.bf16 %v452_v17, %v445_v14  ;;  %v453_v25 = vsub.f32 %v451_v29, %v452_v17  ;;  %v474_v14 = vsub.f32 %v472_v7, %v473_v8 }
  0x6b   :  { %10856 = vmatprep.subr.bf16.mxu1 %v13058_v55  ;;  %v447_v58 = vand.u32 4294901760, %v446_v23  ;;  %v459_v36 = vand.u32 4294901760, %v458_v33  ;;  %v486_v17 = vsub.f32 %v13045_v51, %v268_v53  ;;  %v13163_v48 = vpack.c.bf16 %v480_v31, %v473_v8 }
  0x6c   :  { %v13130_v30 = vpack.c.bf16 %v426_v3, %v419_v62  ;;  %v454_v59 = vand.u32 4294901760, %v453_v25  ;;  %v467_v3 = vsub.f32 %v465_v35, %v466_v39  ;;  %v481_v23 = vsub.f32 %v479_v42, %v480_v31 }
  0x6d   :  { %10954 = vmatpush3.bf16.msra.mxu0 %v13058_v55  ;;  %v13145_v61 = vpack.c.bf16 %v466_v39, %v459_v36  ;;  %v460_v62 = vsub.f32 %v458_v33, %v459_v36  ;;  %v475_v25 = vand.u32 4294901760, %v474_v14  ;;  %v487_v47 = vand.u32 4294901760, %v486_v17 }
  0x6e   :  { %10858 = vmatpush3.bf16.msra.mxu1 %v13058_v55  ;;  %10956 = vmatprep.subr.bf16.mxu0 %v13076_v60  ;;  %v13150_v41 = vpack.c.bf16 %v454_v59, %v447_v58  ;;  %v468_v44 = vand.u32 4294901760, %v467_v3  ;;  %v482_v58 = vand.u32 4294901760, %v481_v23  ;;  %v495_v59 = vsub.f32 %v493_v46, %v494_v49 }
  0x6f   :  { %10860 = vmatprep.subr.bf16.mxu1 %v13094_v9  ;;  %v461_v43 = vand.u32 4294901760, %v460_v62  ;;  %v13165_v36 = vpack.c.bf16 %v494_v49, %v487_v47  ;;  %v488_v39 = vsub.f32 %v486_v17, %v487_v47  ;;  %v13177_v53 = vpack.c.bf16 %v13089_v2, %v13084_v63 }
  0x70   :  { %v13167_v62 = vpack.c.bf16 %v482_v58, %v475_v25  ;;  %v13185_v8 = vpack.c.bf16 %v451_v29, %v444_v28  ;;  %v13187_v31 = vpack.c.bf16 %v465_v35, %v458_v33  ;;  %v13189_v14 = vpack.c.bf16 %v479_v42, %v472_v7 }
  0x71   :  { %v13155_v11 = vpack.c.bf16 %v468_v44, %v461_v43  ;;  %v489_v3 = vand.u32 4294901760, %v488_v39  ;;  %v496_v43 = vand.u32 4294901760, %v495_v59  ;;  %v13183_v44 = vpack.c.bf16 %v437_v24, %v430_v21 }
  0x72   :  { %v13191_v23 = vpack.c.bf16 %v493_v46, %v486_v17 }
  0x73   :  { %v13169_v51 = vpack.c.bf16 %v496_v43, %v489_v3 }
  0x74   :  { %17172 = vst [vmem:[#allocation15_spill] sm:$0xff] %v13191_v23 }
  0xd7   :  { %v91_v56 = vpop.xlane.xlu0 %90 }
  0xd8   :  { %v130_v57 = vmul.f32 0.0078125, %v91_v56 }
  0xd9   :  { %v115_v25 = vpop.xlane.xlu1 %114 }
  0xda   :  { %v146_v47 = vmul.f32 %v130_v57, %v130_v57  ;;  %v138_v63 = vmul.f32 0.0078125, %v115_v25 }
  0xdb   :  { %v93_v2 = vpop.xlane.xlu0 %92 }
  0xdc   :  { %v154_v49 = vsub.f32 %v138_v63, %v146_v47  ;;  %v131_v58 = vmul.f32 0.0078125, %v93_v2 }
  0xdd   :  { %v117_v15 = vpop.xlane.xlu1 %116 }
  0xde   :  { %v162_v16 = vmax.f32 %v154_v49, 0.0  ;;  %v147_v21 = vmul.f32 %v131_v58, %v131_v58  ;;  %v139_v24 = vmul.f32 0.0078125, %v117_v15 }
  0xdf   :  { %v95_v28 = vpop.xlane.xlu0 %94 }
  0xe0   :  { %v178_v29 = vadd.f32 1e-05, %v162_v16  ;;  %v155_v33 = vsub.f32 %v139_v24, %v147_v21  ;;  %v13193_v35 = vmul.f32 0.0078125, %v95_v28 }
  0xe1   :  { %v97_v7 = vpop.xlane.xlu1 %96 }
  0xe2   :  { %12514 = vrsqrt.f32 %v178_v29  ;;  %v163_v42 = vmax.f32 %v155_v33, 0.0  ;;  %v148_v17 = vmul.f32 %v13193_v35, %v13193_v35  ;;  %v13197_v46 = vmul.f32 0.0078125, %v97_v7 }
  0xe3   :  { %v119_v39 = vpop.xlane.xlu0 %118  ;;  %v170_v29 = vsub.f32 %v12897_v0, %v130_v57 }
  0xe4   :  { %v179_v59 = vadd.f32 1e-05, %v163_v42  ;;  %v140_v3 = vmul.f32 0.0078125, %v119_v39  ;;  %v149_v43 = vmul.f32 %v13197_v46, %v13197_v46 }
  0xe5   :  { %v121_v56 = vpop.xlane.xlu1 %120 }
  0xe6   :  { %12516 = vrsqrt.f32 %v179_v59  ;;  %v156_v25 = vsub.f32 %v140_v3, %v148_v17  ;;  %v141_v47 = vmul.f32 0.0078125, %v121_v56 }
  0xe7   :  { %v99_v63 = vpop.xlane.xlu0 %98 }
  0xe8   :  { %v164_v2 = vmax.f32 %v156_v25, 0.0  ;;  %v157_v49 = vsub.f32 %v141_v47, %v149_v43  ;;  %v13201_v15 = vmul.f32 0.0078125, %v99_v63  ;;  %v171_v47 = vsub.f32 %v12899_v1, %v131_v58 }
  0xe9   :  { %v101_v16 = vpop.xlane.xlu1 %100 }
  0xea   :  { %v180_v21 = vadd.f32 1e-05, %v164_v2  ;;  %v165_v24 = vmax.f32 %v157_v49, 0.0  ;;  %v150_v28 = vmul.f32 %v13201_v15, %v13201_v15  ;;  %v13206_v33 = vmul.f32 0.0078125, %v101_v16 }
  0xeb   :  { %v123_v7 = vpop.xlane.xlu0 %122 }
  0xec   :  { %v12515_v42 = vpop.eup %12514  ;;  %12518 = vrsqrt.f32 %v180_v21  ;;  %v181_v17 = vadd.f32 1e-05, %v165_v24  ;;  %v142_v39 = vmul.f32 0.0078125, %v123_v7  ;;  %v151_v59 = vmul.f32 %v13206_v33, %v13206_v33 }
  0xed   :  { %v125_v3 = vpop.xlane.xlu1 %124  ;;  %v13210_v43 = vmul.f32 %v12515_v42, %v170_v29 }
  0xee   :  { %12520 = vrsqrt.f32 %v181_v17  ;;  %v158_v56 = vsub.f32 %v142_v39, %v150_v28  ;;  %v143_v25 = vmul.f32 0.0078125, %v125_v3 }
  0xef   :  { %17173 = vst [vmem:[#allocation16_spill] sm:$0xff] %v13210_v43  ;;  %v103_v63 = vpop.xlane.xlu0 %102  ;;  %v13214_v0 = vand.u32 4294901760, %v13210_v43 }
  0xf0   :  { %v12517_v57 = vpop.eup %12516  ;;  %v166_v2 = vmax.f32 %v158_v56, 0.0  ;;  %v159_v49 = vsub.f32 %v143_v25, %v151_v59  ;;  %v13216_v16 = vmul.f32 0.0078125, %v103_v63  ;;  %v172_v56 = vsub.f32 %v12907_v4, %v13193_v35 }
  0xf1   :  { %v105_v21 = vpop.xlane.xlu1 %104  ;;  %v13220_v24 = vsub.f32 %v13210_v43, %v13214_v0  ;;  %v13222_v29 = vmul.f32 %v12517_v57, %v171_v47 }
  0xf2   :  { %v182_v28 = vadd.f32 1e-05, %v166_v2  ;;  %v167_v7 = vmax.f32 %v159_v49, 0.0  ;;  %v152_v1 = vmul.f32 %v13216_v16, %v13216_v16  ;;  %v13226_v58 = vmul.f32 0.0078125, %v105_v21 }
  0xf3   :  { %17174 = vst [vmem:[#allocation17_spill] sm:$0xff] %v13222_v29  ;;  %v127_v42 = vpop.xlane.xlu0 %126  ;;  %v308_v17 = vand.u32 4294901760, %v13220_v24  ;;  %v13230_v39 = vand.u32 4294901760, %v13222_v29 }
  0xf4   :  { %12522 = vrsqrt.f32 %v182_v28  ;;  %v183_v59 = vadd.f32 1e-05, %v167_v7  ;;  %v144_v3 = vmul.f32 0.0078125, %v127_v42  ;;  %v153_v25 = vmul.f32 %v13226_v58, %v13226_v58 }
  0xf5   :  { %9143 = vmatprep.mubr.f32.mxu0 %v308_v17  ;;  %v129_v47 = vpop.xlane.xlu1 %128  ;;  %v309_v63 = vsub.f32 %v13220_v24, %v308_v17  ;;  %v13239_v57 = vsub.f32 %v13222_v29, %v13230_v39  ;;  %v173_v28 = vsub.f32 %v12909_v5, %v13197_v46 }
  0xf6   :  { %v12519_v2 = vpop.eup %12518  ;;  %12524 = vrsqrt.f32 %v183_v59  ;;  %v160_v49 = vsub.f32 %v144_v3, %v152_v1  ;;  %v145_v21 = vmul.f32 0.0078125, %v129_v47  ;;  %v174_v47 = vsub.f32 %v12929_v13, %v13201_v15 }
  0xf7   :  { %v310_v7 = vand.u32 4294901760, %v309_v63  ;;  %v318_v4 = vand.u32 4294901760, %v13239_v57  ;;  %v13244_v35 = vmul.f32 %v12519_v2, %v172_v56  ;;  %v175_v63 = vsub.f32 %v12938_v18, %v13206_v33 }
  0xf8   :  { %v12521_v42 = vpop.eup %12520  ;;  %v168_v43 = vmax.f32 %v160_v49, 0.0  ;;  %v161_v23 = vsub.f32 %v145_v21, %v153_v25 }
  0xf9   :  { %17175 = vst [vmem:[#allocation18_spill] sm:$0xff] %v13244_v35  ;;  %9011 = vmatprep.mubr.f32.mxu1 %v310_v7  ;;  %9144 = vmatmul.mubr.f32.vlgmr.msra.gmra.mrb[0].mxu0 %v318_v4  ;;  %v319_v17 = vsub.f32 %v13239_v57, %v318_v4  ;;  %v13248_v29 = vand.u32 4294901760, %v13244_v35  ;;  %v13250_v1 = vmul.f32 %v12521_v42, %v173_v28 }
  0xfa   :  { %v184_v59 = vadd.f32 1e-05, %v168_v43  ;;  %v169_v3 = vmax.f32 %v161_v23, 0.0  ;;  %10958 = vmatpush3.bf16.msra.mxu0 %v13076_v60  ;;  %v176_v4 = vsub.f32 %v12971_v27, %v13216_v16 }
  0xfb   :  { %17176 = vst [vmem:[#allocation19_spill] sm:$0xff] %v13250_v1  ;;  %10960 = vmatprep.subr.bf16.mxu0 %v13096_v10  ;;  %v320_v5 = vand.u32 4294901760, %v319_v17  ;;  %v13256_v46 = vsub.f32 %v13244_v35, %v13248_v29  ;;  %v13259_v56 = vand.u32 4294901760, %v13250_v1  ;;  %v177_v17 = vsub.f32 %v12980_v32, %v13226_v58 }
  0xfc   :  { %12526 = vrsqrt.f32 %v184_v59  ;;  %v185_v25 = vadd.f32 1e-05, %v169_v3 }
  0xfd   :  { %9012 = vmatmul.mubr.f32.vlgmr.msra.gmra.mrb[0].mxu1 %v320_v5  ;;  %v328_v23 = vand.u32 4294901760, %v13256_v46  ;;  %v13266_v60 = vsub.f32 %v13250_v1, %v13259_v56 }
  0xfe   :  { %v12523_v43 = vpop.eup %12522  ;;  %12528 = vrsqrt.f32 %v185_v25  ;;  %10862 = vmatpush3.bf16.msra.mxu1 %v13094_v9  ;;  %10962 = vmatpush3.bf16.msra.mxu0 %v13096_v10 }
  0xff   :  { %9146 = vmatprep.mubr.f32.mxu0 %v328_v23  ;;  %10864 = vmatprep.subr.bf16.mxu1 %v13113_v37  ;;  %v338_v13 = vand.u32 4294901760, %v13266_v60  ;;  %v329_v15 = vsub.f32 %v13256_v46, %v328_v23  ;;  %v13275_v2 = vmul.f32 %v12523_v43, %v174_v47 }
 0x100   :  { %v12525_v49 = vpop.eup %12524  ;;  %10964 = vmatprep.subr.bf16.mxu0 %v13121_v22 }
 0x101   :  { %17177 = vst [vmem:[#allocation20_spill] sm:$0xff] %v13275_v2  ;;  %9147 = vmatmul.mubr.f32.gmra.mrb[2].mxu0 %v338_v13  ;;  %v330_v21 = vand.u32 4294901760, %v329_v15  ;;  %v339_v9 = vsub.f32 %v13266_v60, %v338_v13  ;;  %v13280_v10 = vand.u32 4294901760, %v13275_v2  ;;  %v13282_v18 = vmul.f32 %v12525_v49, %v175_v63 }
 0x102   :  { %10866 = vmatpush3.bf16.msra.mxu1 %v13113_v37  ;;  %10966 = vmatpush3.bf16.msra.mxu0 %v13121_v22 }
 0x103   :  { %17178 = vst [vmem:[#allocation21_spill] sm:$0xff] %v13282_v18  ;;  %9014 = vmatprep.mubr.f32.mxu1 %v330_v21  ;;  %10868 = vmatprep.subr.bf16.mxu1 %v13130_v30  ;;  %v340_v33 = vand.u32 4294901760, %v339_v9  ;;  %v13289_v28 = vsub.f32 %v13275_v2, %v13280_v10  ;;  %v13292_v7 = vand.u32 4294901760, %v13282_v18 }
 0x104   :  { %10968 = vmatprep.subr.bf16.mxu0 %v13125_v6 }
 0x105   :  { %9015 = vmatmul.mubr.f32.gmra.mrb[2].mxu1 %v340_v33  ;;  %v348_v37 = vand.u32 4294901760, %v13289_v28  ;;  %v13300_v22 = vsub.f32 %v13282_v18, %v13292_v7 }
 0x106   :  { %v12527_v42 = vpop.eup %12526  ;;  %10870 = vmatpush3.bf16.msra.mxu1 %v13130_v30  ;;  %10970 = vmatpush3.bf16.msra.mxu0 %v13125_v6 }
 0x107   :  { %9149 = vmatprep.mubr.f32.mxu0 %v348_v37  ;;  %10872 = vmatprep.subr.bf16.mxu1 %v13135_v19  ;;  %v358_v27 = vand.u32 4294901760, %v13300_v22  ;;  %v349_v16 = vsub.f32 %v13289_v28, %v348_v37  ;;  %v13309_v59 = vmul.f32 %v12527_v42, %v176_v4  ;;  %v1287_v37 = vld [vmem:[#allocation7] sm:$0xff] }
 0x108   :  { %v12529_v3 = vpop.eup %12528  ;;  %10972 = vmatprep.subr.bf16.mxu0 %v13143_v38  ;;  %v1311_v42 = vand.u32 4294901760, %v1287_v37 }
 0x109   :  { %17179 = vst [vmem:[#allocation22_spill] sm:$0xff] %v13309_v59  ;;  %9150 = vmatmul.mubr.f32.gmra.mrb[4].mxu0 %v358_v27  ;;  %v350_v5 = vand.u32 4294901760, %v349_v16  ;;  %v359_v30 = vsub.f32 %v13300_v22, %v358_v27  ;;  %v13314_v6 = vand.u32 4294901760, %v13309_v59  ;;  %v13316_v32 = vmul.f32 %v12529_v3, %v177_v17 }
 0x10a   :  { %10874 = vmatpush3.bf16.msra.mxu1 %v13135_v19  ;;  %10974 = vmatpush3.bf16.msra.mxu0 %v13143_v38 }
 0x10b   :  { %17180 = vst [vmem:[#allocation23_spill] sm:$0xff] %v13316_v32  ;;  %9017 = vmatprep.mubr.f32.mxu1 %v350_v5  ;;  %10876 = vmatprep.subr.bf16.mxu1 %v13150_v41  ;;  %v360_v58 = vand.u32 4294901760, %v359_v30  ;;  %v13323_v25 = vsub.f32 %v13309_v59, %v13314_v6  ;;  %v13326_v47 = vand.u32 4294901760, %v13316_v32  ;;  %v1289_v5 = vld [vmem:[#allocation7 + $0x10] sm:$0xff]  ;;  %v1290_v30 = vld [vmem:[#allocation7 + $0x18] sm:$0xff] }
 0x10c   :  { %10976 = vmatprep.subr.bf16.mxu0 %v13145_v61 }
 0x10d   :  { %9018 = vmatmul.mubr.f32.gmra.mrb[4].mxu1 %v360_v58  ;;  %v368_v23 = vand.u32 4294901760, %v13323_v25  ;;  %v13332_v19 = vsub.f32 %v13316_v32, %v13326_v47  ;;  %v1320_v58 = vand.u32 4294901760, %v1290_v30 }
 0x10e   :  { %10878 = vmatpush3.bf16.msra.mxu1 %v13150_v41  ;;  %10978 = vmatpush3.bf16.msra.mxu0 %v13145_v61 }
 0x10f   :  { %9152 = vmatprep.mubr.f32.mxu0 %v368_v23  ;;  %10880 = vmatprep.subr.bf16.mxu1 %v13155_v11  ;;  %v378_v38 = vand.u32 4294901760, %v13332_v19  ;;  %v369_v43 = vsub.f32 %v13323_v25, %v368_v23  ;;  %v13459_v23 = vld [vmem:[#allocation7 + $0x28] sm:$0xff] }
 0x110   :  { %10980 = vmatprep.subr.bf16.mxu0 %v13163_v48 }
 0x111   :  { %9153 = vmatmul.mubr.f32.gmra.mrb[6].mxu0 %v378_v38  ;;  %v370_v63 = vand.u32 4294901760, %v369_v43  ;;  %v379_v13 = vsub.f32 %v13332_v19, %v378_v38  ;;  %v1326_v38 = vand.u32 4294901760, %v13459_v23 }
 0x112   :  { %10882 = vmatpush3.bf16.msra.mxu1 %v13155_v11  ;;  %10982 = vmatpush3.bf16.msra.mxu0 %v13163_v48 }
 0x113   :  { %9187 = vmatprep.mubr.f32.mxu0 %v13214_v0  ;;  %9020 = vmatprep.mubr.f32.mxu1 %v370_v63  ;;  %v380_v61 = vand.u32 4294901760, %v379_v13 }
 0x114   :  { %10884 = vmatprep.subr.bf16.mxu1 %v13167_v62  ;;  %10984 = vmatprep.subr.bf16.mxu0 %v13165_v36 }
 0x115   :  { %9021 = vmatmul.mubr.f32.gmra.mrb[6].mxu1 %v380_v61  ;;  %v1293_v61 = vld [vmem:[#allocation7 + $0x30] sm:$0xff] }
 0x116   :  { %10886 = vmatpush3.bf16.msra.mxu1 %v13167_v62  ;;  %10986 = vmatpush3.bf16.msra.mxu0 %v13165_v36 }
 0x117   :  { %9055 = vmatprep.mubr.f32.mxu1 %v13214_v0  ;;  %10888 = vmatprep.subr.bf16.mxu1 %v13169_v51 }
 0x118   :  { %10988 = vmatprep.subr.bf16.mxu0 %v12927_v12 }
 0x119   :  { %9188 = vmatmul.mubr.f32.vlgmr.msra.gmra.mrb[0].mxu0 %v13230_v39 }
 0x11a   :  { %10890 = vmatpush3.bf16.msra.mxu1 %v13169_v51  ;;  %9190 = vmatprep.mubr.f32.mxu0 %v13248_v29 }
 0x11b   :  { %10990 = vmatpush3.bf16.msra.mxu0 %v12927_v12  ;;  %10892 = vmatprep.subr.bf16.mxu1 %v13173_v52  ;;  %v17181_v12 = vld [vmem:[#allocation15_spill] sm:$0xff] }
 0x11c   :  { %10992 = vmatprep.subr.bf16.mxu0 %v12949_v20 }
 0x11d   :  { %9056 = vmatmul.mubr.f32.vlgmr.msra.gmra.mrb[0].mxu1 %v13230_v39  ;;  %9191 = vmatmul.mubr.f32.gmra.mrb[2].mxu0 %v13259_v56 }
 0x11e   :  { %9058 = vmatprep.mubr.f32.mxu1 %v13248_v29  ;;  %10894 = vmatpush3.bf16.msra.mxu1 %v13173_v52 }
 0x11f   :  { %9193 = vmatprep.mubr.f32.mxu0 %v13280_v10  ;;  %10994 = vmatpush3.bf16.msra.mxu0 %v12949_v20 }
 0x120   :  { %10896 = vmatprep.subr.bf16.mxu1 %v13177_v53  ;;  %10996 = vmatprep.subr.bf16.mxu0 %v12968_v26 }
 0x121   :  { %9059 = vmatmul.mubr.f32.gmra.mrb[2].mxu1 %v13259_v56  ;;  %9194 = vmatmul.mubr.f32.gmra.mrb[4].mxu0 %v13292_v7 }
 0x122   :  { %9061 = vmatprep.mubr.f32.mxu1 %v13280_v10  ;;  %10898 = vmatpush3.bf16.msra.mxu1 %v13177_v53 }
 0x123   :  { %9196 = vmatprep.mubr.f32.mxu0 %v13314_v6  ;;  %10998 = vmatpush3.bf16.msra.mxu0 %v12968_v26 }
 0x124   :  { %10900 = vmatprep.subr.bf16.mxu1 %v13181_v54  ;;  %11000 = vmatprep.subr.bf16.mxu0 %v12991_v34 }
 0x125   :  { %9062 = vmatmul.mubr.f32.gmra.mrb[4].mxu1 %v13292_v7  ;;  %9197 = vmatmul.mubr.f32.gmra.mrb[6].mxu0 %v13326_v47 }
 0x126   :  { %9064 = vmatprep.mubr.f32.mxu1 %v13314_v6  ;;  %10902 = vmatpush3.bf16.msra.mxu1 %v13181_v54 }
 0x127   :  { %11002 = vmatpush3.bf16.msra.mxu0 %v12991_v34  ;;  %9231 = vmatprep.mubr.f32.mxu0 %v13214_v0  ;;  %v7960_v34 = vld [vmem:[%s16987_s2] ss:$0 sm:$0xff] }
 0x128   :  { %10904 = vmatprep.subr.bf16.mxu1 %v13183_v44  ;;  %11004 = vmatprep.subr.bf16.mxu0 %v13010_v40 }
 0x129   :  { %9065 = vmatmul.mubr.f32.gmra.mrb[6].mxu1 %v13326_v47 }
 0x12a   :  { %10906 = vmatpush3.bf16.msra.mxu1 %v13183_v44  ;;  %9099 = vmatprep.mubr.f32.mxu1 %v13220_v24 }
 0x12b   :  { %11006 = vmatpush3.bf16.msra.mxu0 %v13010_v40  ;;  %10908 = vmatprep.subr.bf16.mxu1 %v13185_v8 }
 0x12c   :  { %11008 = vmatprep.subr.bf16.mxu0 %v13026_v45 }
 0x12e   :  { %10910 = vmatpush3.bf16.msra.mxu1 %v13185_v8 }
 0x12f   :  { %11010 = vmatpush3.bf16.msra.mxu0 %v13026_v45  ;;  %10912 = vmatprep.subr.bf16.mxu1 %v13187_v31 }
 0x130   :  { %11012 = vmatprep.subr.bf16.mxu0 %v13042_v50 }
 0x132   :  { %10914 = vmatpush3.bf16.msra.mxu1 %v13187_v31 }
 0x133   :  { %11014 = vmatpush3.bf16.msra.mxu0 %v13042_v50  ;;  %10916 = vmatprep.subr.bf16.mxu1 %v13189_v14 }
 0x134   :  { %11016 = vmatprep.subr.bf16.mxu0 %v13058_v55 }
 0x136   :  { %10918 = vmatpush3.bf16.msra.mxu1 %v13189_v14 }
 0x137   :  { %11018 = vmatpush3.bf16.msra.mxu0 %v13058_v55  ;;  %10920 = vmatprep.subr.bf16.mxu1 %v17181_v12 }
 0x13a   :  { %9232 = vmatmul.mubr.f32.vlgmr.msra.gmra.mrb[0].mxu0 %v13230_v39  ;;  %10922 = vmatpush3.bf16.msra.mxu1 %v17181_v12  ;;  %v1294_v12 = vld [vmem:[#allocation7 + $0x38] sm:$0xff] }
 0x13b   :  { %9234 = vmatprep.mubr.f32.mxu0 %v13248_v29 }
 0x13d   :  { %9100 = vmatmul.mubr.f32.vlgmr.msra.gmra.mrb[0].mxu1 %v13239_v57 }
 0x13e   :  { %9235 = vmatmul.mubr.f32.gmra.mrb[2].mxu0 %v13259_v56  ;;  %9102 = vmatprep.mubr.f32.mxu1 %v13256_v46 }
 0x13f   :  { %9237 = vmatprep.mubr.f32.mxu0 %v13280_v10 }
 0x141   :  { %9103 = vmatmul.mubr.f32.gmra.mrb[2].mxu1 %v13266_v60 }
 0x142   :  { %9238 = vmatmul.mubr.f32.gmra.mrb[4].mxu0 %v13292_v7  ;;  %9105 = vmatprep.mubr.f32.mxu1 %v13289_v28 }
 0x143   :  { %9240 = vmatprep.mubr.f32.mxu0 %v13314_v6  ;;  %v1317_v6 = vand.u32 4294901760, %v1289_v5 }
 0x145   :  { %9106 = vmatmul.mubr.f32.gmra.mrb[4].mxu1 %v13300_v22  ;;  %v1288_v22 = vld [vmem:[#allocation7 + $0x8] sm:$0xff] }
 0x146   :  { %9241 = vmatmul.mubr.f32.gmra.mrb[6].mxu0 %v13326_v47  ;;  %9108 = vmatprep.mubr.f32.mxu1 %v13323_v25  ;;  %v1314_v17 = vand.u32 4294901760, %v1288_v22  ;;  %v13454_v25 = vpack.c.bf16 %v1320_v58, %v1317_v6  ;;  %v13457_v47 = vld [vmem:[#allocation7 + $0x20] sm:$0xff] }
 0x148   :  { %v13450_v3 = vpack.c.bf16 %v1314_v17, %v1311_v42 }
 0x149   :  { %9109 = vmatmul.mubr.f32.gmra.mrb[6].mxu1 %v13332_v19  ;;  %v1323_v19 = vand.u32 4294901760, %v13457_v47 }
 0x14a   :  { %11020 = vmatprep.subr.bf16.mxu1 %v13450_v3 }
 0x14b   :  { %11022 = vmatpush3.bf16.msra.mxu1 %v13450_v3  ;;  %v13470_v13 = vpack.c.bf16 %v1326_v38, %v1323_v19 }
 0x14c   :  { %11024 = vmatprep.subr.bf16.mxu1 %v13454_v25 }
 0x14f   :  { %11026 = vmatpush3.bf16.msra.mxu1 %v13454_v25 }
 0x150   :  { %11028 = vmatprep.subr.bf16.mxu1 %v13470_v13 }
 0x153   :  { %11030 = vmatpush3.bf16.msra.mxu1 %v13470_v13 }
 0x20d   :  { %v9233_v20 = vpop.f32.mrb[0].mxu0 }
 0x20e   :  { %v1121_v26 = vpop.f32.mrb[1].mxu0 }
 0x210   :  { %v9101_v40 = vpop.f32.mrb[0].mxu1 }
 0x211   :  { %v12171_v45 = vadd.f32 %v9101_v40, %v7960_v34  ;;  %v9236_v50 = vpop.f32.mrb[2].mxu0  ;;  %v679_v55 = vpop.f32.mrb[1].mxu1  ;;  %v13476_v40 = vld [vmem:[#allocation7 + $0x40] sm:$0xff] }
 0x212   :  { %v12173_v41 = vadd.f32 %v7960_v34, %v679_v55  ;;  %v1133_v11 = vpop.f32.mrb[3].mxu0 }
 0x213   :  { %v13416_v48 = vadd.f32 %v12171_v45, %v9233_v20  ;;  %v1329_v20 = vand.u32 4294901760, %v1293_v61  ;;  %v13478_v45 = vld [vmem:[#allocation7 + $0x48] sm:$0xff] }
 0x214   :  { %v13418_v36 = vadd.f32 %v12173_v41, %v1121_v26  ;;  %v9104_v62 = vpop.f32.mrb[2].mxu1  ;;  %v1332_v26 = vand.u32 4294901760, %v1294_v12  ;;  %v1338_v55 = vand.u32 4294901760, %v13478_v45 }
 0x215   :  { %v12175_v51 = vadd.f32 %v9104_v62, %v7960_v34  ;;  %v9239_v52 = vpop.f32.mrb[4].mxu0  ;;  %1169 = vadd.xlane.f32.xlu1 %v13416_v48  ;;  %v693_v53 = vpop.f32.mrb[3].mxu1  ;;  %v1184_v31 = vmul.f32 %v13416_v48, %v13416_v48  ;;  %v13488_v62 = vld [vmem:[#allocation7 + $0x58] sm:$0xff] }
 0x216   :  { %v1145_v54 = vpop.f32.mrb[5].mxu0  ;;  %v12177_v44 = vadd.f32 %v7960_v34, %v693_v53  ;;  %1167 = vadd.xlane.f32.xlu0 %v13418_v36  ;;  %v1183_v24 = vmul.f32 %v13418_v36, %v13418_v36 }
 0x217   :  { %v13422_v8 = vadd.f32 %v12175_v51, %v9236_v50  ;;  %v1335_v50 = vand.u32 4294901760, %v13476_v40 }
 0x218   :  { %v13426_v14 = vadd.f32 %v12177_v44, %v1133_v11  ;;  %v9107_v0 = vpop.f32.mrb[4].mxu1  ;;  %v13486_v11 = vld [vmem:[#allocation7 + $0x50] sm:$0xff]  ;;  %v13498_v44 = vld [vmem:[#allocation7 + $0x68] sm:$0xff] }
 0x219   :  { %v12179_v29 = vadd.f32 %v9107_v0, %v7960_v34  ;;  %v9242_v39 = vpop.f32.mrb[6].mxu0  ;;  %1193 = vadd.xlane.f32.xlu1 %v1184_v31  ;;  %v707_v57 = vpop.f32.mrb[5].mxu1  ;;  %v1186_v28 = vmul.f32 %v13422_v8, %v13422_v8  ;;  %v13484_v41 = vpack.c.bf16 %v1338_v55, %v1335_v50  ;;  %v1341_v51 = vand.u32 4294901760, %v13486_v11 }
 0x21a   :  { %v1157_v46 = vpop.f32.mrb[7].mxu0  ;;  %v12181_v56 = vadd.f32 %v7960_v34, %v707_v57  ;;  %1191 = vadd.xlane.f32.xlu0 %v1183_v24  ;;  %v1185_v4 = vmul.f32 %v13426_v14, %v13426_v14  ;;  %v1350_v0 = vand.u32 4294901760, %v13498_v44  ;;  %v13514_v57 = vld [vmem:[#allocation7 + $0x70] sm:$0xff] }
 0x21b   :  { %v13430_v60 = vadd.f32 %v12179_v29, %v9239_v52  ;;  %v1344_v52 = vand.u32 4294901760, %v13488_v62  ;;  %v13510_v29 = vsub.f32 %v1287_v37, %v1311_v42  ;;  %v13536_v37 = vsub.f32 %v1289_v5, %v1317_v6 }
 0x21c   :  { %v13432_v15 = vadd.f32 %v12181_v56, %v1145_v54  ;;  %v9110_v49 = vpop.f32.mrb[6].mxu1  ;;  %v13496_v54 = vld [vmem:[#allocation7 + $0x60] sm:$0xff]  ;;  %v1353_v56 = vand.u32 4294901760, %v13514_v57  ;;  %v13550_v5 = vsub.f32 %v13457_v47, %v1323_v19  ;;  %v13567_v19 = vsub.f32 %v1293_v61, %v1329_v20 }
 0x21d   :  { %v12183_v21 = vadd.f32 %v9110_v49, %v7960_v34  ;;  %1173 = vadd.xlane.f32.xlu1 %v13422_v8  ;;  %v721_v9 = vpop.f32.mrb[7].mxu1  ;;  %v1188_v27 = vmul.f32 %v13430_v60, %v13430_v60  ;;  %v13494_v53 = vpack.c.bf16 %v1344_v52, %v1341_v51  ;;  %v1347_v31 = vand.u32 4294901760, %v13496_v54 }
 0x21e   :  { %v12185_v10 = vadd.f32 %v7960_v34, %v721_v9  ;;  %1171 = vadd.xlane.f32.xlu0 %v13426_v14  ;;  %v1187_v16 = vmul.f32 %v13432_v15, %v13432_v15  ;;  %v13474_v34 = vpack.c.bf16 %v1332_v26, %v1329_v20  ;;  %17182 = vst [vmem:[#allocation15_spill] sm:$0xff] %v13567_v19 }
 0x21f   :  { %v13436_v33 = vadd.f32 %v12183_v21, %v9242_v39  ;;  %v13508_v24 = vpack.c.bf16 %v1350_v0, %v1347_v31  ;;  %v13512_v39 = vsub.f32 %v1288_v22, %v1314_v17  ;;  %v17011_v21 = vand.u32 4294901760, %v13510_v29 }
 0x220   :  { %v13440_v7 = vadd.f32 %v12185_v10, %v1157_v46  ;;  %11032 = vmatprep.subr.bf16.mxu1 %v13474_v34  ;;  %v13516_v46 = vld [vmem:[#allocation7 + $0x78] sm:$0xff]  ;;  %v13538_v22 = vsub.f32 %v1290_v30, %v1320_v58  ;;  %v13553_v30 = vsub.f32 %v13459_v23, %v1326_v38  ;;  %v13569_v38 = vsub.f32 %v1294_v12, %v1332_v26 }
 0x221   :  { %1197 = vadd.xlane.f32.xlu1 %v1186_v28  ;;  %v1190_v43 = vmul.f32 %v13436_v33, %v13436_v33  ;;  %11034 = vmatpush3.bf16.msra.mxu1 %v13474_v34  ;;  %v1356_v49 = vand.u32 4294901760, %v13516_v46  ;;  %v16998_v9 = vand.u32 4294901760, %v13512_v39  ;;  %v1475_v28 = vsub.f32 %v13510_v29, %v17011_v21 }
 0x222   :  { %1195 = vadd.xlane.f32.xlu0 %v1185_v4  ;;  %v1189_v63 = vmul.f32 %v13440_v7, %v13440_v7  ;;  %11036 = vmatprep.subr.bf16.mxu1 %v13484_v41  ;;  %17183 = vst [vmem:[#allocation24_spill] sm:$0xff] %v13569_v38  ;;  %v13584_v12 = vsub.f32 %v13476_v40, %v1335_v50 }
 0x223   :  { %v13528_v10 = vpack.c.bf16 %v1356_v49, %v1353_v56  ;;  %v1482_v4 = vsub.f32 %v13512_v39, %v16998_v9  ;;  %v1476_v42 = vand.u32 4294901760, %v1475_v28  ;;  %v16999_v28 = vand.u32 4294901760, %v13550_v5 }
 0x224   :  { %17184 = vst [vmem:[#allocation25_spill] sm:$0xff] %v13584_v12  ;;  %v13587_v20 = vsub.f32 %v13478_v45, %v1338_v55  ;;  %v13600_v40 = vsub.f32 %v13488_v62, %v1344_v52  ;;  %v13616_v62 = vsub.f32 %v13496_v54, %v1347_v31 }
 0x225   :  { %1177 = vadd.xlane.f32.xlu1 %v13430_v60  ;;  %11038 = vmatpush3.bf16.msra.mxu1 %v13484_v41  ;;  %v1483_v17 = vand.u32 4294901760, %v1482_v4  ;;  %v17010_v4 = vand.u32 4294901760, %v13553_v30  ;;  %v1503_v47 = vsub.f32 %v13550_v5, %v16999_v28 }
 0x226   :  { %1175 = vadd.xlane.f32.xlu0 %v13432_v15  ;;  %11040 = vmatprep.subr.bf16.mxu1 %v13494_v53  ;;  %17185 = vst [vmem:[#allocation26_spill] sm:$0xff] %v13587_v20  ;;  %17187 = vst [vmem:[#allocation28_spill] sm:$0xff] %v13600_v40 }
 0x227   :  { %v1510_v23 = vsub.f32 %v13553_v30, %v17010_v4  ;;  %17188 = vst [vmem:[#allocation29_spill] sm:$0xff] %v13616_v62 }
 0x229   :  { %1201 = vadd.xlane.f32.xlu1 %v1188_v27  ;;  %11042 = vmatpush3.bf16.msra.mxu1 %v13494_v53  ;;  %v16997_v27 = vand.u32 4294901760, %v13536_v37 }
 0x22a   :  { %1199 = vadd.xlane.f32.xlu0 %v1187_v16  ;;  %11044 = vmatprep.subr.bf16.mxu1 %v13508_v24  ;;  %v16996_v16 = vand.u32 4294901760, %v13538_v22 }
 0x22c   :  { %v1496_v6 = vsub.f32 %v13538_v22, %v16996_v16  ;;  %v1511_v16 = vand.u32 4294901760, %v1510_v23 }
 0x22d   :  { %1181 = vadd.xlane.f32.xlu1 %v13436_v33  ;;  %11046 = vmatpush3.bf16.msra.mxu1 %v13508_v24 }
 0x22e   :  { %1179 = vadd.xlane.f32.xlu0 %v13440_v7  ;;  %11048 = vmatprep.subr.bf16.mxu1 %v13528_v10 }
 0x231   :  { %1205 = vadd.xlane.f32.xlu1 %v1190_v43  ;;  %11050 = vmatpush3.bf16.msra.mxu1 %v13528_v10  ;;  %v13544_v43 = vpack.c.bf16 %v1483_v17, %v1476_v42  ;;  %v1497_v42 = vand.u32 4294901760, %v1496_v6  ;;  %v17008_v6 = vand.u32 4294901760, %v13569_v38 }
 0x232   :  { %1203 = vadd.xlane.f32.xlu0 %v1189_v63  ;;  %v1489_v63 = vsub.f32 %v13536_v37, %v16997_v27  ;;  %v17009_v27 = vand.u32 4294901760, %v13567_v19 }
 0x233   :  { %11052 = vmatprep.subr.bf16.mxu1 %v13544_v43  ;;  %v1524_v61 = vsub.f32 %v13569_v38, %v17008_v6 }
 0x234   :  { %v1490_v58 = vand.u32 4294901760, %v1489_v63  ;;  %v1504_v63 = vand.u32 4294901760, %v1503_v47  ;;  %v1517_v28 = vsub.f32 %v13567_v19, %v17009_v27 }
 0x236   :  { %v13571_v17 = vpack.c.bf16 %v1497_v42, %v1490_v58  ;;  %v13575_v9 = vpack.c.bf16 %v1511_v16, %v1504_v63  ;;  %v1518_v26 = vand.u32 4294901760, %v1517_v28  ;;  %v1525_v58 = vand.u32 4294901760, %v1524_v61 }
 0x237   :  { %v17007_v42 = vand.u32 4294901760, %v13584_v12  ;;  %v17001_v16 = vand.u32 4294901760, %v13587_v20  ;;  %v13597_v63 = vsub.f32 %v13486_v11, %v1341_v51  ;;  %v17006_v28 = vand.u32 4294901760, %v13600_v40 }
 0x238   :  { %v13591_v47 = vpack.c.bf16 %v1525_v58, %v1518_v26  ;;  %v13621_v51 = vsub.f32 %v13498_v44, %v1350_v0  ;;  %v13638_v44 = vsub.f32 %v13514_v57, %v1353_v56  ;;  %v13643_v0 = vsub.f32 %v13516_v46, %v1356_v49 }
 0x239   :  { %v1531_v23 = vsub.f32 %v13584_v12, %v17007_v42  ;;  %17186 = vst [vmem:[#allocation27_spill] sm:$0xff] %v13597_v63  ;;  %v1538_v45 = vsub.f32 %v13587_v20, %v17001_v16  ;;  %v17000_v55 = vand.u32 4294901760, %v13597_v63  ;;  %v1552_v11 = vsub.f32 %v13600_v40, %v17006_v28 }
 0x23a   :  { %17189 = vst [vmem:[#allocation30_spill] sm:$0xff] %v13621_v51  ;;  %17190 = vst [vmem:[#allocation31_spill] sm:$0xff] %v13638_v44  ;;  %v13659_v49 = vpack.c.bf16 %v13512_v39, %v13510_v29 }
 0x23b   :  { %v1532_v50 = vand.u32 4294901760, %v1531_v23  ;;  %v1539_v61 = vand.u32 4294901760, %v1538_v45  ;;  %v1545_v26 = vsub.f32 %v13597_v63, %v17000_v55  ;;  %v1553_v23 = vand.u32 4294901760, %v1552_v11  ;;  %17191 = vst [vmem:[#allocation32_spill] sm:$0xff] %v13643_v0 }
 0x23c   :  { %v17005_v45 = vand.u32 4294901760, %v13616_v62  ;;  %v17002_v55 = vand.u32 4294901760, %v13621_v51  ;;  %v17003_v11 = vand.u32 4294901760, %v13643_v0 }
 0x23d   :  { %v13623_v52 = vpack.c.bf16 %v1539_v61, %v1532_v50  ;;  %v1546_v58 = vand.u32 4294901760, %v1545_v26  ;;  %v17004_v26 = vand.u32 4294901760, %v13638_v44 }
 0x23e   :  { %v1559_v54 = vsub.f32 %v13616_v62, %v17005_v45  ;;  %v1566_v31 = vsub.f32 %v13621_v51, %v17002_v55  ;;  %v1580_v57 = vsub.f32 %v13643_v0, %v17003_v11 }
 0x23f   :  { %v13627_v16 = vpack.c.bf16 %v1553_v23, %v1546_v58  ;;  %v1573_v23 = vsub.f32 %v13638_v44, %v17004_v26 }
 0x240   :  { %v1560_v50 = vand.u32 4294901760, %v1559_v54  ;;  %v1567_v61 = vand.u32 4294901760, %v1566_v31  ;;  %v1581_v55 = vand.u32 4294901760, %v1580_v57  ;;  %v13663_v54 = vpack.c.bf16 %v13538_v22, %v13536_v37 }
 0x241   :  { %v1574_v56 = vand.u32 4294901760, %v1573_v23  ;;  %v13667_v31 = vpack.c.bf16 %v13553_v30, %v13550_v5  ;;  %v13683_v23 = vpack.c.bf16 %v13621_v51, %v13616_v62  ;;  %v13687_v57 = vpack.c.bf16 %v13643_v0, %v13638_v44 }
 0x242   :  { %v13647_v58 = vpack.c.bf16 %v1567_v61, %v1560_v50  ;;  %v13671_v50 = vpack.c.bf16 %v13569_v38, %v13567_v19  ;;  %v13679_v61 = vpack.c.bf16 %v13600_v40, %v13597_v63 }
 0x243   :  { %v13655_v46 = vpack.c.bf16 %v1581_v55, %v1574_v56  ;;  %v13675_v55 = vpack.c.bf16 %v13587_v20, %v13584_v12 }
 0x2a2   :  { %v1170_v56 = vpop.xlane.xlu1 %1169 }
 0x2a3   :  { %v1208_v11 = vmul.f32 0.0078125, %v1170_v56  ;;  %v1168_v26 = vpop.xlane.xlu0 %1167 }
 0x2a4   :  { %v1207_v45 = vmul.f32 0.0078125, %v1168_v26 }
 0x2a5   :  { %v1224_v42 = vmul.f32 %v1208_v11, %v1208_v11 }
 0x2a6   :  { %v1194_v28 = vpop.xlane.xlu1 %1193  ;;  %v1223_v4 = vmul.f32 %v1207_v45, %v1207_v45 }
 0x2a7   :  { %v1216_v6 = vmul.f32 0.0078125, %v1194_v28  ;;  %v1192_v27 = vpop.xlane.xlu0 %1191 }
 0x2a8   :  { %v1215_v21 = vmul.f32 0.0078125, %v1192_v27 }
 0x2a9   :  { %v1232_v59 = vsub.f32 %v1216_v6, %v1224_v42 }
 0x2aa   :  { %v1231_v32 = vsub.f32 %v1215_v21, %v1223_v4  ;;  %v1174_v2 = vpop.xlane.xlu1 %1173 }
 0x2ab   :  { %v1240_v18 = vmax.f32 %v1232_v59, 0.0  ;;  %v13689_v35 = vmul.f32 0.0078125, %v1174_v2  ;;  %v1172_v1 = vpop.xlane.xlu0 %1171 }
 0x2ac   :  { %v1239_v51 = vmax.f32 %v1231_v32, 0.0  ;;  %v13691_v0 = vmul.f32 0.0078125, %v1172_v1 }
 0x2ad   :  { %v1256_v44 = vadd.f32 1e-05, %v1240_v18  ;;  %v1226_v28 = vmul.f32 %v13689_v35, %v13689_v35 }
 0x2ae   :  { %v1255_v56 = vadd.f32 1e-05, %v1239_v51  ;;  %v1198_v62 = vpop.xlane.xlu1 %1197  ;;  %v1225_v21 = vmul.f32 %v13691_v0, %v13691_v0 }
 0x2af   :  { %12530 = vrsqrt.f32 %v1256_v44  ;;  %v1218_v26 = vmul.f32 0.0078125, %v1198_v62  ;;  %v1196_v40 = vpop.xlane.xlu0 %1195 }
 0x2b0   :  { %12532 = vrsqrt.f32 %v1255_v56  ;;  %v1217_v59 = vmul.f32 0.0078125, %v1196_v40  ;;  %v1248_v40 = vsub.f32 %v13416_v48, %v1208_v11 }
 0x2b1   :  { %v1234_v2 = vsub.f32 %v1218_v26, %v1226_v28 }
 0x2b2   :  { %v1233_v27 = vsub.f32 %v1217_v59, %v1225_v21  ;;  %v1178_v4 = vpop.xlane.xlu1 %1177  ;;  %v1247_v59 = vsub.f32 %v13418_v36, %v1207_v45  ;;  %v1250_v36 = vsub.f32 %v13422_v8, %v13689_v35  ;;  %v1249_v35 = vsub.f32 %v13426_v14, %v13691_v0 }
 0x2b3   :  { %v1242_v32 = vmax.f32 %v1234_v2, 0.0  ;;  %v13697_v1 = vmul.f32 0.0078125, %v1178_v4  ;;  %v1176_v18 = vpop.xlane.xlu0 %1175 }
 0x2b4   :  { %v1241_v6 = vmax.f32 %v1233_v27, 0.0  ;;  %v13699_v42 = vmul.f32 0.0078125, %v1176_v18 }
 0x2b5   :  { %v1258_v51 = vadd.f32 1e-05, %v1242_v32  ;;  %v1228_v62 = vmul.f32 %v13697_v1, %v13697_v1 }
 0x2b6   :  { %v1257_v44 = vadd.f32 1e-05, %v1241_v6  ;;  %v1202_v63 = vpop.xlane.xlu1 %1201  ;;  %v1227_v28 = vmul.f32 %v13699_v42, %v13699_v42 }
 0x2b7   :  { %12534 = vrsqrt.f32 %v1258_v51  ;;  %v1220_v56 = vmul.f32 0.0078125, %v1202_v63  ;;  %v1200_v20 = vpop.xlane.xlu0 %1199 }
 0x2b8   :  { %12536 = vrsqrt.f32 %v1257_v44  ;;  %v1219_v26 = vmul.f32 0.0078125, %v1200_v20 }
 0x2b9   :  { %v12531_v21 = vpop.eup %12530  ;;  %v1236_v2 = vsub.f32 %v1220_v56, %v1228_v62 }
 0x2ba   :  { %v12533_v27 = vpop.eup %12532  ;;  %v1272_v4 = vmul.f32 %v12531_v21, %v1248_v40  ;;  %v1235_v32 = vsub.f32 %v1219_v26, %v1227_v28  ;;  %v1182_v18 = vpop.xlane.xlu1 %1181 }
 0x2bb   :  { %v1244_v6 = vmax.f32 %v1236_v2, 0.0  ;;  %v13707_v51 = vmul.f32 0.0078125, %v1182_v18  ;;  %v1180_v63 = vpop.xlane.xlu0 %1179  ;;  %v1271_v12 = vmul.f32 %v12533_v27, %v1247_v59 }
 0x2bc   :  { %v1280_v38 = vmax.f32 %v1272_v4, 0.0  ;;  %v1243_v48 = vmax.f32 %v1235_v32, 0.0  ;;  %v13709_v11 = vmul.f32 0.0078125, %v1180_v63 }
 0x2bd   :  { %v1260_v44 = vadd.f32 1e-05, %v1244_v6  ;;  %v1279_v19 = vmax.f32 %v1271_v12, 0.0  ;;  %v1230_v56 = vmul.f32 %v13707_v51, %v13707_v51 }
 0x2be   :  { %v13711_v20 = vand.u32 4294901760, %v1280_v38  ;;  %v1259_v45 = vadd.f32 1e-05, %v1243_v48  ;;  %v1206_v62 = vpop.xlane.xlu1 %1205  ;;  %v1229_v21 = vmul.f32 %v13709_v11, %v13709_v11 }
 0x2bf   :  { %12538 = vrsqrt.f32 %v1260_v44  ;;  %v1222_v40 = vmul.f32 0.0078125, %v1206_v62  ;;  %v1204_v28 = vpop.xlane.xlu0 %1203  ;;  %v13717_v26 = vand.u32 4294901760, %v1279_v19 }
 0x2c0   :  { %12540 = vrsqrt.f32 %v1259_v45  ;;  %v1221_v12 = vmul.f32 0.0078125, %v1204_v28  ;;  %v13722_v59 = vsub.f32 %v1280_v38, %v13711_v20 }
 0x2c1   :  { %v12535_v2 = vpop.eup %12534  ;;  %v1238_v8 = vsub.f32 %v1222_v40, %v1230_v56  ;;  %v13727_v27 = vsub.f32 %v1279_v19, %v13717_v26 }
 0x2c2   :  { %v12537_v4 = vpop.eup %12536  ;;  %v1237_v32 = vsub.f32 %v1221_v12, %v1229_v21  ;;  %v1403_v18 = vand.u32 4294901760, %v13722_v59  ;;  %v1274_v6 = vmul.f32 %v12535_v2, %v1250_v36  ;;  %v1252_v21 = vsub.f32 %v13430_v60, %v13697_v1 }
 0x2c3   :  { %v1246_v63 = vmax.f32 %v1238_v8, 0.0  ;;  %v1393_v48 = vand.u32 4294901760, %v13727_v27  ;;  %v1273_v44 = vmul.f32 %v12537_v4, %v1249_v35  ;;  %v1251_v8 = vsub.f32 %v13432_v15, %v13699_v42 }
 0x2c4   :  { %v1245_v45 = vmax.f32 %v1237_v32, 0.0  ;;  %v1404_v38 = vsub.f32 %v13722_v59, %v1403_v18  ;;  %v1282_v62 = vmax.f32 %v1274_v6, 0.0 }
 0x2c5   :  { %v1262_v14 = vadd.f32 1e-05, %v1246_v63  ;;  %v1394_v19 = vsub.f32 %v13727_v27, %v1393_v48  ;;  %v1281_v0 = vmax.f32 %v1273_v44, 0.0 }
 0x2c6   :  { %v1261_v56 = vadd.f32 1e-05, %v1245_v45  ;;  %v13737_v40 = vand.u32 4294901760, %v1282_v62  ;;  %v1405_v12 = vand.u32 4294901760, %v1404_v38 }
 0x2c7   :  { %12542 = vrsqrt.f32 %v1262_v14  ;;  %v1395_v36 = vand.u32 4294901760, %v1394_v19  ;;  %v13739_v28 = vand.u32 4294901760, %v1281_v0  ;;  %v1254_v14 = vsub.f32 %v13436_v33, %v13707_v51 }
 0x2c8   :  { %12544 = vrsqrt.f32 %v1261_v56  ;;  %v13744_v2 = vsub.f32 %v1282_v62, %v13737_v40 }
 0x2c9   :  { %v12539_v35 = vpop.eup %12538  ;;  %9275 = vmatprep.mubr.f32.mxu1 %v1395_v36  ;;  %v13749_v4 = vsub.f32 %v1281_v0, %v13739_v28  ;;  %v1253_v36 = vsub.f32 %v13440_v7, %v13709_v11 }
 0x2ca   :  { %v12541_v32 = vpop.eup %12540  ;;  %9276 = vmatmul.mubr.f32.vlgmr.msra.gmra.mrb[8].mxu1 %v1405_v12  ;;  %v1423_v6 = vand.u32 4294901760, %v13744_v2  ;;  %v1276_v63 = vmul.f32 %v12539_v35, %v1252_v21 }
 0x2cb   :  { %11054 = vmatpush3.bf16.msra.mxu1 %v13544_v43  ;;  %v1413_v60 = vand.u32 4294901760, %v13749_v4  ;;  %v1275_v1 = vmul.f32 %v12541_v32, %v1251_v8 }
 0x2cc   :  { %11056 = vmatprep.subr.bf16.mxu1 %v13571_v17  ;;  %v1424_v15 = vsub.f32 %v13744_v2, %v1423_v6  ;;  %v1284_v42 = vmax.f32 %v1276_v63, 0.0 }
 0x2cd   :  { %v1414_v44 = vsub.f32 %v13749_v4, %v1413_v60  ;;  %v1283_v45 = vmax.f32 %v1275_v1, 0.0 }
 0x2ce   :  { %v13761_v38 = vand.u32 4294901760, %v1284_v42  ;;  %v1425_v19 = vand.u32 4294901760, %v1424_v15 }
 0x2cf   :  { %11058 = vmatpush3.bf16.msra.mxu1 %v13571_v17  ;;  %v1415_v43 = vand.u32 4294901760, %v1414_v44  ;;  %v13764_v62 = vand.u32 4294901760, %v1283_v45 }
 0x2d0   :  { %11060 = vmatprep.subr.bf16.mxu1 %v13575_v9  ;;  %v13770_v0 = vsub.f32 %v1284_v42, %v13761_v38 }
 0x2d1   :  { %v12543_v56 = vpop.eup %12542  ;;  %9278 = vmatprep.mubr.f32.mxu1 %v1415_v43  ;;  %v13775_v21 = vsub.f32 %v1283_v45, %v13764_v62 }
 0x2d2   :  { %v12545_v17 = vpop.eup %12544  ;;  %9279 = vmatmul.mubr.f32.gmra.mrb[10].mxu1 %v1425_v19  ;;  %v1443_v12 = vand.u32 4294901760, %v13770_v0  ;;  %v1278_v35 = vmul.f32 %v12543_v56, %v1254_v14 }
 0x2d3   :  { %11062 = vmatpush3.bf16.msra.mxu1 %v13575_v9  ;;  %v1433_v33 = vand.u32 4294901760, %v13775_v21  ;;  %v1277_v51 = vmul.f32 %v12545_v17, %v1253_v36  ;;  %v17214_v17 = vld [vmem:[#allocation31_spill] sm:$0xff] }
 0x2d4   :  { %11064 = vmatprep.subr.bf16.mxu1 %v13591_v47  ;;  %v1444_v7 = vsub.f32 %v13770_v0, %v1443_v12  ;;  %v1286_v11 = vmax.f32 %v1278_v35, 0.0  ;;  %v17216_v35 = vld [vmem:[#allocation32_spill] sm:$0xff] }
 0x2d5   :  { %v1434_v8 = vsub.f32 %v13775_v21, %v1433_v33  ;;  %v1285_v32 = vmax.f32 %v1277_v51, 0.0 }
 0x2d6   :  { %v13787_v63 = vand.u32 4294901760, %v1286_v11  ;;  %v1445_v15 = vand.u32 4294901760, %v1444_v7 }
 0x2d7   :  { %11066 = vmatpush3.bf16.msra.mxu1 %v13591_v47  ;;  %v1435_v9 = vand.u32 4294901760, %v1434_v8  ;;  %v13790_v1 = vand.u32 4294901760, %v1285_v32 }
 0x2d8   :  { %11068 = vmatprep.subr.bf16.mxu1 %v13623_v52  ;;  %v13794_v42 = vsub.f32 %v1286_v11, %v13787_v63 }
 0x2d9   :  { %9281 = vmatprep.mubr.f32.mxu1 %v1435_v9  ;;  %v13797_v44 = vsub.f32 %v1285_v32, %v13790_v1 }
 0x2da   :  { %9282 = vmatmul.mubr.f32.gmra.mrb[12].mxu1 %v1445_v15  ;;  %v1463_v45 = vand.u32 4294901760, %v13794_v42 }
 0x2db   :  { %11070 = vmatpush3.bf16.msra.mxu1 %v13623_v52  ;;  %v1453_v47 = vand.u32 4294901760, %v13797_v44  ;;  %v17193_v52 = vand.u32 4294901760, %v13512_v39  ;;  %v17197_v39 = vand.u32 4294901760, %v13553_v30 }
 0x2dc   :  { %11072 = vmatprep.subr.bf16.mxu1 %v13627_v16  ;;  %v1464_v43 = vsub.f32 %v13794_v42, %v1463_v45 }
 0x2dd   :  { %v1454_v14 = vsub.f32 %v13797_v44, %v1453_v47 }
 0x2de   :  { %v1465_v56 = vand.u32 4294901760, %v1464_v43 }
 0x2df   :  { %11074 = vmatpush3.bf16.msra.mxu1 %v13627_v16  ;;  %v1455_v19 = vand.u32 4294901760, %v1454_v14  ;;  %v17192_v16 = vand.u32 4294901760, %v13510_v29  ;;  %v17196_v29 = vand.u32 4294901760, %v13550_v5  ;;  %v17202_v5 = vld [vmem:[#allocation25_spill] sm:$0xff] }
 0x2e0   :  { %11076 = vmatprep.subr.bf16.mxu1 %v13647_v58  ;;  %v17203_v30 = vand.u32 4294901760, %v17202_v5 }
 0x2e1   :  { %9284 = vmatprep.mubr.f32.mxu1 %v1455_v19 }
 0x2e2   :  { %9285 = vmatmul.mubr.f32.gmra.mrb[14].mxu1 %v1465_v56 }
 0x2e3   :  { %11078 = vmatpush3.bf16.msra.mxu1 %v13647_v58  ;;  %9319 = vmatprep.mubr.f32.mxu1 %v13717_v26  ;;  %v11147_v58 = vpack.c.bf16 %v17193_v52, %v17192_v16 }
 0x2e4   :  { %11080 = vmatprep.subr.bf16.mxu1 %v13655_v46 }
 0x2e7   :  { %11082 = vmatpush3.bf16.msra.mxu1 %v13655_v46  ;;  %v17194_v46 = vand.u32 4294901760, %v13536_v37  ;;  %v17198_v37 = vld [vmem:[#allocation15_spill] sm:$0xff] }
 0x2e8   :  { %11084 = vmatprep.subr.bf16.mxu1 %v13659_v49 }
 0x2ea   :  { %9320 = vmatmul.mubr.f32.vlgmr.msra.gmra.mrb[8].mxu1 %v13711_v20 }
 0x2eb   :  { %9322 = vmatprep.mubr.f32.mxu1 %v13739_v28  ;;  %11086 = vmatpush3.bf16.msra.mxu1 %v13659_v49  ;;  %v17195_v49 = vand.u32 4294901760, %v13538_v22  ;;  %v17199_v22 = vand.u32 4294901760, %v17198_v37 }
 0x2ec   :  { %11088 = vmatprep.subr.bf16.mxu1 %v13663_v54 }
 0x2ee   :  { %9323 = vmatmul.mubr.f32.gmra.mrb[10].mxu1 %v13737_v40 }
 0x2ef   :  { %9325 = vmatprep.mubr.f32.mxu1 %v13764_v62  ;;  %11090 = vmatpush3.bf16.msra.mxu1 %v13663_v54  ;;  %v11151_v54 = vpack.c.bf16 %v17195_v49, %v17194_v46 }
 0x2f0   :  { %11092 = vmatprep.subr.bf16.mxu1 %v13667_v31 }
 0x2f2   :  { %9326 = vmatmul.mubr.f32.gmra.mrb[12].mxu1 %v13761_v38 }
 0x2f3   :  { %9328 = vmatprep.mubr.f32.mxu1 %v13790_v1  ;;  %11094 = vmatpush3.bf16.msra.mxu1 %v13667_v31  ;;  %v11155_v31 = vpack.c.bf16 %v17197_v39, %v17196_v29 }
 0x2f4   :  { %11096 = vmatprep.subr.bf16.mxu1 %v13671_v50 }
 0x2f6   :  { %9329 = vmatmul.mubr.f32.gmra.mrb[14].mxu1 %v13787_v63 }
 0x2f7   :  { %11098 = vmatpush3.bf16.msra.mxu1 %v13671_v50  ;;  %9363 = vmatprep.mubr.f32.mxu1 %v13727_v27  ;;  %v17200_v50 = vld [vmem:[#allocation24_spill] sm:$0xff]  ;;  %v17206_v27 = vld [vmem:[#allocation27_spill] sm:$0xff] }
 0x2f8   :  { %11100 = vmatprep.subr.bf16.mxu1 %v13675_v55 }
 0x2fb   :  { %11102 = vmatpush3.bf16.msra.mxu1 %v13675_v55  ;;  %v17201_v55 = vand.u32 4294901760, %v17200_v50 }
 0x2fc   :  { %11104 = vmatprep.subr.bf16.mxu1 %v13679_v61 }
 0x2ff   :  { %11106 = vmatpush3.bf16.msra.mxu1 %v13679_v61  ;;  %v11159_v61 = vpack.c.bf16 %v17201_v55, %v17199_v22 }
 0x300   :  { %11108 = vmatprep.subr.bf16.mxu1 %v13683_v23 }
 0x303   :  { %11110 = vmatpush3.bf16.msra.mxu1 %v13683_v23  ;;  %v17204_v23 = vld [vmem:[#allocation26_spill] sm:$0xff] }
 0x304   :  { %11112 = vmatprep.subr.bf16.mxu1 %v13687_v57 }
 0x307   :  { %11114 = vmatpush3.bf16.msra.mxu1 %v13687_v57  ;;  %v17205_v57 = vand.u32 4294901760, %v17204_v23 }
 0x308   :  { %11116 = vmatprep.subr.bf16.mxu1 %v13450_v3 }
 0x30a   :  { %9364 = vmatmul.mubr.f32.vlgmr.msra.gmra.mrb[8].mxu1 %v13722_v59  ;;  %v11163_v59 = vpack.c.bf16 %v17205_v57, %v17203_v30 }
 0x30b   :  { %9366 = vmatprep.mubr.f32.mxu1 %v13749_v4  ;;  %11118 = vmatpush3.bf16.msra.mxu1 %v13450_v3 }
 0x30c   :  { %11120 = vmatprep.subr.bf16.mxu1 %v13454_v25 }
 0x30e   :  { %9367 = vmatmul.mubr.f32.gmra.mrb[10].mxu1 %v13744_v2 }
 0x30f   :  { %9369 = vmatprep.mubr.f32.mxu1 %v13775_v21  ;;  %11122 = vmatpush3.bf16.msra.mxu1 %v13454_v25 }
 0x310   :  { %11124 = vmatprep.subr.bf16.mxu1 %v13470_v13 }
 0x312   :  { %9370 = vmatmul.mubr.f32.gmra.mrb[12].mxu1 %v13770_v0  ;;  %v17212_v0 = vld [vmem:[#allocation30_spill] sm:$0xff] }
 0x313   :  { %9372 = vmatprep.mubr.f32.mxu1 %v13797_v44  ;;  %11126 = vmatpush3.bf16.msra.mxu1 %v13470_v13  ;;  %v17213_v36 = vand.u32 4294901760, %v17212_v0 }
 0x314   :  { %11128 = vmatprep.subr.bf16.mxu1 %v13474_v34 }
 0x316   :  { %9373 = vmatmul.mubr.f32.gmra.mrb[14].mxu1 %v13794_v42 }
 0x317   :  { %11130 = vmatpush3.bf16.msra.mxu1 %v13474_v34  ;;  %9407 = vmatprep.mubr.f32.mxu1 %v1393_v48  ;;  %v17208_v48 = vld [vmem:[#allocation28_spill] sm:$0xff] }
 0x318   :  { %11132 = vmatprep.subr.bf16.mxu1 %v13484_v41  ;;  %v17209_v2 = vand.u32 4294901760, %v17208_v48 }
 0x31b   :  { %11134 = vmatpush3.bf16.msra.mxu1 %v13484_v41 }
 0x31c   :  { %11136 = vmatprep.subr.bf16.mxu1 %v13494_v53 }
 0x31f   :  { %11138 = vmatpush3.bf16.msra.mxu1 %v13494_v53 }
 0x320   :  { %11140 = vmatprep.subr.bf16.mxu1 %v13508_v24 }
 0x323   :  { %11142 = vmatpush3.bf16.msra.mxu1 %v13508_v24 }
 0x324   :  { %11144 = vmatprep.subr.bf16.mxu1 %v13528_v10 }
 0x327   :  { %11146 = vmatpush3.bf16.msra.mxu1 %v13528_v10 }
 0x328   :  { %11148 = vmatprep.subr.bf16.mxu1 %v11147_v58 }
 0x32a   :  { %9408 = vmatmul.mubr.f32.vlgmr.msra.gmra.mrb[8].mxu1 %v1403_v18  ;;  %v17207_v18 = vand.u32 4294901760, %v17206_v27 }
 0x32b   :  { %9410 = vmatprep.mubr.f32.mxu1 %v1413_v60  ;;  %11150 = vmatpush3.bf16.msra.mxu1 %v11147_v58 }
 0x32c   :  { %11152 = vmatprep.subr.bf16.mxu1 %v11151_v54  ;;  %v11167_v4 = vpack.c.bf16 %v17209_v2, %v17207_v18 }
 0x32e   :  { %9411 = vmatmul.mubr.f32.gmra.mrb[10].mxu1 %v1423_v6  ;;  %v17210_v6 = vld [vmem:[#allocation29_spill] sm:$0xff] }
 0x32f   :  { %9413 = vmatprep.mubr.f32.mxu1 %v1433_v33  ;;  %11154 = vmatpush3.bf16.msra.mxu1 %v11151_v54  ;;  %v17211_v60 = vand.u32 4294901760, %v17210_v6  ;;  %v17217_v33 = vand.u32 4294901760, %v17216_v35 }
 0x330   :  { %11156 = vmatprep.subr.bf16.mxu1 %v11155_v31 }
 0x331   :  { %v11171_v21 = vpack.c.bf16 %v17213_v36, %v17211_v60 }
 0x332   :  { %9414 = vmatmul.mubr.f32.gmra.mrb[12].mxu1 %v1443_v12  ;;  %v17215_v12 = vand.u32 4294901760, %v17214_v17 }
 0x333   :  { %9416 = vmatprep.mubr.f32.mxu1 %v1453_v47  ;;  %11158 = vmatpush3.bf16.msra.mxu1 %v11155_v31 }
 0x334   :  { %11160 = vmatprep.subr.bf16.mxu1 %v11159_v61  ;;  %v11175_v51 = vpack.c.bf16 %v17217_v33, %v17215_v12 }
 0x336   :  { %9417 = vmatmul.mubr.f32.gmra.mrb[14].mxu1 %v1463_v45 }
 0x337   :  { %11162 = vmatpush3.bf16.msra.mxu1 %v11159_v61  ;;  %9451 = vmatprep.mubr.f32.mxu1 %v13717_v26 }
 0x338   :  { %11164 = vmatprep.subr.bf16.mxu1 %v11163_v59 }
 0x33b   :  { %11166 = vmatpush3.bf16.msra.mxu1 %v11163_v59 }
 0x33c   :  { %11168 = vmatprep.subr.bf16.mxu1 %v11167_v4 }
 0x33f   :  { %11170 = vmatpush3.bf16.msra.mxu1 %v11167_v4 }
 0x340   :  { %11172 = vmatprep.subr.bf16.mxu1 %v11171_v21 }
 0x343   :  { %11174 = vmatpush3.bf16.msra.mxu1 %v11171_v21 }
 0x344   :  { %11176 = vmatprep.subr.bf16.mxu1 %v11175_v51 }
 0x347   :  { %11178 = vmatpush3.bf16.msra.mxu1 %v11175_v51 }
 0x348   :  { %11180 = vmatprep.subr.bf16.mxu1 %v13450_v3 }
 0x34a   :  { %9452 = vmatmul.mubr.f32.vlgmr.msra.gmra.mrb[8].mxu1 %v13711_v20 }
 0x34b   :  { %9454 = vmatprep.mubr.f32.mxu1 %v13739_v28  ;;  %11182 = vmatpush3.bf16.msra.mxu1 %v13450_v3  ;;  %v7961_v3 = vld [vmem:[%s16989_s4] ss:$0 sm:$0xff] }
 0x34c   :  { %11184 = vmatprep.subr.bf16.mxu1 %v13454_v25 }
 0x34e   :  { %9455 = vmatmul.mubr.f32.gmra.mrb[10].mxu1 %v13737_v40 }
 0x34f   :  { %9457 = vmatprep.mubr.f32.mxu1 %v13764_v62  ;;  %11186 = vmatpush3.bf16.msra.mxu1 %v13454_v25 }
 0x350   :  { %11188 = vmatprep.subr.bf16.mxu1 %v13470_v13 }
 0x352   :  { %9458 = vmatmul.mubr.f32.gmra.mrb[12].mxu1 %v13761_v38 }
 0x353   :  { %9460 = vmatprep.mubr.f32.mxu1 %v13790_v1  ;;  %11190 = vmatpush3.bf16.msra.mxu1 %v13470_v13 }
 0x354   :  { %11192 = vmatprep.subr.bf16.mxu1 %v13474_v34 }
 0x356   :  { %9461 = vmatmul.mubr.f32.gmra.mrb[14].mxu1 %v13787_v63 }
 0x357   :  { %11194 = vmatpush3.bf16.msra.mxu1 %v13474_v34  ;;  %9495 = vmatprep.mubr.f32.mxu1 %v13717_v26 }
 0x358   :  { %11196 = vmatprep.subr.bf16.mxu1 %v13484_v41 }
 0x35b   :  { %11198 = vmatpush3.bf16.msra.mxu1 %v13484_v41 }
 0x35c   :  { %11200 = vmatprep.subr.bf16.mxu1 %v13494_v53 }
 0x35f   :  { %11202 = vmatpush3.bf16.msra.mxu1 %v13494_v53 }
 0x360   :  { %11204 = vmatprep.subr.bf16.mxu1 %v13508_v24 }
 0x363   :  { %11206 = vmatpush3.bf16.msra.mxu1 %v13508_v24 }
 0x364   :  { %11208 = vmatprep.subr.bf16.mxu1 %v13528_v10 }
 0x367   :  { %11210 = vmatpush3.bf16.msra.mxu1 %v13528_v10 }
 0x36a   :  { %9496 = vmatmul.mubr.f32.vlgmr.msra.gmra.mrb[8].mxu1 %v13711_v20 }
 0x36b   :  { %9498 = vmatprep.mubr.f32.mxu1 %v13739_v28 }
 0x36e   :  { %9499 = vmatmul.mubr.f32.gmra.mrb[10].mxu1 %v13737_v40 }
 0x36f   :  { %9501 = vmatprep.mubr.f32.mxu1 %v13764_v62 }
 0x372   :  { %9502 = vmatmul.mubr.f32.gmra.mrb[12].mxu1 %v13761_v38 }
 0x373   :  { %9504 = vmatprep.mubr.f32.mxu1 %v13790_v1 }
 0x376   :  { %9505 = vmatmul.mubr.f32.gmra.mrb[14].mxu1 %v13787_v63 }
 0x43d   :  { %v9497_v25 = vpop.f32.mrb[8].mxu1 }
 0x43e   :  { %v13945_v13 = vadd.f32 %v9497_v25, %v7961_v3  ;;  %v2206_v34 = vpop.f32.mrb[9].mxu1 }
 0x43f   :  { %v13947_v41 = vadd.f32 %v7961_v3, %v2206_v34 }
 0x440   :  { %2254 = vadd.xlane.f32.xlu1 %v13945_v13  ;;  %v2269_v10 = vmul.f32 %v13945_v13, %v13945_v13 }
 0x441   :  { %v9500_v53 = vpop.f32.mrb[10].mxu1  ;;  %2252 = vadd.xlane.f32.xlu0 %v13947_v41  ;;  %v2268_v20 = vmul.f32 %v13947_v41, %v13947_v41 }
 0x442   :  { %v2218_v24 = vpop.f32.mrb[11].mxu1  ;;  %v13955_v40 = vadd.f32 %v9500_v53, %v7961_v3 }
 0x443   :  { %v13957_v38 = vadd.f32 %v7961_v3, %v2218_v24 }
 0x444   :  { %2278 = vadd.xlane.f32.xlu1 %v2269_v10  ;;  %v2271_v11 = vmul.f32 %v13955_v40, %v13955_v40 }
 0x445   :  { %v9503_v26 = vpop.f32.mrb[12].mxu1  ;;  %2276 = vadd.xlane.f32.xlu0 %v2268_v20  ;;  %v2270_v8 = vmul.f32 %v13957_v38, %v13957_v38 }
 0x446   :  { %v2230_v28 = vpop.f32.mrb[13].mxu1  ;;  %v13965_v32 = vadd.f32 %v9503_v26, %v7961_v3 }
 0x447   :  { %v13967_v63 = vadd.f32 %v7961_v3, %v2230_v28 }
 0x448   :  { %2258 = vadd.xlane.f32.xlu1 %v13955_v40  ;;  %v2273_v9 = vmul.f32 %v13965_v32, %v13965_v32 }
 0x449   :  { %v9506_v62 = vpop.f32.mrb[14].mxu1  ;;  %2256 = vadd.xlane.f32.xlu0 %v13957_v38  ;;  %v2272_v1 = vmul.f32 %v13967_v63, %v13967_v63 }
 0x44a   :  { %v2242_v7 = vpop.f32.mrb[15].mxu1  ;;  %v13975_v15 = vadd.f32 %v9506_v62, %v7961_v3 }
 0x44b   :  { %v13977_v42 = vadd.f32 %v7961_v3, %v2242_v7 }
 0x44c   :  { %2282 = vadd.xlane.f32.xlu1 %v2271_v11  ;;  %v2275_v44 = vmul.f32 %v13975_v15, %v13975_v15 }
 0x44d   :  { %2280 = vadd.xlane.f32.xlu0 %v2270_v8  ;;  %v2274_v45 = vmul.f32 %v13977_v42, %v13977_v42 }
 0x450   :  { %2262 = vadd.xlane.f32.xlu1 %v13965_v32 }
 0x451   :  { %2260 = vadd.xlane.f32.xlu0 %v13967_v63 }
 0x454   :  { %2286 = vadd.xlane.f32.xlu1 %v2273_v9 }
 0x455   :  { %2284 = vadd.xlane.f32.xlu0 %v2272_v1 }
 0x458   :  { %2266 = vadd.xlane.f32.xlu1 %v13975_v15 }
 0x459   :  { %2264 = vadd.xlane.f32.xlu0 %v13977_v42 }
 0x45c   :  { %2290 = vadd.xlane.f32.xlu1 %v2275_v44 }
 0x45d   :  { %2288 = vadd.xlane.f32.xlu0 %v2274_v45  ;;  %v17218_v45 = vld [vmem:[#allocation17_spill] sm:$0xff] }
 0x4cd   :  { %v2255_v47 = vpop.xlane.xlu1 %2254 }
 0x4ce   :  { %v2293_v43 = vmul.f32 0.0078125, %v2255_v47  ;;  %v2253_v14 = vpop.xlane.xlu0 %2252 }
 0x4cf   :  { %v2292_v19 = vmul.f32 0.0078125, %v2253_v14  ;;  %v17219_v14 = vld [vmem:[#allocation16_spill] sm:$0xff] }
 0x4d0   :  { %v2309_v16 = vmul.f32 %v2293_v43, %v2293_v43  ;;  %v2333_v25 = vsub.f32 %v13945_v13, %v2293_v43 }
 0x4d1   :  { %v2279_v56 = vpop.xlane.xlu1 %2278  ;;  %v2308_v46 = vmul.f32 %v2292_v19, %v2292_v19  ;;  %v2332_v10 = vsub.f32 %v13947_v41, %v2292_v19 }
 0x4d2   :  { %v2301_v52 = vmul.f32 0.0078125, %v2279_v56  ;;  %v2277_v58 = vpop.xlane.xlu0 %2276 }
 0x4d3   :  { %v2300_v49 = vmul.f32 0.0078125, %v2277_v58 }
 0x4d4   :  { %v2317_v54 = vsub.f32 %v2301_v52, %v2309_v16 }
 0x4d5   :  { %v2316_v29 = vsub.f32 %v2300_v49, %v2308_v46  ;;  %v2259_v39 = vpop.xlane.xlu1 %2258 }
 0x4d6   :  { %v2325_v31 = vmax.f32 %v2317_v54, 0.0  ;;  %v13985_v37 = vmul.f32 0.0078125, %v2259_v39  ;;  %v2257_v22 = vpop.xlane.xlu0 %2256 }
 0x4d7   :  { %v2324_v50 = vmax.f32 %v2316_v29, 0.0  ;;  %v13987_v55 = vmul.f32 0.0078125, %v2257_v22 }
 0x4d8   :  { %v2341_v61 = vadd.f32 1e-05, %v2325_v31  ;;  %v2311_v23 = vmul.f32 %v13985_v37, %v13985_v37  ;;  %v2335_v54 = vsub.f32 %v13955_v40, %v13985_v37 }
 0x4d9   :  { %v2340_v5 = vadd.f32 1e-05, %v2324_v50  ;;  %v2283_v30 = vpop.xlane.xlu1 %2282  ;;  %v2310_v27 = vmul.f32 %v13987_v55, %v13987_v55  ;;  %v2334_v22 = vsub.f32 %v13957_v38, %v13987_v55  ;;  %v17221_v38 = vld [vmem:[#allocation18_spill] sm:$0xff] }
 0x4da   :  { %12546 = vrsqrt.f32 %v2341_v61  ;;  %v2303_v57 = vmul.f32 0.0078125, %v2283_v30  ;;  %v2281_v59 = vpop.xlane.xlu0 %2280 }
 0x4db   :  { %12548 = vrsqrt.f32 %v2340_v5  ;;  %v2302_v18 = vmul.f32 0.0078125, %v2281_v59 }
 0x4dc   :  { %v2319_v48 = vsub.f32 %v2303_v57, %v2311_v23 }
 0x4dd   :  { %v2318_v2 = vsub.f32 %v2302_v18, %v2310_v27  ;;  %v2263_v4 = vpop.xlane.xlu1 %2262  ;;  %v17220_v27 = vld [vmem:[#allocation19_spill] sm:$0xff] }
 0x4de   :  { %v2327_v6 = vmax.f32 %v2319_v48, 0.0  ;;  %v13993_v60 = vmul.f32 0.0078125, %v2263_v4  ;;  %v2261_v0 = vpop.xlane.xlu0 %2260 }
 0x4df   :  { %v2326_v36 = vmax.f32 %v2318_v2, 0.0  ;;  %v13995_v21 = vmul.f32 0.0078125, %v2261_v0 }
 0x4e0   :  { %v2343_v17 = vadd.f32 1e-05, %v2327_v6  ;;  %v2313_v33 = vmul.f32 %v13993_v60, %v13993_v60  ;;  %v2337_v0 = vsub.f32 %v13965_v32, %v13993_v60  ;;  %v17222_v32 = vld [vmem:[#allocation21_spill] sm:$0xff] }
 0x4e1   :  { %v2342_v12 = vadd.f32 1e-05, %v2326_v36  ;;  %v2287_v35 = vpop.xlane.xlu1 %2286  ;;  %v2312_v34 = vmul.f32 %v13995_v21, %v13995_v21 }
 0x4e2   :  { %12550 = vrsqrt.f32 %v2343_v17  ;;  %v2305_v51 = vmul.f32 0.0078125, %v2287_v35  ;;  %v2285_v3 = vpop.xlane.xlu0 %2284  ;;  %v2336_v17 = vsub.f32 %v13967_v63, %v13995_v21  ;;  %v14047_v63 = vld [vmem:[#allocation5 + $0x88] sm:$0xff] }
 0x4e3   :  { %12552 = vrsqrt.f32 %v2342_v12  ;;  %v2304_v53 = vmul.f32 0.0078125, %v2285_v3 }
 0x4e4   :  { %v12547_v24 = vpop.eup %12546  ;;  %v2321_v20 = vsub.f32 %v2305_v51, %v2313_v33 }
 0x4e5   :  { %v12549_v26 = vpop.eup %12548  ;;  %v2320_v28 = vsub.f32 %v2304_v53, %v2312_v34  ;;  %v2267_v62 = vpop.xlane.xlu1 %2266  ;;  %v2357_v7 = vmul.f32 %v12547_v24, %v2333_v25  ;;  %v17223_v25 = vld [vmem:[#allocation20_spill] sm:$0xff]  ;;  %v14045_v53 = vld [vmem:[#allocation5 + $0x80] sm:$0xff] }
 0x4e6   :  { %v2329_v11 = vmax.f32 %v2321_v20, 0.0  ;;  %v14003_v8 = vmul.f32 0.0078125, %v2267_v62  ;;  %v2265_v9 = vpop.xlane.xlu0 %2264  ;;  %v2356_v1 = vmul.f32 %v12549_v26, %v2332_v10  ;;  %v2518_v24 = vand.u32 4294901760, %v14045_v53 }
 0x4e7   :  { %v2328_v44 = vmax.f32 %v2320_v28, 0.0  ;;  %v14005_v13 = vmul.f32 0.0078125, %v2265_v9  ;;  %v2365_v47 = vadd.f32 %v2357_v7, %v17218_v45  ;;  %v2521_v10 = vand.u32 4294901760, %v14047_v63  ;;  %v14069_v9 = vld [vmem:[#allocation5 + $0x98] sm:$0xff] }
 0x4e8   :  { %v2345_v43 = vadd.f32 1e-05, %v2329_v11  ;;  %v2364_v56 = vadd.f32 %v2356_v1, %v17219_v14  ;;  %v2315_v52 = vmul.f32 %v14003_v8, %v14003_v8  ;;  %v2339_v26 = vsub.f32 %v13975_v15, %v14003_v8  ;;  %v14067_v11 = vld [vmem:[#allocation5 + $0x90] sm:$0xff] }
 0x4e9   :  { %v2344_v16 = vadd.f32 1e-05, %v2328_v44  ;;  %v2291_v41 = vpop.xlane.xlu1 %2290  ;;  %v14009_v19 = vmax.f32 %v2365_v47, 0.0  ;;  %v2314_v29 = vmul.f32 %v14005_v13, %v14005_v13  ;;  %v14062_v28 = vpack.c.bf16 %v2521_v10, %v2518_v24  ;;  %v17224_v47 = vld [vmem:[#allocation23_spill] sm:$0xff] }
 0x4ea   :  { %12554 = vrsqrt.f32 %v2345_v43  ;;  %v2307_v58 = vmul.f32 0.0078125, %v2291_v41  ;;  %v2289_v46 = vpop.xlane.xlu0 %2288  ;;  %v14013_v49 = vmax.f32 %v2364_v56, 0.0  ;;  %v2338_v7 = vsub.f32 %v13977_v42, %v14005_v13  ;;  %v17225_v56 = vld [vmem:[#allocation22_spill] sm:$0xff]  ;;  %v14087_v41 = vld [vmem:[#allocation5 + $0xa0] sm:$0xff] }
 0x4eb   :  { %12556 = vrsqrt.f32 %v2344_v16  ;;  %v2306_v39 = vmul.f32 0.0078125, %v2289_v46  ;;  %2382 = vadd.xlane.f32.xlu1 %v14009_v19  ;;  %v2397_v30 = vmul.f32 %v14009_v19, %v14009_v19  ;;  %11212 = vmatprep.subr.bf16.mxu0 %v14062_v28  ;;  %v2524_v44 = vand.u32 4294901760, %v14067_v11 }
 0x4ec   :  { %v12551_v31 = vpop.eup %12550  ;;  %v2323_v50 = vsub.f32 %v2307_v58, %v2315_v52  ;;  %2380 = vadd.xlane.f32.xlu0 %v14013_v49  ;;  %v2396_v23 = vmul.f32 %v14013_v49, %v14013_v49  ;;  %v2527_v45 = vand.u32 4294901760, %v14069_v9  ;;  %11214 = vmatpush3.bf16.msra.mxu0 %v14062_v28  ;;  %v14089_v52 = vld [vmem:[#allocation5 + $0xa8] sm:$0xff]  ;;  %v2530_v46 = vand.u32 4294901760, %v14087_v41 }
 0x4ed   :  { %v12553_v61 = vpop.eup %12552  ;;  %v2322_v5 = vsub.f32 %v2306_v39, %v2314_v29  ;;  %v2359_v40 = vmul.f32 %v12551_v31, %v2335_v54  ;;  %v2533_v54 = vand.u32 4294901760, %v14089_v52  ;;  %v14107_v31 = vld [vmem:[#allocation5 + $0xb0] sm:$0xff] }
 0x4ee   :  { %v2331_v37 = vmax.f32 %v2323_v50, 0.0  ;;  %v2358_v57 = vmul.f32 %v12553_v61, %v2334_v22  ;;  %v14084_v14 = vpack.c.bf16 %v2527_v45, %v2524_v44  ;;  %v14109_v22 = vld [vmem:[#allocation5 + $0xb8] sm:$0xff]  ;;  %v2536_v61 = vand.u32 4294901760, %v14107_v31 }
 0x4ef   :  { %v2330_v59 = vmax.f32 %v2322_v5, 0.0  ;;  %2406 = vadd.xlane.f32.xlu1 %v2397_v30  ;;  %v2367_v18 = vadd.f32 %v2359_v40, %v17220_v27  ;;  %v14104_v39 = vpack.c.bf16 %v2533_v54, %v2530_v46  ;;  %v2539_v5 = vand.u32 4294901760, %v14109_v22 }
 0x4f0   :  { %v2347_v48 = vadd.f32 1e-05, %v2331_v37  ;;  %2404 = vadd.xlane.f32.xlu0 %v2396_v23  ;;  %v2366_v55 = vadd.f32 %v2358_v57, %v17221_v38  ;;  %11216 = vmatprep.subr.bf16.mxu0 %v14084_v14  ;;  %v14121_v37 = vld [vmem:[#allocation5 + $0xc0] sm:$0xff]  ;;  %v14123_v23 = vld [vmem:[#allocation5 + $0xc8] sm:$0xff] }
 0x4f1   :  { %v2346_v2 = vadd.f32 1e-05, %v2330_v59  ;;  %v14029_v4 = vmax.f32 %v2367_v18, 0.0  ;;  %11218 = vmatpush3.bf16.msra.mxu0 %v14084_v14  ;;  %v14119_v40 = vpack.c.bf16 %v2539_v5, %v2536_v61  ;;  %v2542_v57 = vand.u32 4294901760, %v14121_v37  ;;  %v14131_v18 = vld [vmem:[#allocation5 + $0xd0] sm:$0xff] }
 0x4f2   :  { %12558 = vrsqrt.f32 %v2347_v48  ;;  %v14031_v6 = vmax.f32 %v2366_v55, 0.0  ;;  %11220 = vmatprep.subr.bf16.mxu0 %v14104_v39  ;;  %v2545_v59 = vand.u32 4294901760, %v14123_v23  ;;  %v14133_v48 = vld [vmem:[#allocation5 + $0xd8] sm:$0xff]  ;;  %v2548_v38 = vand.u32 4294901760, %v14131_v18 }
 0x4f3   :  { %12560 = vrsqrt.f32 %v2346_v2  ;;  %2386 = vadd.xlane.f32.xlu1 %v14029_v4  ;;  %v2399_v35 = vmul.f32 %v14029_v4, %v14029_v4  ;;  %v2551_v55 = vand.u32 4294901760, %v14133_v48 }
 0x4f4   :  { %v12555_v36 = vpop.eup %12554  ;;  %2384 = vadd.xlane.f32.xlu0 %v14031_v6  ;;  %v2398_v51 = vmul.f32 %v14031_v6, %v14031_v6  ;;  %v14129_v27 = vpack.c.bf16 %v2545_v59, %v2542_v57 }
 0x4f5   :  { %v12557_v12 = vpop.eup %12556  ;;  %v2361_v33 = vmul.f32 %v12555_v36, %v2337_v0  ;;  %11222 = vmatpush3.bf16.msra.mxu0 %v14104_v39  ;;  %v14139_v2 = vpack.c.bf16 %v2551_v55, %v2548_v38  ;;  %v14141_v0 = vld [vmem:[#allocation5 + $0xe0] sm:$0xff]  ;;  %v14143_v36 = vld [vmem:[#allocation5 + $0xe8] sm:$0xff] }
 0x4f6   :  { %v2360_v3 = vmul.f32 %v12557_v12, %v2336_v17  ;;  %11224 = vmatprep.subr.bf16.mxu0 %v14119_v40  ;;  %v2554_v17 = vand.u32 4294901760, %v14141_v0  ;;  %v2557_v12 = vand.u32 4294901760, %v14143_v36 }
 0x4f7   :  { %2410 = vadd.xlane.f32.xlu1 %v2399_v35  ;;  %v2369_v60 = vadd.f32 %v2361_v33, %v17222_v32  ;;  %v14158_v33 = vsub.f32 %v14045_v53, %v2518_v24  ;;  %v14167_v32 = vld [vmem:[#allocation5 + $0xf8] sm:$0xff] }
 0x4f8   :  { %2408 = vadd.xlane.f32.xlu0 %v2398_v51  ;;  %v2368_v34 = vadd.f32 %v2360_v3, %v17223_v25  ;;  %v14153_v35 = vpack.c.bf16 %v2557_v12, %v2554_v17  ;;  %v14163_v51 = vsub.f32 %v14047_v63, %v2521_v10  ;;  %v14165_v3 = vld [vmem:[#allocation5 + $0xf0] sm:$0xff]  ;;  %v2563_v25 = vand.u32 4294901760, %v14167_v32 }
 0x4f9   :  { %v14049_v21 = vmax.f32 %v2369_v60, 0.0  ;;  %11226 = vmatpush3.bf16.msra.mxu0 %v14119_v40  ;;  %v2560_v60 = vand.u32 4294901760, %v14165_v3 }
 0x4fa   :  { %v14053_v20 = vmax.f32 %v2368_v34, 0.0  ;;  %11228 = vmatprep.subr.bf16.mxu0 %v14129_v27  ;;  %v17043_v34 = vand.u32 4294901760, %v14158_v33  ;;  %v17042_v53 = vand.u32 4294901760, %v14163_v51 }
 0x4fb   :  { %2390 = vadd.xlane.f32.xlu1 %v14049_v21  ;;  %v2401_v15 = vmul.f32 %v14049_v21, %v14049_v21  ;;  %v14179_v63 = vpack.c.bf16 %v2563_v25, %v2560_v60 }
 0x4fc   :  { %v12559_v62 = vpop.eup %12558  ;;  %2388 = vadd.xlane.f32.xlu0 %v14053_v20  ;;  %v2400_v42 = vmul.f32 %v14053_v20, %v14053_v20  ;;  %v2682_v24 = vsub.f32 %v14158_v33, %v17043_v34  ;;  %v2689_v10 = vsub.f32 %v14163_v51, %v17042_v53 }
 0x4fd   :  { %v12561_v1 = vpop.eup %12560  ;;  %v2363_v8 = vmul.f32 %v12559_v62, %v2339_v26  ;;  %11230 = vmatpush3.bf16.msra.mxu0 %v14129_v27  ;;  %v14190_v26 = vsub.f32 %v14067_v11, %v2524_v44  ;;  %v14195_v62 = vsub.f32 %v14069_v9, %v2527_v45  ;;  %v14212_v44 = vsub.f32 %v14087_v41, %v2530_v46 }
 0x4fe   :  { %v2362_v13 = vmul.f32 %v12561_v1, %v2338_v7  ;;  %11232 = vmatprep.subr.bf16.mxu0 %v14139_v2  ;;  %v2683_v7 = vand.u32 4294901760, %v2682_v24  ;;  %v2690_v1 = vand.u32 4294901760, %v2689_v10  ;;  %v14217_v45 = vsub.f32 %v14089_v52, %v2533_v54 }
 0x4ff   :  { %2414 = vadd.xlane.f32.xlu1 %v2401_v15  ;;  %v2371_v43 = vadd.f32 %v2363_v8, %v17224_v47  ;;  %v17041_v15 = vand.u32 4294901760, %v14190_v26  ;;  %v17040_v8 = vand.u32 4294901760, %v14195_v62  ;;  %v14231_v52 = vsub.f32 %v14107_v31, %v2536_v61 }
 0x500   :  { %2412 = vadd.xlane.f32.xlu0 %v2400_v42  ;;  %v2370_v16 = vadd.f32 %v2362_v13, %v17225_v56  ;;  %v14201_v42 = vpack.c.bf16 %v2690_v1, %v2683_v7  ;;  %v17038_v56 = vand.u32 4294901760, %v14217_v45  ;;  %v14234_v54 = vsub.f32 %v14109_v22, %v2539_v5 }
 0x501   :  { %v14091_v58 = vmax.f32 %v2371_v43, 0.0  ;;  %11234 = vmatpush3.bf16.msra.mxu0 %v14139_v2  ;;  %v2696_v11 = vsub.f32 %v14190_v26, %v17041_v15  ;;  %v2703_v9 = vsub.f32 %v14195_v62, %v17040_v8  ;;  %v17039_v43 = vand.u32 4294901760, %v14212_v44 }
 0x502   :  { %v14096_v29 = vmax.f32 %v2370_v16, 0.0  ;;  %11236 = vmatprep.subr.bf16.mxu0 %v14153_v35  ;;  %v2717_v46 = vsub.f32 %v14217_v45, %v17038_v56  ;;  %v17037_v24 = vand.u32 4294901760, %v14231_v52  ;;  %v17036_v10 = vand.u32 4294901760, %v14234_v54 }
 0x503   :  { %2394 = vadd.xlane.f32.xlu1 %v14091_v58  ;;  %v2403_v50 = vmul.f32 %v14091_v58, %v14091_v58  ;;  %v2697_v13 = vand.u32 4294901760, %v2696_v11  ;;  %v2704_v47 = vand.u32 4294901760, %v2703_v9  ;;  %v2710_v41 = vsub.f32 %v14212_v44, %v17039_v43 }
 0x504   :  { %2392 = vadd.xlane.f32.xlu0 %v14096_v29  ;;  %v2402_v30 = vmul.f32 %v14096_v29, %v14096_v29  ;;  %v2724_v1 = vsub.f32 %v14231_v52, %v17037_v24  ;;  %v14244_v11 = vsub.f32 %v14121_v37, %v2542_v57  ;;  %v14247_v31 = vsub.f32 %v14123_v23, %v2545_v59 }
 0x505   :  { %11238 = vmatpush3.bf16.msra.mxu0 %v14153_v35  ;;  %v14222_v16 = vpack.c.bf16 %v2704_v47, %v2697_v13  ;;  %v2731_v22 = vsub.f32 %v14234_v54, %v17036_v10  ;;  %v14261_v23 = vsub.f32 %v14131_v18, %v2548_v38  ;;  %v14264_v57 = vsub.f32 %v14133_v48, %v2551_v55 }
 0x506   :  { %11240 = vmatprep.subr.bf16.mxu0 %v14179_v63  ;;  %17226 = vst [vmem:[#allocation15_spill] sm:$0xff] %v14244_v11  ;;  %17227 = vst [vmem:[#allocation24_spill] sm:$0xff] %v14247_v31  ;;  %v2725_v61 = vand.u32 4294901760, %v2724_v1  ;;  %v17035_v5 = vand.u32 4294901760, %v14244_v11  ;;  %v17034_v9 = vand.u32 4294901760, %v14247_v31  ;;  %v14281_v48 = vsub.f32 %v14141_v0, %v2554_v17 }
 0x507   :  { %2418 = vadd.xlane.f32.xlu1 %v2403_v50  ;;  %v2711_v50 = vand.u32 4294901760, %v2710_v41  ;;  %v2732_v13 = vand.u32 4294901760, %v2731_v22  ;;  %17228 = vst [vmem:[#allocation25_spill] sm:$0xff] %v14261_v23  ;;  %17229 = vst [vmem:[#allocation26_spill] sm:$0xff] %v14264_v57  ;;  %v14286_v38 = vsub.f32 %v14143_v36, %v2557_v12  ;;  %v14298_v0 = vsub.f32 %v14165_v3, %v2560_v60 }
 0x508   :  { %2416 = vadd.xlane.f32.xlu0 %v2402_v30  ;;  %v2718_v30 = vand.u32 4294901760, %v2717_v46  ;;  %v2738_v47 = vsub.f32 %v14244_v11, %v17035_v5  ;;  %v2745_v37 = vsub.f32 %v14247_v31, %v17034_v9  ;;  %17230 = vst [vmem:[#allocation27_spill] sm:$0xff] %v14281_v48  ;;  %v14303_v36 = vsub.f32 %v14167_v32, %v2563_v25 }
 0x509   :  { %11242 = vmatpush3.bf16.msra.mxu0 %v14179_v63  ;;  %v14266_v59 = vpack.c.bf16 %v2732_v13, %v2725_v61  ;;  %17231 = vst [vmem:[#allocation28_spill] sm:$0xff] %v14286_v38  ;;  %v17031_v13 = vand.u32 4294901760, %v14281_v48  ;;  %17232 = vst [vmem:[#allocation29_spill] sm:$0xff] %v14298_v0 }
 0x50a   :  { %11244 = vmatprep.subr.bf16.mxu0 %v14201_v42  ;;  %v14238_v7 = vpack.c.bf16 %v2718_v30, %v2711_v50  ;;  %v2739_v41 = vand.u32 4294901760, %v2738_v47  ;;  %v2746_v46 = vand.u32 4294901760, %v2745_v37  ;;  %v17033_v50 = vand.u32 4294901760, %v14261_v23  ;;  %17233 = vst [vmem:[#allocation30_spill] sm:$0xff] %v14303_v36 }
 0x50b   :  { %v17032_v30 = vand.u32 4294901760, %v14264_v57  ;;  %v17030_v47 = vand.u32 4294901760, %v14286_v38 }
 0x50c   :  { %v14270_v1 = vpack.c.bf16 %v2746_v46, %v2739_v41  ;;  %v2752_v22 = vsub.f32 %v14261_v23, %v17033_v50  ;;  %v2766_v41 = vsub.f32 %v14281_v48, %v17031_v13  ;;  %v17028_v46 = vand.u32 4294901760, %v14298_v0 }
 0x50d   :  { %v2759_v18 = vsub.f32 %v14264_v57, %v17032_v30  ;;  %v2773_v17 = vsub.f32 %v14286_v38, %v17030_v47 }
 0x50e   :  { %v2753_v55 = vand.u32 4294901760, %v2752_v22  ;;  %v2767_v12 = vand.u32 4294901760, %v2766_v41  ;;  %v17029_v22 = vand.u32 4294901760, %v14303_v36  ;;  %v2780_v3 = vsub.f32 %v14298_v0, %v17028_v46 }
 0x50f   :  { %v2760_v61 = vand.u32 4294901760, %v2759_v18  ;;  %v2774_v18 = vand.u32 4294901760, %v2773_v17  ;;  %v14322_v41 = vpack.c.bf16 %v14163_v51, %v14158_v33  ;;  %v14326_v17 = vpack.c.bf16 %v14195_v62, %v14190_v26 }
 0x510   :  { %v2787_v60 = vsub.f32 %v14303_v36, %v17029_v22  ;;  %v2781_v25 = vand.u32 4294901760, %v2780_v3  ;;  %v14330_v46 = vpack.c.bf16 %v14217_v45, %v14212_v44  ;;  %v14342_v3 = vpack.c.bf16 %v14264_v57, %v14261_v23 }
 0x511   :  { %v14290_v37 = vpack.c.bf16 %v2760_v61, %v2753_v55  ;;  %v14316_v32 = vpack.c.bf16 %v2774_v18, %v2767_v12  ;;  %v14334_v12 = vpack.c.bf16 %v14234_v54, %v14231_v52  ;;  %v14338_v18 = vpack.c.bf16 %v14247_v31, %v14244_v11 }
 0x512   :  { %v2788_v55 = vand.u32 4294901760, %v2787_v60  ;;  %v14346_v60 = vpack.c.bf16 %v14286_v38, %v14281_v48 }
 0x514   :  { %v14318_v61 = vpack.c.bf16 %v2788_v55, %v2781_v25  ;;  %v14350_v25 = vpack.c.bf16 %v14303_v36, %v14298_v0 }
 0x578   :  { %v2383_v55 = vpop.xlane.xlu1 %2382 }
 0x579   :  { %v2421_v22 = vmul.f32 0.0078125, %v2383_v55  ;;  %v2381_v47 = vpop.xlane.xlu0 %2380 }
 0x57a   :  { %v2420_v13 = vmul.f32 0.0078125, %v2381_v47 }
 0x57b   :  { %v2437_v50 = vmul.f32 %v2421_v22, %v2421_v22 }
 0x57c   :  { %v2407_v30 = vpop.xlane.xlu1 %2406  ;;  %v2436_v10 = vmul.f32 %v2420_v13, %v2420_v13 }
 0x57d   :  { %v2429_v9 = vmul.f32 0.0078125, %v2407_v30  ;;  %v2405_v5 = vpop.xlane.xlu0 %2404 }
 0x57e   :  { %v2428_v24 = vmul.f32 0.0078125, %v2405_v5 }
 0x57f   :  { %v2445_v56 = vsub.f32 %v2429_v9, %v2437_v50 }
 0x580   :  { %v2444_v43 = vsub.f32 %v2428_v24, %v2436_v10  ;;  %v2387_v8 = vpop.xlane.xlu1 %2386 }
 0x581   :  { %v2453_v15 = vmax.f32 %v2445_v56, 0.0  ;;  %v14352_v53 = vmul.f32 0.0078125, %v2387_v8  ;;  %v2385_v34 = vpop.xlane.xlu0 %2384 }
 0x582   :  { %v2452_v38 = vmax.f32 %v2444_v43, 0.0  ;;  %v14354_v36 = vmul.f32 0.0078125, %v2385_v34 }
 0x583   :  { %v2469_v0 = vadd.f32 1e-05, %v2453_v15  ;;  %v2439_v30 = vmul.f32 %v14352_v53, %v14352_v53 }
 0x584   :  { %v2468_v55 = vadd.f32 1e-05, %v2452_v38  ;;  %v2411_v48 = vpop.xlane.xlu1 %2410  ;;  %v2438_v24 = vmul.f32 %v14354_v36, %v14354_v36 }
 0x585   :  { %12562 = vrsqrt.f32 %v2469_v0  ;;  %v2431_v47 = vmul.f32 0.0078125, %v2411_v48  ;;  %v2409_v57 = vpop.xlane.xlu0 %2408 }
 0x586   :  { %12564 = vrsqrt.f32 %v2468_v55  ;;  %v2430_v56 = vmul.f32 0.0078125, %v2409_v57  ;;  %v2461_v57 = vsub.f32 %v14009_v19, %v2421_v22 }
 0x587   :  { %v2447_v8 = vsub.f32 %v2431_v47, %v2439_v30 }
 0x588   :  { %v2446_v10 = vsub.f32 %v2430_v56, %v2438_v24  ;;  %v2391_v5 = vpop.xlane.xlu1 %2390  ;;  %v2460_v56 = vsub.f32 %v14013_v49, %v2420_v13  ;;  %v2463_v13 = vsub.f32 %v14029_v4, %v14352_v53 }
 0x589   :  { %v2455_v43 = vmax.f32 %v2447_v8, 0.0  ;;  %v14360_v34 = vmul.f32 0.0078125, %v2391_v5  ;;  %v2389_v15 = vpop.xlane.xlu0 %2388 }
 0x58a   :  { %v2454_v9 = vmax.f32 %v2446_v10, 0.0  ;;  %v14362_v50 = vmul.f32 0.0078125, %v2389_v15 }
 0x58b   :  { %v2471_v38 = vadd.f32 1e-05, %v2455_v43  ;;  %v2441_v48 = vmul.f32 %v14360_v34, %v14360_v34 }
 0x58c   :  { %v2470_v0 = vadd.f32 1e-05, %v2454_v9  ;;  %v2415_v23 = vpop.xlane.xlu1 %2414  ;;  %v2440_v30 = vmul.f32 %v14362_v50, %v14362_v50 }
 0x58d   :  { %12566 = vrsqrt.f32 %v2471_v38  ;;  %v2433_v55 = vmul.f32 0.0078125, %v2415_v23  ;;  %v2413_v31 = vpop.xlane.xlu0 %2412 }
 0x58e   :  { %12568 = vrsqrt.f32 %v2470_v0  ;;  %v2432_v47 = vmul.f32 0.0078125, %v2413_v31 }
 0x58f   :  { %v12563_v24 = vpop.eup %12562  ;;  %v2449_v8 = vsub.f32 %v2433_v55, %v2441_v48 }
 0x590   :  { %v12565_v10 = vpop.eup %12564  ;;  %v14370_v5 = vmul.f32 %v12563_v24, %v2461_v57  ;;  %v2448_v43 = vsub.f32 %v2432_v47, %v2440_v30  ;;  %v2395_v15 = vpop.xlane.xlu1 %2394 }
 0x591   :  { %v2457_v9 = vmax.f32 %v2449_v8, 0.0  ;;  %v14372_v38 = vmul.f32 0.0078125, %v2395_v15  ;;  %v2393_v23 = vpop.xlane.xlu0 %2392  ;;  %v14374_v11 = vmul.f32 %v12565_v10, %v2460_v56 }
 0x592   :  { %17234 = vst [vmem:[#allocation31_spill] sm:$0xff] %v14370_v5  ;;  %v14377_v19 = vand.u32 4294901760, %v14370_v5  ;;  %v2456_v22 = vmax.f32 %v2448_v43, 0.0  ;;  %v14379_v31 = vmul.f32 0.0078125, %v2393_v23  ;;  %v2462_v43 = vsub.f32 %v14031_v6, %v14354_v36 }
 0x593   :  { %17235 = vst [vmem:[#allocation32_spill] sm:$0xff] %v14374_v11  ;;  %v2473_v0 = vadd.f32 1e-05, %v2457_v9  ;;  %v14382_v49 = vand.u32 4294901760, %v14374_v11  ;;  %v2443_v30 = vmul.f32 %v14372_v38, %v14372_v38 }
 0x594   :  { %v2472_v48 = vadd.f32 1e-05, %v2456_v22  ;;  %v2419_v55 = vpop.xlane.xlu1 %2418  ;;  %v14388_v57 = vsub.f32 %v14370_v5, %v14377_v19  ;;  %v2442_v4 = vmul.f32 %v14379_v31, %v14379_v31 }
 0x595   :  { %12570 = vrsqrt.f32 %v2473_v0  ;;  %v2435_v47 = vmul.f32 0.0078125, %v2419_v55  ;;  %v2417_v24 = vpop.xlane.xlu0 %2416  ;;  %v14394_v56 = vsub.f32 %v14374_v11, %v14382_v49 }
 0x596   :  { %12572 = vrsqrt.f32 %v2472_v48  ;;  %v2434_v53 = vmul.f32 0.0078125, %v2417_v24  ;;  %v2610_v8 = vand.u32 4294901760, %v14388_v57 }
 0x597   :  { %v12567_v10 = vpop.eup %12566  ;;  %v2451_v15 = vsub.f32 %v2435_v47, %v2443_v30  ;;  %v2600_v9 = vand.u32 4294901760, %v14394_v56 }
 0x598   :  { %v12569_v23 = vpop.eup %12568  ;;  %v2450_v22 = vsub.f32 %v2434_v53, %v2442_v4  ;;  %v2611_v0 = vsub.f32 %v14388_v57, %v2610_v8  ;;  %v14405_v48 = vmul.f32 %v12567_v10, %v2463_v13 }
 0x599   :  { %v2459_v55 = vmax.f32 %v2451_v15, 0.0  ;;  %v2601_v24 = vsub.f32 %v14394_v56, %v2600_v9  ;;  %v14410_v11 = vmul.f32 %v12569_v23, %v2462_v43  ;;  %v2465_v43 = vsub.f32 %v14049_v21, %v14360_v34 }
 0x59a   :  { %17236 = vst [vmem:[#allocation17_spill] sm:$0xff] %v14405_v48  ;;  %v2458_v5 = vmax.f32 %v2450_v22, 0.0  ;;  %v14413_v6 = vand.u32 4294901760, %v14405_v48  ;;  %v2612_v53 = vand.u32 4294901760, %v2611_v0 }
 0x59b   :  { %17237 = vst [vmem:[#allocation16_spill] sm:$0xff] %v14410_v11  ;;  %v2475_v36 = vadd.f32 1e-05, %v2459_v55  ;;  %v2602_v30 = vand.u32 4294901760, %v2601_v24  ;;  %v14416_v47 = vand.u32 4294901760, %v14410_v11 }
 0x59c   :  { %v2474_v4 = vadd.f32 1e-05, %v2458_v5  ;;  %v14420_v13 = vsub.f32 %v14405_v48, %v14413_v6  ;;  %v2464_v5 = vsub.f32 %v14053_v20, %v14362_v50 }
 0x59d   :  { %12574 = vrsqrt.f32 %v2475_v36  ;;  %9539 = vmatprep.mubr.f32.mxu0 %v2602_v30  ;;  %v14424_v10 = vsub.f32 %v14410_v11, %v14416_v47 }
 0x59e   :  { %12576 = vrsqrt.f32 %v2474_v4  ;;  %9540 = vmatmul.mubr.f32.vlgmr.msra.gmra.mrb[8].mxu0 %v2612_v53  ;;  %v2630_v15 = vand.u32 4294901760, %v14420_v13  ;;  %v2467_v53 = vsub.f32 %v14091_v58, %v14372_v38 }
 0x59f   :  { %v12571_v23 = vpop.eup %12570  ;;  %11246 = vmatpush3.bf16.msra.mxu0 %v14201_v42  ;;  %v2620_v22 = vand.u32 4294901760, %v14424_v10 }
 0x5a0   :  { %v12573_v0 = vpop.eup %12572  ;;  %11248 = vmatprep.subr.bf16.mxu0 %v14222_v16  ;;  %v2631_v55 = vsub.f32 %v14420_v13, %v2630_v15  ;;  %v14437_v21 = vmul.f32 %v12571_v23, %v2465_v43  ;;  %v2466_v23 = vsub.f32 %v14096_v29, %v14379_v31 }
 0x5a1   :  { %v2621_v34 = vsub.f32 %v14424_v10, %v2620_v22  ;;  %v14442_v24 = vmul.f32 %v12573_v0, %v2464_v5 }
 0x5a2   :  { %17238 = vst [vmem:[#allocation19_spill] sm:$0xff] %v14437_v21  ;;  %v14445_v20 = vand.u32 4294901760, %v14437_v21  ;;  %v2632_v36 = vand.u32 4294901760, %v2631_v55 }
 0x5a3   :  { %17239 = vst [vmem:[#allocation18_spill] sm:$0xff] %v14442_v24  ;;  %11250 = vmatpush3.bf16.msra.mxu0 %v14222_v16  ;;  %v2622_v42 = vand.u32 4294901760, %v2621_v34  ;;  %v14449_v50 = vand.u32 4294901760, %v14442_v24 }
 0x5a4   :  { %11252 = vmatprep.subr.bf16.mxu0 %v14238_v7  ;;  %v14454_v30 = vsub.f32 %v14437_v21, %v14445_v20 }
 0x5a5   :  { %9542 = vmatprep.mubr.f32.mxu0 %v2622_v42  ;;  %v14458_v4 = vsub.f32 %v14442_v24, %v14449_v50 }
 0x5a6   :  { %9543 = vmatmul.mubr.f32.gmra.mrb[10].mxu0 %v2632_v36  ;;  %v2650_v16 = vand.u32 4294901760, %v14454_v30 }
 0x5a7   :  { %v12575_v43 = vpop.eup %12574  ;;  %11254 = vmatpush3.bf16.msra.mxu0 %v14238_v7  ;;  %v2640_v5 = vand.u32 4294901760, %v14458_v4 }
 0x5a8   :  { %v12577_v0 = vpop.eup %12576  ;;  %11256 = vmatprep.subr.bf16.mxu0 %v14266_v59  ;;  %v2651_v55 = vsub.f32 %v14454_v30, %v2650_v16  ;;  %v14471_v34 = vmul.f32 %v12575_v43, %v2467_v53 }
 0x5a9   :  { %v2641_v58 = vsub.f32 %v14458_v4, %v2640_v5  ;;  %v14476_v38 = vmul.f32 %v12577_v0, %v2466_v23 }
 0x5aa   :  { %17240 = vst [vmem:[#allocation21_spill] sm:$0xff] %v14471_v34  ;;  %v14479_v29 = vand.u32 4294901760, %v14471_v34  ;;  %v2652_v42 = vand.u32 4294901760, %v2651_v55 }
 0x5ab   :  { %17241 = vst [vmem:[#allocation20_spill] sm:$0xff] %v14476_v38  ;;  %11258 = vmatpush3.bf16.msra.mxu0 %v14266_v59  ;;  %v2642_v7 = vand.u32 4294901760, %v2641_v58  ;;  %v14483_v31 = vand.u32 4294901760, %v14476_v38 }
 0x5ac   :  { %11260 = vmatprep.subr.bf16.mxu0 %v14270_v1  ;;  %v14488_v36 = vsub.f32 %v14471_v34, %v14479_v29 }
 0x5ad   :  { %9545 = vmatprep.mubr.f32.mxu0 %v2642_v7  ;;  %v14492_v53 = vsub.f32 %v14476_v38, %v14483_v31 }
 0x5ae   :  { %9546 = vmatmul.mubr.f32.gmra.mrb[12].mxu0 %v2652_v42  ;;  %v2670_v43 = vand.u32 4294901760, %v14488_v36 }
 0x5af   :  { %11262 = vmatpush3.bf16.msra.mxu0 %v14270_v1  ;;  %v2660_v59 = vand.u32 4294901760, %v14492_v53  ;;  %v17242_v1 = vand.u32 4294901760, %v14158_v33  ;;  %v17246_v33 = vand.u32 4294901760, %v14212_v44  ;;  %v17250_v44 = vld [vmem:[#allocation15_spill] sm:$0xff] }
 0x5b0   :  { %11264 = vmatprep.subr.bf16.mxu0 %v14290_v37  ;;  %v2671_v23 = vsub.f32 %v14488_v36, %v2670_v43 }
 0x5b1   :  { %v2661_v0 = vsub.f32 %v14492_v53, %v2660_v59 }
 0x5b2   :  { %v2672_v58 = vand.u32 4294901760, %v2671_v23 }
 0x5b3   :  { %11266 = vmatpush3.bf16.msra.mxu0 %v14290_v37  ;;  %v2662_v55 = vand.u32 4294901760, %v2661_v0  ;;  %v17243_v37 = vand.u32 4294901760, %v14163_v51  ;;  %v17247_v51 = vand.u32 4294901760, %v14217_v45  ;;  %v17251_v45 = vand.u32 4294901760, %v17250_v44 }
 0x5b4   :  { %11268 = vmatprep.subr.bf16.mxu0 %v14316_v32 }
 0x5b5   :  { %9548 = vmatprep.mubr.f32.mxu0 %v2662_v55 }
 0x5b6   :  { %9549 = vmatmul.mubr.f32.gmra.mrb[14].mxu0 %v2672_v58 }
 0x5b7   :  { %11270 = vmatpush3.bf16.msra.mxu0 %v14316_v32  ;;  %9583 = vmatprep.mubr.f32.mxu0 %v14382_v49  ;;  %v17244_v32 = vand.u32 4294901760, %v14190_v26  ;;  %v17248_v26 = vand.u32 4294901760, %v14231_v52  ;;  %v17254_v52 = vld [vmem:[#allocation25_spill] sm:$0xff] }
 0x5b8   :  { %11272 = vmatprep.subr.bf16.mxu0 %v14318_v61 }
 0x5bb   :  { %11274 = vmatpush3.bf16.msra.mxu0 %v14318_v61  ;;  %v17245_v61 = vand.u32 4294901760, %v14195_v62  ;;  %v17249_v62 = vand.u32 4294901760, %v14234_v54  ;;  %v17255_v54 = vand.u32 4294901760, %v17254_v52 }
 0x5bc   :  { %11276 = vmatprep.subr.bf16.mxu0 %v14322_v41 }
 0x5be   :  { %9584 = vmatmul.mubr.f32.vlgmr.msra.gmra.mrb[8].mxu0 %v14377_v19 }
 0x5bf   :  { %9586 = vmatprep.mubr.f32.mxu0 %v14416_v47  ;;  %11278 = vmatpush3.bf16.msra.mxu0 %v14322_v41  ;;  %v11343_v41 = vpack.c.bf16 %v17245_v61, %v17244_v32 }
 0x5c0   :  { %11280 = vmatprep.subr.bf16.mxu0 %v14326_v17 }
 0x5c2   :  { %9587 = vmatmul.mubr.f32.gmra.mrb[10].mxu0 %v14413_v6 }
 0x5c3   :  { %9589 = vmatprep.mubr.f32.mxu0 %v14449_v50  ;;  %11282 = vmatpush3.bf16.msra.mxu0 %v14326_v17  ;;  %v11347_v17 = vpack.c.bf16 %v17247_v51, %v17246_v33  ;;  %v14686_v51 = vld [vmem:[#allocation7 + $0xa0] sm:$0xff] }
 0x5c4   :  { %11284 = vmatprep.subr.bf16.mxu0 %v14330_v46 }
 0x5c6   :  { %9590 = vmatmul.mubr.f32.gmra.mrb[12].mxu0 %v14445_v20 }
 0x5c7   :  { %9592 = vmatprep.mubr.f32.mxu0 %v14483_v31  ;;  %11286 = vmatpush3.bf16.msra.mxu0 %v14330_v46  ;;  %v11339_v46 = vpack.c.bf16 %v17243_v37, %v17242_v1  ;;  %v14672_v1 = vld [vmem:[#allocation7 + $0x90] sm:$0xff]  ;;  %v14674_v37 = vld [vmem:[#allocation7 + $0x98] sm:$0xff] }
 0x5c8   :  { %11288 = vmatprep.subr.bf16.mxu0 %v14334_v12  ;;  %v3614_v32 = vand.u32 4294901760, %v14674_v37 }
 0x5ca   :  { %9593 = vmatmul.mubr.f32.gmra.mrb[14].mxu0 %v14479_v29 }
 0x5cb   :  { %11290 = vmatpush3.bf16.msra.mxu0 %v14334_v12  ;;  %9627 = vmatprep.mubr.f32.mxu0 %v14394_v56  ;;  %v11351_v12 = vpack.c.bf16 %v17249_v62, %v17248_v26  ;;  %v3617_v26 = vand.u32 4294901760, %v14686_v51 }
 0x5cc   :  { %11292 = vmatprep.subr.bf16.mxu0 %v14338_v18 }
 0x5cf   :  { %11294 = vmatpush3.bf16.msra.mxu0 %v14338_v18  ;;  %v17252_v18 = vld [vmem:[#allocation24_spill] sm:$0xff] }
 0x5d0   :  { %11296 = vmatprep.subr.bf16.mxu0 %v14342_v3 }
 0x5d3   :  { %11298 = vmatpush3.bf16.msra.mxu0 %v14342_v3  ;;  %v17253_v3 = vand.u32 4294901760, %v17252_v18  ;;  %v14702_v18 = vld [vmem:[#allocation7 + $0xb0] sm:$0xff] }
 0x5d4   :  { %11300 = vmatprep.subr.bf16.mxu0 %v14346_v60 }
 0x5d7   :  { %11302 = vmatpush3.bf16.msra.mxu0 %v14346_v60  ;;  %v11355_v60 = vpack.c.bf16 %v17253_v3, %v17251_v45  ;;  %v14704_v3 = vld [vmem:[#allocation7 + $0xb8] sm:$0xff] }
 0x5d8   :  { %11304 = vmatprep.subr.bf16.mxu0 %v14350_v25  ;;  %v3626_v52 = vand.u32 4294901760, %v14704_v3 }
 0x5db   :  { %11306 = vmatpush3.bf16.msra.mxu0 %v14350_v25  ;;  %v17256_v25 = vld [vmem:[#allocation26_spill] sm:$0xff] }
 0x5dc   :  { %11308 = vmatprep.subr.bf16.mxu0 %v14062_v28 }
 0x5de   :  { %9628 = vmatmul.mubr.f32.vlgmr.msra.gmra.mrb[8].mxu0 %v14388_v57  ;;  %v17257_v57 = vand.u32 4294901760, %v17256_v25  ;;  %v14712_v25 = vld [vmem:[#allocation7 + $0xc0] sm:$0xff] }
 0x5df   :  { %9630 = vmatprep.mubr.f32.mxu0 %v14424_v10  ;;  %11310 = vmatpush3.bf16.msra.mxu0 %v14062_v28 }
 0x5e0   :  { %11312 = vmatprep.subr.bf16.mxu0 %v14084_v14  ;;  %v11359_v56 = vpack.c.bf16 %v17257_v57, %v17255_v54  ;;  %v14714_v57 = vld [vmem:[#allocation7 + $0xc8] sm:$0xff] }
 0x5e2   :  { %9631 = vmatmul.mubr.f32.gmra.mrb[10].mxu0 %v14420_v13  ;;  %v17260_v13 = vld [vmem:[#allocation28_spill] sm:$0xff] }
 0x5e3   :  { %9633 = vmatprep.mubr.f32.mxu0 %v14458_v4  ;;  %11314 = vmatpush3.bf16.msra.mxu0 %v14084_v14  ;;  %v17261_v10 = vand.u32 4294901760, %v17260_v13  ;;  %v17264_v4 = vld [vmem:[#allocation30_spill] sm:$0xff]  ;;  %v14722_v13 = vld [vmem:[#allocation7 + $0xd0] sm:$0xff] }
 0x5e4   :  { %11316 = vmatprep.subr.bf16.mxu0 %v14104_v39 }
 0x5e6   :  { %9634 = vmatmul.mubr.f32.gmra.mrb[12].mxu0 %v14454_v30 }
 0x5e7   :  { %9636 = vmatprep.mubr.f32.mxu0 %v14492_v53  ;;  %11318 = vmatpush3.bf16.msra.mxu0 %v14104_v39  ;;  %v3580_v53 = vld [vmem:[#allocation7 + $0x80] sm:$0xff] }
 0x5e8   :  { %11320 = vmatprep.subr.bf16.mxu0 %v14119_v40 }
 0x5ea   :  { %9637 = vmatmul.mubr.f32.gmra.mrb[14].mxu0 %v14488_v36 }
 0x5eb   :  { %11322 = vmatpush3.bf16.msra.mxu0 %v14119_v40  ;;  %9671 = vmatprep.mubr.f32.mxu0 %v2600_v9 }
 0x5ec   :  { %11324 = vmatprep.subr.bf16.mxu0 %v14129_v27 }
 0x5ef   :  { %11326 = vmatpush3.bf16.msra.mxu0 %v14129_v27 }
 0x5f0   :  { %11328 = vmatprep.subr.bf16.mxu0 %v14139_v2 }
 0x5f3   :  { %11330 = vmatpush3.bf16.msra.mxu0 %v14139_v2 }
 0x5f4   :  { %11332 = vmatprep.subr.bf16.mxu0 %v14153_v35 }
 0x5f7   :  { %11334 = vmatpush3.bf16.msra.mxu0 %v14153_v35 }
 0x5f8   :  { %11336 = vmatprep.subr.bf16.mxu0 %v14179_v63 }
 0x5fb   :  { %11338 = vmatpush3.bf16.msra.mxu0 %v14179_v63 }
 0x5fc   :  { %11340 = vmatprep.subr.bf16.mxu0 %v11339_v46 }
 0x5fe   :  { %9672 = vmatmul.mubr.f32.vlgmr.msra.gmra.mrb[8].mxu0 %v2610_v8  ;;  %v17258_v8 = vld [vmem:[#allocation27_spill] sm:$0xff] }
 0x5ff   :  { %9674 = vmatprep.mubr.f32.mxu0 %v2620_v22  ;;  %11342 = vmatpush3.bf16.msra.mxu0 %v11339_v46  ;;  %v17259_v9 = vand.u32 4294901760, %v17258_v8  ;;  %v17262_v22 = vld [vmem:[#allocation29_spill] sm:$0xff]  ;;  %v3611_v46 = vand.u32 4294901760, %v14672_v1  ;;  %v3632_v8 = vand.u32 4294901760, %v14714_v57 }
 0x600   :  { %11344 = vmatprep.subr.bf16.mxu0 %v11343_v41  ;;  %v17263_v30 = vand.u32 4294901760, %v17262_v22 }
 0x602   :  { %9675 = vmatmul.mubr.f32.gmra.mrb[10].mxu0 %v2630_v15  ;;  %v11363_v15 = vpack.c.bf16 %v17261_v10, %v17259_v9  ;;  %v14724_v10 = vld [vmem:[#allocation7 + $0xd8] sm:$0xff] }
 0x603   :  { %9677 = vmatprep.mubr.f32.mxu0 %v2640_v5  ;;  %11346 = vmatpush3.bf16.msra.mxu0 %v11343_v41  ;;  %v14682_v41 = vpack.c.bf16 %v3614_v32, %v3611_v46  ;;  %v3638_v22 = vand.u32 4294901760, %v14724_v10 }
 0x604   :  { %11348 = vmatprep.subr.bf16.mxu0 %v11347_v17 }
 0x606   :  { %9678 = vmatmul.mubr.f32.gmra.mrb[12].mxu0 %v2650_v16  ;;  %v17265_v16 = vand.u32 4294901760, %v17264_v4  ;;  %v14732_v4 = vld [vmem:[#allocation7 + $0xe0] sm:$0xff] }
 0x607   :  { %9680 = vmatprep.mubr.f32.mxu0 %v2660_v59  ;;  %11350 = vmatpush3.bf16.msra.mxu0 %v11347_v17  ;;  %v3605_v59 = vand.u32 4294901760, %v3580_v53  ;;  %v14688_v17 = vld [vmem:[#allocation7 + $0xa8] sm:$0xff] }
 0x608   :  { %11352 = vmatprep.subr.bf16.mxu0 %v11351_v12  ;;  %v11367_v5 = vpack.c.bf16 %v17265_v16, %v17263_v30  ;;  %v3620_v62 = vand.u32 4294901760, %v14688_v17  ;;  %v14734_v16 = vld [vmem:[#allocation7 + $0xe8] sm:$0xff] }
 0x60a   :  { %9681 = vmatmul.mubr.f32.gmra.mrb[14].mxu0 %v2670_v43  ;;  %v3581_v43 = vld [vmem:[#allocation7 + $0x88] sm:$0xff]  ;;  %v14698_v44 = vpack.c.bf16 %v3620_v62, %v3617_v26 }
 0x60b   :  { %11354 = vmatpush3.bf16.msra.mxu0 %v11351_v12  ;;  %9715 = vmatprep.mubr.f32.mxu0 %v14382_v49  ;;  %v3608_v23 = vand.u32 4294901760, %v3581_v43 }
 0x60c   :  { %11356 = vmatprep.subr.bf16.mxu0 %v11355_v60 }
 0x60d   :  { %v14668_v55 = vpack.c.bf16 %v3608_v23, %v3605_v59 }
 0x60f   :  { %11358 = vmatpush3.bf16.msra.mxu0 %v11355_v60  ;;  %11404 = vmatprep.subr.bf16.mxu1 %v14668_v55  ;;  %v3623_v60 = vand.u32 4294901760, %v14702_v18 }
 0x610   :  { %11360 = vmatprep.subr.bf16.mxu0 %v11359_v56  ;;  %11406 = vmatpush3.bf16.msra.mxu1 %v14668_v55 }
 0x611   :  { %11408 = vmatprep.subr.bf16.mxu1 %v14682_v41  ;;  %v14710_v54 = vpack.c.bf16 %v3626_v52, %v3623_v60 }
 0x613   :  { %11362 = vmatpush3.bf16.msra.mxu0 %v11359_v56  ;;  %v3629_v56 = vand.u32 4294901760, %v14712_v25 }
 0x614   :  { %11364 = vmatprep.subr.bf16.mxu0 %v11363_v15  ;;  %11410 = vmatpush3.bf16.msra.mxu1 %v14682_v41 }
 0x615   :  { %11412 = vmatprep.subr.bf16.mxu1 %v14698_v44  ;;  %v14720_v9 = vpack.c.bf16 %v3632_v8, %v3629_v56 }
 0x617   :  { %11366 = vmatpush3.bf16.msra.mxu0 %v11363_v15  ;;  %v3635_v15 = vand.u32 4294901760, %v14722_v13 }
 0x618   :  { %11368 = vmatprep.subr.bf16.mxu0 %v11367_v5  ;;  %11414 = vmatpush3.bf16.msra.mxu1 %v14698_v44 }
 0x619   :  { %11416 = vmatprep.subr.bf16.mxu1 %v14710_v54  ;;  %v14730_v30 = vpack.c.bf16 %v3638_v22, %v3635_v15 }
 0x61b   :  { %11370 = vmatpush3.bf16.msra.mxu0 %v11367_v5  ;;  %v3641_v5 = vand.u32 4294901760, %v14732_v4 }
 0x61c   :  { %11372 = vmatprep.subr.bf16.mxu0 %v14062_v28  ;;  %11418 = vmatpush3.bf16.msra.mxu1 %v14710_v54 }
 0x61d   :  { %11420 = vmatprep.subr.bf16.mxu1 %v14720_v9 }
 0x61e   :  { %9716 = vmatmul.mubr.f32.vlgmr.msra.gmra.mrb[8].mxu0 %v14377_v19 }
 0x61f   :  { %9718 = vmatprep.mubr.f32.mxu0 %v14416_v47  ;;  %11374 = vmatpush3.bf16.msra.mxu0 %v14062_v28  ;;  %v7963_v28 = vld [vmem:[%s16987_s2 + $0x1] ss:$0 sm:$0xff] }
 0x620   :  { %11376 = vmatprep.subr.bf16.mxu0 %v14084_v14  ;;  %11422 = vmatpush3.bf16.msra.mxu1 %v14720_v9 }
 0x621   :  { %11424 = vmatprep.subr.bf16.mxu1 %v14730_v30 }
 0x622   :  { %9719 = vmatmul.mubr.f32.gmra.mrb[10].mxu0 %v14413_v6 }
 0x623   :  { %9721 = vmatprep.mubr.f32.mxu0 %v14449_v50  ;;  %11378 = vmatpush3.bf16.msra.mxu0 %v14084_v14 }
 0x624   :  { %11380 = vmatprep.subr.bf16.mxu0 %v14104_v39  ;;  %11426 = vmatpush3.bf16.msra.mxu1 %v14730_v30 }
 0x626   :  { %9722 = vmatmul.mubr.f32.gmra.mrb[12].mxu0 %v14445_v20 }
 0x627   :  { %9724 = vmatprep.mubr.f32.mxu0 %v14483_v31  ;;  %11382 = vmatpush3.bf16.msra.mxu0 %v14104_v39 }
 0x628   :  { %11384 = vmatprep.subr.bf16.mxu0 %v14119_v40 }
 0x62a   :  { %9725 = vmatmul.mubr.f32.gmra.mrb[14].mxu0 %v14479_v29 }
 0x62b   :  { %11386 = vmatpush3.bf16.msra.mxu0 %v14119_v40  ;;  %9759 = vmatprep.mubr.f32.mxu0 %v14382_v49 }
 0x62c   :  { %11388 = vmatprep.subr.bf16.mxu0 %v14129_v27 }
 0x62f   :  { %11390 = vmatpush3.bf16.msra.mxu0 %v14129_v27 }
 0x630   :  { %11392 = vmatprep.subr.bf16.mxu0 %v14139_v2 }
 0x633   :  { %11394 = vmatpush3.bf16.msra.mxu0 %v14139_v2 }
 0x634   :  { %11396 = vmatprep.subr.bf16.mxu0 %v14153_v35 }
 0x637   :  { %11398 = vmatpush3.bf16.msra.mxu0 %v14153_v35 }
 0x638   :  { %11400 = vmatprep.subr.bf16.mxu0 %v14179_v63 }
 0x63b   :  { %11402 = vmatpush3.bf16.msra.mxu0 %v14179_v63 }
 0x63e   :  { %9760 = vmatmul.mubr.f32.vlgmr.msra.gmra.mrb[8].mxu0 %v14377_v19 }
 0x63f   :  { %9762 = vmatprep.mubr.f32.mxu0 %v14416_v47 }
 0x642   :  { %9763 = vmatmul.mubr.f32.gmra.mrb[10].mxu0 %v14413_v6 }
 0x643   :  { %9765 = vmatprep.mubr.f32.mxu0 %v14449_v50 }
 0x646   :  { %9766 = vmatmul.mubr.f32.gmra.mrb[12].mxu0 %v14445_v20 }
 0x647   :  { %9768 = vmatprep.mubr.f32.mxu0 %v14483_v31 }
 0x64a   :  { %9769 = vmatmul.mubr.f32.gmra.mrb[14].mxu0 %v14479_v29 }
 0x711   :  { %v9761_v14 = vpop.f32.mrb[8].mxu0 }
 0x712   :  { %v14640_v39 = vadd.f32 %v9761_v14, %v7963_v28  ;;  %v3413_v40 = vpop.f32.mrb[9].mxu0 }
 0x713   :  { %v14642_v27 = vadd.f32 %v7963_v28, %v3413_v40  ;;  %v14746_v40 = vsub.f32 %v3580_v53, %v3605_v59  ;;  %v14773_v53 = vsub.f32 %v14672_v1, %v3611_v46  ;;  %v14791_v46 = vsub.f32 %v14686_v51, %v3617_v26 }
 0x714   :  { %3461 = vadd.xlane.f32.xlu1 %v14640_v39  ;;  %v3476_v63 = vmul.f32 %v14640_v39, %v14640_v39  ;;  %v14811_v26 = vsub.f32 %v14704_v3, %v3626_v52 }
 0x715   :  { %v9764_v2 = vpop.f32.mrb[10].mxu0  ;;  %3459 = vadd.xlane.f32.xlu0 %v14642_v27  ;;  %v3475_v19 = vmul.f32 %v14642_v27, %v14642_v27 }
 0x716   :  { %v3425_v35 = vpop.f32.mrb[11].mxu0  ;;  %v14650_v6 = vadd.f32 %v9764_v2, %v7963_v28  ;;  %v14748_v2 = vsub.f32 %v3581_v43, %v3608_v23  ;;  %v14776_v43 = vsub.f32 %v14674_v37, %v3614_v32  ;;  %v14794_v32 = vsub.f32 %v14688_v17, %v3620_v62  ;;  %17267 = vst [vmem:[#allocation22_spill] sm:$0xff] %v14811_v26 }
 0x717   :  { %v14652_v20 = vadd.f32 %v7963_v28, %v3425_v35  ;;  %v14750_v35 = vld [vmem:[#allocation7 + $0xf0] sm:$0xff]  ;;  %v14808_v17 = vsub.f32 %v14702_v18, %v3623_v60  ;;  %v14824_v18 = vsub.f32 %v14714_v57, %v3632_v8  ;;  %v14838_v57 = vsub.f32 %v14722_v13, %v3635_v15 }
 0x718   :  { %3485 = vadd.xlane.f32.xlu1 %v3476_v63  ;;  %v3478_v7 = vmul.f32 %v14650_v6, %v14650_v6  ;;  %v14752_v63 = vld [vmem:[#allocation7 + $0xf8] sm:$0xff] }
 0x719   :  { %v9767_v49 = vpop.f32.mrb[12].mxu0  ;;  %3483 = vadd.xlane.f32.xlu0 %v3475_v19  ;;  %v3477_v31 = vmul.f32 %v14652_v20, %v14652_v20  ;;  %v3647_v19 = vand.u32 4294901760, %v14750_v35  ;;  %17266 = vst [vmem:[#allocation23_spill] sm:$0xff] %v14808_v17  ;;  %17269 = vst [vmem:[#allocation24_spill] sm:$0xff] %v14824_v18 }
 0x71a   :  { %v3437_v47 = vpop.f32.mrb[13].mxu0  ;;  %v14660_v42 = vadd.f32 %v9767_v49, %v7963_v28  ;;  %v3650_v49 = vand.u32 4294901760, %v14752_v63  ;;  %17270 = vst [vmem:[#allocation25_spill] sm:$0xff] %v14838_v57 }
 0x71b   :  { %v14662_v36 = vadd.f32 %v7963_v28, %v3437_v47  ;;  %v17069_v47 = vand.u32 4294901760, %v14746_v40 }
 0x71c   :  { %3465 = vadd.xlane.f32.xlu1 %v14650_v6  ;;  %v3480_v0 = vmul.f32 %v14660_v42, %v14660_v42 }
 0x71d   :  { %v9770_v50 = vpop.f32.mrb[14].mxu0  ;;  %3463 = vadd.xlane.f32.xlu0 %v14652_v20  ;;  %v3479_v58 = vmul.f32 %v14662_v36, %v14662_v36 }
 0x71e   :  { %v3449_v29 = vpop.f32.mrb[15].mxu0  ;;  %v14680_v61 = vadd.f32 %v9770_v50, %v7963_v28  ;;  %v17068_v50 = vand.u32 4294901760, %v14748_v2 }
 0x71f   :  { %v14684_v33 = vadd.f32 %v7963_v28, %v3449_v29  ;;  %v3644_v28 = vand.u32 4294901760, %v14734_v16  ;;  %v14764_v29 = vpack.c.bf16 %v3650_v49, %v3647_v19 }
 0x720   :  { %3489 = vadd.xlane.f32.xlu1 %v3478_v7  ;;  %v3482_v12 = vmul.f32 %v14680_v61, %v14680_v61  ;;  %v3769_v7 = vsub.f32 %v14746_v40, %v17069_v47 }
 0x721   :  { %3487 = vadd.xlane.f32.xlu0 %v3477_v31  ;;  %v3481_v45 = vmul.f32 %v14684_v33, %v14684_v33  ;;  %v14744_v14 = vpack.c.bf16 %v3644_v28, %v3641_v5  ;;  %v3776_v31 = vsub.f32 %v14748_v2, %v17068_v50  ;;  %v14863_v15 = vsub.f32 %v14734_v16, %v3644_v28 }
 0x722   :  { %v3770_v59 = vand.u32 4294901760, %v3769_v7  ;;  %v14880_v16 = vsub.f32 %v14752_v63, %v3650_v49 }
 0x723   :  { %11428 = vmatprep.subr.bf16.mxu1 %v14744_v14  ;;  %v3777_v23 = vand.u32 4294901760, %v3776_v31  ;;  %v17055_v31 = vand.u32 4294901760, %v14791_v46  ;;  %17273 = vst [vmem:[#allocation28_spill] sm:$0xff] %v14863_v15 }
 0x724   :  { %3469 = vadd.xlane.f32.xlu1 %v14660_v42  ;;  %11430 = vmatpush3.bf16.msra.mxu1 %v14744_v14  ;;  %17275 = vst [vmem:[#allocation30_spill] sm:$0xff] %v14880_v16 }
 0x725   :  { %3467 = vadd.xlane.f32.xlu0 %v14662_v36  ;;  %11432 = vmatprep.subr.bf16.mxu1 %v14764_v29 }
 0x728   :  { %3493 = vadd.xlane.f32.xlu1 %v3480_v0  ;;  %11434 = vmatpush3.bf16.msra.mxu1 %v14764_v29  ;;  %v17067_v0 = vand.u32 4294901760, %v14773_v53 }
 0x729   :  { %3491 = vadd.xlane.f32.xlu0 %v3479_v58  ;;  %v17054_v58 = vand.u32 4294901760, %v14776_v43 }
 0x72a   :  { %v3783_v1 = vsub.f32 %v14773_v53, %v17067_v0 }
 0x72b   :  { %v3790_v37 = vsub.f32 %v14776_v43, %v17054_v58  ;;  %v3797_v58 = vsub.f32 %v14791_v46, %v17055_v31 }
 0x72c   :  { %3473 = vadd.xlane.f32.xlu1 %v14680_v61 }
 0x72d   :  { %3471 = vadd.xlane.f32.xlu0 %v14684_v33  ;;  %v3791_v7 = vand.u32 4294901760, %v3790_v37  ;;  %v3798_v62 = vand.u32 4294901760, %v3797_v58  ;;  %v17058_v37 = vand.u32 4294901760, %v14808_v17  ;;  %v17059_v58 = vand.u32 4294901760, %v14824_v18 }
 0x72f   :  { %v3811_v31 = vsub.f32 %v14808_v17, %v17058_v37 }
 0x730   :  { %3497 = vadd.xlane.f32.xlu1 %v3482_v12  ;;  %v14782_v12 = vpack.c.bf16 %v3777_v23, %v3770_v59  ;;  %v17056_v59 = vand.u32 4294901760, %v14794_v32 }
 0x731   :  { %3495 = vadd.xlane.f32.xlu0 %v3481_v45  ;;  %v3784_v45 = vand.u32 4294901760, %v3783_v1  ;;  %v3812_v60 = vand.u32 4294901760, %v3811_v31 }
 0x732   :  { %11436 = vmatprep.subr.bf16.mxu1 %v14782_v12  ;;  %v3804_v51 = vsub.f32 %v14794_v32, %v17056_v59  ;;  %v14821_v59 = vsub.f32 %v14712_v25, %v3629_v56  ;;  %v3832_v25 = vsub.f32 %v14824_v18, %v17059_v58  ;;  %v14841_v56 = vsub.f32 %v14724_v10, %v3638_v22 }
 0x733   :  { %v14799_v23 = vpack.c.bf16 %v3791_v7, %v3784_v45  ;;  %v17057_v45 = vand.u32 4294901760, %v14811_v26  ;;  %v14858_v10 = vsub.f32 %v14732_v4, %v3641_v5  ;;  %v14875_v4 = vsub.f32 %v14750_v35, %v3647_v19 }
 0x734   :  { %v3805_v1 = vand.u32 4294901760, %v3804_v51  ;;  %17268 = vst [vmem:[#allocation15_spill] sm:$0xff] %v14821_v59  ;;  %v17066_v52 = vand.u32 4294901760, %v14821_v59  ;;  %17271 = vst [vmem:[#allocation26_spill] sm:$0xff] %v14841_v56 }
 0x735   :  { %v3818_v3 = vsub.f32 %v14811_v26, %v17057_v45  ;;  %v17064_v45 = vand.u32 4294901760, %v14841_v56  ;;  %17272 = vst [vmem:[#allocation27_spill] sm:$0xff] %v14858_v10  ;;  %17274 = vst [vmem:[#allocation29_spill] sm:$0xff] %v14875_v4 }
 0x736   :  { %v14815_v7 = vpack.c.bf16 %v3805_v1, %v3798_v62  ;;  %v3825_v62 = vsub.f32 %v14821_v59, %v17066_v52  ;;  %v3833_v1 = vand.u32 4294901760, %v3832_v25 }
 0x737   :  { %v3819_v51 = vand.u32 4294901760, %v3818_v3  ;;  %v17065_v3 = vand.u32 4294901760, %v14838_v57  ;;  %v3846_v13 = vsub.f32 %v14841_v56, %v17064_v45 }
 0x738   :  { %v3826_v31 = vand.u32 4294901760, %v3825_v62  ;;  %v17062_v62 = vand.u32 4294901760, %v14863_v15 }
 0x739   :  { %v14843_v8 = vpack.c.bf16 %v3819_v51, %v3812_v60  ;;  %v3839_v58 = vsub.f32 %v14838_v57, %v17065_v3  ;;  %v3847_v60 = vand.u32 4294901760, %v3846_v13  ;;  %v17063_v51 = vand.u32 4294901760, %v14858_v10 }
 0x73a   :  { %v14847_v37 = vpack.c.bf16 %v3833_v1, %v3826_v31  ;;  %v3860_v5 = vsub.f32 %v14863_v15, %v17062_v62  ;;  %v17061_v1 = vand.u32 4294901760, %v14880_v16 }
 0x73b   :  { %v3840_v22 = vand.u32 4294901760, %v3839_v58  ;;  %v3853_v31 = vsub.f32 %v14858_v10, %v17063_v51  ;;  %v17060_v58 = vand.u32 4294901760, %v14875_v4 }
 0x73c   :  { %v3861_v13 = vand.u32 4294901760, %v3860_v5  ;;  %v3874_v19 = vsub.f32 %v14880_v16, %v17061_v1  ;;  %v14903_v5 = vpack.c.bf16 %v14776_v43, %v14773_v53 }
 0x73d   :  { %v14867_v25 = vpack.c.bf16 %v3847_v60, %v3840_v22  ;;  %v3854_v28 = vand.u32 4294901760, %v3853_v31  ;;  %v3867_v35 = vsub.f32 %v14875_v4, %v17060_v58  ;;  %v14899_v31 = vpack.c.bf16 %v14748_v2, %v14746_v40 }
 0x73e   :  { %v3875_v22 = vand.u32 4294901760, %v3874_v19  ;;  %v14907_v58 = vpack.c.bf16 %v14794_v32, %v14791_v46  ;;  %v14923_v19 = vpack.c.bf16 %v14863_v15, %v14858_v10 }
 0x73f   :  { %v14893_v63 = vpack.c.bf16 %v3861_v13, %v3854_v28  ;;  %v3868_v49 = vand.u32 4294901760, %v3867_v35  ;;  %v14911_v28 = vpack.c.bf16 %v14811_v26, %v14808_v17  ;;  %v14915_v13 = vpack.c.bf16 %v14824_v18, %v14821_v59 }
 0x740   :  { %v14919_v35 = vpack.c.bf16 %v14841_v56, %v14838_v57 }
 0x741   :  { %v14895_v60 = vpack.c.bf16 %v3875_v22, %v3868_v49  ;;  %v14927_v49 = vpack.c.bf16 %v14880_v16, %v14875_v4 }
 0x7a1   :  { %v3462_v22 = vpop.xlane.xlu1 %3461 }
 0x7a2   :  { %v3500_v1 = vmul.f32 0.0078125, %v3462_v22  ;;  %v3460_v62 = vpop.xlane.xlu0 %3459 }
 0x7a3   :  { %v3499_v51 = vmul.f32 0.0078125, %v3460_v62 }
 0x7a4   :  { %v3516_v3 = vmul.f32 %v3500_v1, %v3500_v1 }
 0x7a5   :  { %v3486_v45 = vpop.xlane.xlu1 %3485  ;;  %v3515_v50 = vmul.f32 %v3499_v51, %v3499_v51 }
 0x7a6   :  { %v3508_v52 = vmul.f32 0.0078125, %v3486_v45  ;;  %v3484_v0 = vpop.xlane.xlu0 %3483 }
 0x7a7   :  { %v3507_v47 = vmul.f32 0.0078125, %v3484_v0 }
 0x7a8   :  { %v3524_v38 = vsub.f32 %v3508_v52, %v3516_v3 }
 0x7a9   :  { %v3523_v34 = vsub.f32 %v3507_v47, %v3515_v50  ;;  %v3466_v24 = vpop.xlane.xlu1 %3465 }
 0x7aa   :  { %v3532_v21 = vmax.f32 %v3524_v38, 0.0  ;;  %v14929_v11 = vmul.f32 0.0078125, %v3466_v24  ;;  %v3464_v48 = vpop.xlane.xlu0 %3463 }
 0x7ab   :  { %v3531_v15 = vmax.f32 %v3523_v34, 0.0  ;;  %v14931_v16 = vmul.f32 0.0078125, %v3464_v48 }
 0x7ac   :  { %v3548_v4 = vadd.f32 1e-05, %v3532_v21  ;;  %v3518_v45 = vmul.f32 %v14929_v11, %v14929_v11 }
 0x7ad   :  { %v3547_v22 = vadd.f32 1e-05, %v3531_v15  ;;  %v3490_v10 = vpop.xlane.xlu1 %3489  ;;  %v3517_v47 = vmul.f32 %v14931_v16, %v14931_v16 }
 0x7ae   :  { %12578 = vrsqrt.f32 %v3548_v4  ;;  %v3510_v62 = vmul.f32 0.0078125, %v3490_v10  ;;  %v3488_v56 = vpop.xlane.xlu0 %3487 }
 0x7af   :  { %12580 = vrsqrt.f32 %v3547_v22  ;;  %v3509_v38 = vmul.f32 0.0078125, %v3488_v56  ;;  %v3540_v56 = vsub.f32 %v14640_v39, %v3500_v1 }
 0x7b0   :  { %v3526_v24 = vsub.f32 %v3510_v62, %v3518_v45 }
 0x7b1   :  { %v3525_v50 = vsub.f32 %v3509_v38, %v3517_v47  ;;  %v3470_v0 = vpop.xlane.xlu1 %3469  ;;  %v3539_v38 = vsub.f32 %v14642_v27, %v3499_v51  ;;  %v3542_v27 = vsub.f32 %v14650_v6, %v14929_v11  ;;  %v3541_v11 = vsub.f32 %v14652_v20, %v14931_v16 }
 0x7b2   :  { %v3534_v34 = vmax.f32 %v3526_v24, 0.0  ;;  %v14937_v48 = vmul.f32 0.0078125, %v3470_v0  ;;  %v3468_v21 = vpop.xlane.xlu0 %3467 }
 0x7b3   :  { %v3533_v52 = vmax.f32 %v3525_v50, 0.0  ;;  %v14939_v3 = vmul.f32 0.0078125, %v3468_v21 }
 0x7b4   :  { %v3550_v15 = vadd.f32 1e-05, %v3534_v34  ;;  %v3520_v10 = vmul.f32 %v14937_v48, %v14937_v48 }
 0x7b5   :  { %v3549_v4 = vadd.f32 1e-05, %v3533_v52  ;;  %v3494_v57 = vpop.xlane.xlu1 %3493  ;;  %v3519_v45 = vmul.f32 %v14939_v3, %v14939_v3 }
 0x7b6   :  { %12582 = vrsqrt.f32 %v3550_v15  ;;  %v3512_v22 = vmul.f32 0.0078125, %v3494_v57  ;;  %v3492_v18 = vpop.xlane.xlu0 %3491 }
 0x7b7   :  { %12584 = vrsqrt.f32 %v3549_v4  ;;  %v3511_v62 = vmul.f32 0.0078125, %v3492_v18 }
 0x7b8   :  { %v12579_v47 = vpop.eup %12578  ;;  %v3528_v24 = vsub.f32 %v3512_v22, %v3520_v10 }
 0x7b9   :  { %v12581_v50 = vpop.eup %12580  ;;  %v3564_v0 = vmul.f32 %v12579_v47, %v3540_v56  ;;  %v3527_v34 = vsub.f32 %v3511_v62, %v3519_v45  ;;  %v3474_v21 = vpop.xlane.xlu1 %3473 }
 0x7ba   :  { %v3536_v52 = vmax.f32 %v3528_v24, 0.0  ;;  %v14947_v15 = vmul.f32 0.0078125, %v3474_v21  ;;  %v3472_v57 = vpop.xlane.xlu0 %3471  ;;  %v3563_v59 = vmul.f32 %v12581_v50, %v3539_v38 }
 0x7bb   :  { %v3572_v26 = vmax.f32 %v3564_v0, 0.0  ;;  %v3535_v39 = vmax.f32 %v3527_v34, 0.0  ;;  %v14949_v1 = vmul.f32 0.0078125, %v3472_v57 }
 0x7bc   :  { %v3552_v4 = vadd.f32 1e-05, %v3536_v52  ;;  %v3571_v17 = vmax.f32 %v3563_v59, 0.0  ;;  %v3522_v22 = vmul.f32 %v14947_v15, %v14947_v15 }
 0x7bd   :  { %v14951_v18 = vand.u32 4294901760, %v3572_v26  ;;  %v3551_v51 = vadd.f32 1e-05, %v3535_v39  ;;  %v3498_v10 = vpop.xlane.xlu1 %3497  ;;  %v3521_v47 = vmul.f32 %v14949_v1, %v14949_v1 }
 0x7be   :  { %12586 = vrsqrt.f32 %v3552_v4  ;;  %v3514_v56 = vmul.f32 0.0078125, %v3498_v10  ;;  %v3496_v45 = vpop.xlane.xlu0 %3495  ;;  %v14957_v62 = vand.u32 4294901760, %v3571_v17 }
 0x7bf   :  { %12588 = vrsqrt.f32 %v3551_v51  ;;  %v3513_v59 = vmul.f32 0.0078125, %v3496_v45  ;;  %v14962_v38 = vsub.f32 %v3572_v26, %v14951_v18 }
 0x7c0   :  { %v12583_v24 = vpop.eup %12582  ;;  %v3530_v6 = vsub.f32 %v3514_v56, %v3522_v22  ;;  %v14967_v50 = vsub.f32 %v3571_v17, %v14957_v62 }
 0x7c1   :  { %v12585_v0 = vpop.eup %12584  ;;  %v3529_v34 = vsub.f32 %v3513_v59, %v3521_v47  ;;  %v3697_v21 = vand.u32 4294901760, %v14962_v38  ;;  %v3566_v52 = vmul.f32 %v12583_v24, %v3542_v27  ;;  %v3544_v47 = vsub.f32 %v14660_v42, %v14937_v48 }
 0x7c2   :  { %v3538_v57 = vmax.f32 %v3530_v6, 0.0  ;;  %v3687_v39 = vand.u32 4294901760, %v14967_v50  ;;  %v3565_v4 = vmul.f32 %v12585_v0, %v3541_v11  ;;  %v3543_v6 = vsub.f32 %v14662_v36, %v14939_v3 }
 0x7c3   :  { %v3537_v51 = vmax.f32 %v3529_v34, 0.0  ;;  %v3698_v26 = vsub.f32 %v14962_v38, %v3697_v21  ;;  %v3574_v10 = vmax.f32 %v3566_v52, 0.0 }
 0x7c4   :  { %v3554_v20 = vadd.f32 1e-05, %v3538_v57  ;;  %v3688_v17 = vsub.f32 %v14967_v50, %v3687_v39  ;;  %v3573_v16 = vmax.f32 %v3565_v4, 0.0 }
 0x7c5   :  { %v3553_v22 = vadd.f32 1e-05, %v3537_v51  ;;  %v14977_v56 = vand.u32 4294901760, %v3574_v10  ;;  %v3699_v59 = vand.u32 4294901760, %v3698_v26 }
 0x7c6   :  { %12590 = vrsqrt.f32 %v3554_v20  ;;  %v3689_v27 = vand.u32 4294901760, %v3688_v17  ;;  %v14979_v45 = vand.u32 4294901760, %v3573_v16  ;;  %v3546_v20 = vsub.f32 %v14680_v61, %v14947_v15 }
 0x7c7   :  { %12592 = vrsqrt.f32 %v3553_v22  ;;  %v14984_v24 = vsub.f32 %v3574_v10, %v14977_v56 }
 0x7c8   :  { %v12587_v11 = vpop.eup %12586  ;;  %9803 = vmatprep.mubr.f32.mxu1 %v3689_v27  ;;  %v14989_v0 = vsub.f32 %v3573_v16, %v14979_v45  ;;  %v3545_v27 = vsub.f32 %v14684_v33, %v14949_v1 }
 0x7c9   :  { %v12589_v34 = vpop.eup %12588  ;;  %9804 = vmatmul.mubr.f32.vlgmr.msra.gmra.mrb[16].mxu1 %v3699_v59  ;;  %v3717_v52 = vand.u32 4294901760, %v14984_v24  ;;  %v3568_v57 = vmul.f32 %v12587_v11, %v3544_v47 }
 0x7ca   :  { %11438 = vmatpush3.bf16.msra.mxu1 %v14782_v12  ;;  %v3707_v42 = vand.u32 4294901760, %v14989_v0  ;;  %v3567_v48 = vmul.f32 %v12589_v34, %v3543_v6 }
 0x7cb   :  { %11440 = vmatprep.subr.bf16.mxu1 %v14799_v23  ;;  %v3718_v36 = vsub.f32 %v14984_v24, %v3717_v52  ;;  %v3576_v3 = vmax.f32 %v3568_v57, 0.0 }
 0x7cc   :  { %v3708_v4 = vsub.f32 %v14989_v0, %v3707_v42  ;;  %v3575_v51 = vmax.f32 %v3567_v48, 0.0 }
 0x7cd   :  { %v15001_v26 = vand.u32 4294901760, %v3576_v3  ;;  %v3719_v17 = vand.u32 4294901760, %v3718_v36 }
 0x7ce   :  { %11442 = vmatpush3.bf16.msra.mxu1 %v14799_v23  ;;  %v3709_v12 = vand.u32 4294901760, %v3708_v4  ;;  %v15004_v10 = vand.u32 4294901760, %v3575_v51 }
 0x7cf   :  { %11444 = vmatprep.subr.bf16.mxu1 %v14815_v7  ;;  %v15010_v16 = vsub.f32 %v3576_v3, %v15001_v26 }
 0x7d0   :  { %v12591_v22 = vpop.eup %12590  ;;  %9806 = vmatprep.mubr.f32.mxu1 %v3709_v12  ;;  %v15015_v47 = vsub.f32 %v3575_v51, %v15004_v10 }
 0x7d1   :  { %v12593_v23 = vpop.eup %12592  ;;  %9807 = vmatmul.mubr.f32.gmra.mrb[18].mxu1 %v3719_v17  ;;  %v3737_v59 = vand.u32 4294901760, %v15010_v16  ;;  %v3570_v11 = vmul.f32 %v12591_v22, %v3546_v20 }
 0x7d2   :  { %11446 = vmatpush3.bf16.msra.mxu1 %v14815_v7  ;;  %v3727_v61 = vand.u32 4294901760, %v15015_v47  ;;  %v3569_v15 = vmul.f32 %v12593_v23, %v3545_v27  ;;  %v17298_v23 = vld [vmem:[#allocation29_spill] sm:$0xff] }
 0x7d3   :  { %11448 = vmatprep.subr.bf16.mxu1 %v14843_v8  ;;  %v3738_v33 = vsub.f32 %v15010_v16, %v3737_v59  ;;  %v3578_v1 = vmax.f32 %v3570_v11, 0.0  ;;  %v17300_v11 = vld [vmem:[#allocation30_spill] sm:$0xff] }
 0x7d4   :  { %v3728_v6 = vsub.f32 %v15015_v47, %v3727_v61  ;;  %v3577_v34 = vmax.f32 %v3569_v15, 0.0 }
 0x7d5   :  { %v15027_v57 = vand.u32 4294901760, %v3578_v1  ;;  %v3739_v36 = vand.u32 4294901760, %v3738_v33 }
 0x7d6   :  { %11450 = vmatpush3.bf16.msra.mxu1 %v14843_v8  ;;  %v3729_v7 = vand.u32 4294901760, %v3728_v6  ;;  %v15030_v48 = vand.u32 4294901760, %v3577_v34 }
 0x7d7   :  { %11452 = vmatprep.subr.bf16.mxu1 %v14847_v37  ;;  %v15034_v3 = vsub.f32 %v3578_v1, %v15027_v57 }
 0x7d8   :  { %9809 = vmatprep.mubr.f32.mxu1 %v3729_v7  ;;  %v15037_v4 = vsub.f32 %v3577_v34, %v15030_v48 }
 0x7d9   :  { %9810 = vmatmul.mubr.f32.gmra.mrb[20].mxu1 %v3739_v36  ;;  %v3757_v51 = vand.u32 4294901760, %v15034_v3 }
 0x7da   :  { %11454 = vmatpush3.bf16.msra.mxu1 %v14847_v37  ;;  %v3747_v8 = vand.u32 4294901760, %v15037_v4  ;;  %v17276_v37 = vand.u32 4294901760, %v14746_v40  ;;  %v17280_v40 = vand.u32 4294901760, %v14791_v46  ;;  %v17286_v46 = vld [vmem:[#allocation15_spill] sm:$0xff] }
 0x7db   :  { %11456 = vmatprep.subr.bf16.mxu1 %v14867_v25  ;;  %v3758_v12 = vsub.f32 %v15034_v3, %v3757_v51 }
 0x7dc   :  { %v3748_v20 = vsub.f32 %v15037_v4, %v3747_v8 }
 0x7dd   :  { %v3759_v22 = vand.u32 4294901760, %v3758_v12 }
 0x7de   :  { %11458 = vmatpush3.bf16.msra.mxu1 %v14867_v25  ;;  %v3749_v17 = vand.u32 4294901760, %v3748_v20  ;;  %v17277_v25 = vand.u32 4294901760, %v14748_v2  ;;  %v17281_v2 = vand.u32 4294901760, %v14794_v32  ;;  %v17287_v32 = vand.u32 4294901760, %v17286_v46 }
 0x7df   :  { %11460 = vmatprep.subr.bf16.mxu1 %v14893_v63 }
 0x7e0   :  { %9812 = vmatprep.mubr.f32.mxu1 %v3749_v17 }
 0x7e1   :  { %9813 = vmatmul.mubr.f32.gmra.mrb[22].mxu1 %v3759_v22 }
 0x7e2   :  { %11462 = vmatpush3.bf16.msra.mxu1 %v14893_v63  ;;  %9847 = vmatprep.mubr.f32.mxu1 %v14957_v62  ;;  %v17278_v63 = vand.u32 4294901760, %v14773_v53  ;;  %v17282_v53 = vld [vmem:[#allocation23_spill] sm:$0xff] }
 0x7e3   :  { %11464 = vmatprep.subr.bf16.mxu1 %v14895_v60 }
 0x7e6   :  { %11466 = vmatpush3.bf16.msra.mxu1 %v14895_v60  ;;  %v17279_v60 = vand.u32 4294901760, %v14776_v43  ;;  %v17283_v43 = vand.u32 4294901760, %v17282_v53 }
 0x7e7   :  { %11468 = vmatprep.subr.bf16.mxu1 %v14899_v31 }
 0x7e9   :  { %9848 = vmatmul.mubr.f32.vlgmr.msra.gmra.mrb[16].mxu1 %v14951_v18 }
 0x7ea   :  { %9850 = vmatprep.mubr.f32.mxu1 %v14979_v45  ;;  %11470 = vmatpush3.bf16.msra.mxu1 %v14899_v31  ;;  %v11535_v31 = vpack.c.bf16 %v17279_v60, %v17278_v63 }
 0x7eb   :  { %11472 = vmatprep.subr.bf16.mxu1 %v14903_v5 }
 0x7ed   :  { %9851 = vmatmul.mubr.f32.gmra.mrb[18].mxu1 %v14977_v56 }
 0x7ee   :  { %9853 = vmatprep.mubr.f32.mxu1 %v15004_v10  ;;  %11474 = vmatpush3.bf16.msra.mxu1 %v14903_v5  ;;  %v11539_v5 = vpack.c.bf16 %v17281_v2, %v17280_v40 }
 0x7ef   :  { %11476 = vmatprep.subr.bf16.mxu1 %v14907_v58 }
 0x7f1   :  { %9854 = vmatmul.mubr.f32.gmra.mrb[20].mxu1 %v15001_v26 }
 0x7f2   :  { %9856 = vmatprep.mubr.f32.mxu1 %v15030_v48  ;;  %11478 = vmatpush3.bf16.msra.mxu1 %v14907_v58  ;;  %v11531_v58 = vpack.c.bf16 %v17277_v25, %v17276_v37 }
 0x7f3   :  { %11480 = vmatprep.subr.bf16.mxu1 %v14911_v28 }
 0x7f5   :  { %9857 = vmatmul.mubr.f32.gmra.mrb[22].mxu1 %v15027_v57 }
 0x7f6   :  { %11482 = vmatpush3.bf16.msra.mxu1 %v14911_v28  ;;  %9891 = vmatprep.mubr.f32.mxu1 %v14967_v50  ;;  %v17284_v28 = vld [vmem:[#allocation22_spill] sm:$0xff]  ;;  %v17290_v50 = vld [vmem:[#allocation25_spill] sm:$0xff] }
 0x7f7   :  { %11484 = vmatprep.subr.bf16.mxu1 %v14915_v13 }
 0x7fa   :  { %11486 = vmatpush3.bf16.msra.mxu1 %v14915_v13  ;;  %v17285_v13 = vand.u32 4294901760, %v17284_v28 }
 0x7fb   :  { %11488 = vmatprep.subr.bf16.mxu1 %v14919_v35 }
 0x7fe   :  { %11490 = vmatpush3.bf16.msra.mxu1 %v14919_v35  ;;  %v11543_v35 = vpack.c.bf16 %v17285_v13, %v17283_v43 }
 0x7ff   :  { %11492 = vmatprep.subr.bf16.mxu1 %v14923_v19 }
 0x802   :  { %11494 = vmatpush3.bf16.msra.mxu1 %v14923_v19  ;;  %v17288_v19 = vld [vmem:[#allocation24_spill] sm:$0xff] }
 0x803   :  { %11496 = vmatprep.subr.bf16.mxu1 %v14927_v49 }
 0x806   :  { %11498 = vmatpush3.bf16.msra.mxu1 %v14927_v49  ;;  %v17289_v49 = vand.u32 4294901760, %v17288_v19 }
 0x807   :  { %11500 = vmatprep.subr.bf16.mxu1 %v14668_v55 }
 0x809   :  { %9892 = vmatmul.mubr.f32.vlgmr.msra.gmra.mrb[16].mxu1 %v14962_v38  ;;  %v11547_v38 = vpack.c.bf16 %v17289_v49, %v17287_v32 }
 0x80a   :  { %9894 = vmatprep.mubr.f32.mxu1 %v14989_v0  ;;  %11502 = vmatpush3.bf16.msra.mxu1 %v14668_v55 }
 0x80b   :  { %11504 = vmatprep.subr.bf16.mxu1 %v14682_v41 }
 0x80d   :  { %9895 = vmatmul.mubr.f32.gmra.mrb[18].mxu1 %v14984_v24 }
 0x80e   :  { %9897 = vmatprep.mubr.f32.mxu1 %v15015_v47  ;;  %11506 = vmatpush3.bf16.msra.mxu1 %v14682_v41 }
 0x80f   :  { %11508 = vmatprep.subr.bf16.mxu1 %v14698_v44 }
 0x811   :  { %9898 = vmatmul.mubr.f32.gmra.mrb[20].mxu1 %v15010_v16  ;;  %v17296_v16 = vld [vmem:[#allocation28_spill] sm:$0xff] }
 0x812   :  { %9900 = vmatprep.mubr.f32.mxu1 %v15037_v4  ;;  %11510 = vmatpush3.bf16.msra.mxu1 %v14698_v44  ;;  %v17297_v27 = vand.u32 4294901760, %v17296_v16 }
 0x813   :  { %11512 = vmatprep.subr.bf16.mxu1 %v14710_v54 }
 0x815   :  { %9901 = vmatmul.mubr.f32.gmra.mrb[22].mxu1 %v15034_v3 }
 0x816   :  { %11514 = vmatpush3.bf16.msra.mxu1 %v14710_v54  ;;  %9935 = vmatprep.mubr.f32.mxu1 %v3687_v39  ;;  %v17292_v39 = vld [vmem:[#allocation26_spill] sm:$0xff] }
 0x817   :  { %11516 = vmatprep.subr.bf16.mxu1 %v14720_v9  ;;  %v17293_v24 = vand.u32 4294901760, %v17292_v39 }
 0x81a   :  { %11518 = vmatpush3.bf16.msra.mxu1 %v14720_v9 }
 0x81b   :  { %11520 = vmatprep.subr.bf16.mxu1 %v14730_v30 }
 0x81e   :  { %11522 = vmatpush3.bf16.msra.mxu1 %v14730_v30 }
 0x81f   :  { %11524 = vmatprep.subr.bf16.mxu1 %v14744_v14 }
 0x822   :  { %11526 = vmatpush3.bf16.msra.mxu1 %v14744_v14 }
 0x823   :  { %11528 = vmatprep.subr.bf16.mxu1 %v14764_v29 }
 0x826   :  { %11530 = vmatpush3.bf16.msra.mxu1 %v14764_v29 }
 0x827   :  { %11532 = vmatprep.subr.bf16.mxu1 %v11531_v58 }
 0x829   :  { %9936 = vmatmul.mubr.f32.vlgmr.msra.gmra.mrb[16].mxu1 %v3697_v21  ;;  %v17291_v21 = vand.u32 4294901760, %v17290_v50 }
 0x82a   :  { %9938 = vmatprep.mubr.f32.mxu1 %v3707_v42  ;;  %11534 = vmatpush3.bf16.msra.mxu1 %v11531_v58 }
 0x82b   :  { %11536 = vmatprep.subr.bf16.mxu1 %v11535_v31  ;;  %v11551_v0 = vpack.c.bf16 %v17293_v24, %v17291_v21 }
 0x82d   :  { %9939 = vmatmul.mubr.f32.gmra.mrb[18].mxu1 %v3717_v52  ;;  %v17294_v52 = vld [vmem:[#allocation27_spill] sm:$0xff] }
 0x82e   :  { %9941 = vmatprep.mubr.f32.mxu1 %v3727_v61  ;;  %11538 = vmatpush3.bf16.msra.mxu1 %v11535_v31  ;;  %v17295_v42 = vand.u32 4294901760, %v17294_v52  ;;  %v17301_v61 = vand.u32 4294901760, %v17300_v11 }
 0x82f   :  { %11540 = vmatprep.subr.bf16.mxu1 %v11539_v5 }
 0x830   :  { %v11555_v47 = vpack.c.bf16 %v17297_v27, %v17295_v42 }
 0x831   :  { %9942 = vmatmul.mubr.f32.gmra.mrb[20].mxu1 %v3737_v59  ;;  %v17299_v59 = vand.u32 4294901760, %v17298_v23 }
 0x832   :  { %9944 = vmatprep.mubr.f32.mxu1 %v3747_v8  ;;  %11542 = vmatpush3.bf16.msra.mxu1 %v11539_v5 }
 0x833   :  { %11544 = vmatprep.subr.bf16.mxu1 %v11543_v35  ;;  %v11559_v15 = vpack.c.bf16 %v17301_v61, %v17299_v59 }
 0x835   :  { %9945 = vmatmul.mubr.f32.gmra.mrb[22].mxu1 %v3757_v51 }
 0x836   :  { %11546 = vmatpush3.bf16.msra.mxu1 %v11543_v35  ;;  %9979 = vmatprep.mubr.f32.mxu1 %v14957_v62 }
 0x837   :  { %11548 = vmatprep.subr.bf16.mxu1 %v11547_v38 }
 0x83a   :  { %11550 = vmatpush3.bf16.msra.mxu1 %v11547_v38 }
 0x83b   :  { %11552 = vmatprep.subr.bf16.mxu1 %v11551_v0 }
 0x83e   :  { %11554 = vmatpush3.bf16.msra.mxu1 %v11551_v0 }
 0x83f   :  { %11556 = vmatprep.subr.bf16.mxu1 %v11555_v47 }
 0x842   :  { %11558 = vmatpush3.bf16.msra.mxu1 %v11555_v47 }
 0x843   :  { %11560 = vmatprep.subr.bf16.mxu1 %v11559_v15 }
 0x846   :  { %11562 = vmatpush3.bf16.msra.mxu1 %v11559_v15 }
 0x847   :  { %11564 = vmatprep.subr.bf16.mxu1 %v14668_v55 }
 0x849   :  { %9980 = vmatmul.mubr.f32.vlgmr.msra.gmra.mrb[16].mxu1 %v14951_v18 }
 0x84a   :  { %9982 = vmatprep.mubr.f32.mxu1 %v14979_v45  ;;  %11566 = vmatpush3.bf16.msra.mxu1 %v14668_v55  ;;  %v7965_v55 = vld [vmem:[%s16989_s4 + $0x1] ss:$0 sm:$0xff] }
 0x84b   :  { %11568 = vmatprep.subr.bf16.mxu1 %v14682_v41 }
 0x84d   :  { %9983 = vmatmul.mubr.f32.gmra.mrb[18].mxu1 %v14977_v56 }
 0x84e   :  { %9985 = vmatprep.mubr.f32.mxu1 %v15004_v10  ;;  %11570 = vmatpush3.bf16.msra.mxu1 %v14682_v41 }
 0x84f   :  { %11572 = vmatprep.subr.bf16.mxu1 %v14698_v44 }
 0x851   :  { %9986 = vmatmul.mubr.f32.gmra.mrb[20].mxu1 %v15001_v26 }
 0x852   :  { %9988 = vmatprep.mubr.f32.mxu1 %v15030_v48  ;;  %11574 = vmatpush3.bf16.msra.mxu1 %v14698_v44 }
 0x853   :  { %11576 = vmatprep.subr.bf16.mxu1 %v14710_v54 }
 0x855   :  { %9989 = vmatmul.mubr.f32.gmra.mrb[22].mxu1 %v15027_v57 }
 0x856   :  { %11578 = vmatpush3.bf16.msra.mxu1 %v14710_v54  ;;  %10023 = vmatprep.mubr.f32.mxu1 %v14957_v62 }
 0x857   :  { %11580 = vmatprep.subr.bf16.mxu1 %v14720_v9 }
 0x85a   :  { %11582 = vmatpush3.bf16.msra.mxu1 %v14720_v9 }
 0x85b   :  { %11584 = vmatprep.subr.bf16.mxu1 %v14730_v30 }
 0x85e   :  { %11586 = vmatpush3.bf16.msra.mxu1 %v14730_v30 }
 0x85f   :  { %11588 = vmatprep.subr.bf16.mxu1 %v14744_v14 }
 0x862   :  { %11590 = vmatpush3.bf16.msra.mxu1 %v14744_v14 }
 0x863   :  { %11592 = vmatprep.subr.bf16.mxu1 %v14764_v29 }
 0x866   :  { %11594 = vmatpush3.bf16.msra.mxu1 %v14764_v29 }
 0x869   :  { %10024 = vmatmul.mubr.f32.vlgmr.msra.gmra.mrb[16].mxu1 %v14951_v18 }
 0x86a   :  { %10026 = vmatprep.mubr.f32.mxu1 %v14979_v45 }
 0x86d   :  { %10027 = vmatmul.mubr.f32.gmra.mrb[18].mxu1 %v14977_v56 }
 0x86e   :  { %10029 = vmatprep.mubr.f32.mxu1 %v15004_v10 }
 0x871   :  { %10030 = vmatmul.mubr.f32.gmra.mrb[20].mxu1 %v15001_v26 }
 0x872   :  { %10032 = vmatprep.mubr.f32.mxu1 %v15030_v48 }
 0x875   :  { %10033 = vmatmul.mubr.f32.gmra.mrb[22].mxu1 %v15027_v57 }
 0x93c   :  { %v10025_v41 = vpop.f32.mrb[16].mxu1 }
 0x93d   :  { %v15185_v44 = vadd.f32 %v10025_v41, %v7965_v55  ;;  %v4500_v54 = vpop.f32.mrb[17].mxu1 }
 0x93e   :  { %v15187_v9 = vadd.f32 %v7965_v55, %v4500_v54 }
 0x93f   :  { %4548 = vadd.xlane.f32.xlu1 %v15185_v44  ;;  %v4563_v29 = vmul.f32 %v15185_v44, %v15185_v44 }
 0x940   :  { %v10028_v30 = vpop.f32.mrb[18].mxu1  ;;  %4546 = vadd.xlane.f32.xlu0 %v15187_v9  ;;  %v4562_v18 = vmul.f32 %v15187_v9, %v15187_v9 }
 0x941   :  { %v4512_v14 = vpop.f32.mrb[19].mxu1  ;;  %v15195_v56 = vadd.f32 %v10028_v30, %v7965_v55 }
 0x942   :  { %v15197_v26 = vadd.f32 %v7965_v55, %v4512_v14 }
 0x943   :  { %4572 = vadd.xlane.f32.xlu1 %v4563_v29  ;;  %v4565_v1 = vmul.f32 %v15195_v56, %v15195_v56 }
 0x944   :  { %v10031_v62 = vpop.f32.mrb[20].mxu1  ;;  %4570 = vadd.xlane.f32.xlu0 %v4562_v18  ;;  %v4564_v6 = vmul.f32 %v15197_v26, %v15197_v26 }
 0x945   :  { %v4524_v45 = vpop.f32.mrb[21].mxu1  ;;  %v15205_v34 = vadd.f32 %v10031_v62, %v7965_v55 }
 0x946   :  { %v15207_v57 = vadd.f32 %v7965_v55, %v4524_v45 }
 0x947   :  { %4552 = vadd.xlane.f32.xlu1 %v15195_v56  ;;  %v4567_v7 = vmul.f32 %v15205_v34, %v15205_v34 }
 0x948   :  { %v10034_v10 = vpop.f32.mrb[22].mxu1  ;;  %4550 = vadd.xlane.f32.xlu0 %v15197_v26  ;;  %v4566_v48 = vmul.f32 %v15207_v57, %v15207_v57 }
 0x949   :  { %v4536_v33 = vpop.f32.mrb[23].mxu1  ;;  %v15215_v36 = vadd.f32 %v10034_v10, %v7965_v55 }
 0x94a   :  { %v15217_v3 = vadd.f32 %v7965_v55, %v4536_v33 }
 0x94b   :  { %4576 = vadd.xlane.f32.xlu1 %v4565_v1  ;;  %v4569_v4 = vmul.f32 %v15215_v36, %v15215_v36 }
 0x94c   :  { %4574 = vadd.xlane.f32.xlu0 %v4564_v6  ;;  %v4568_v51 = vmul.f32 %v15217_v3, %v15217_v3 }
 0x94f   :  { %4556 = vadd.xlane.f32.xlu1 %v15205_v34 }
 0x950   :  { %4554 = vadd.xlane.f32.xlu0 %v15207_v57 }
 0x953   :  { %4580 = vadd.xlane.f32.xlu1 %v4567_v7 }
 0x954   :  { %4578 = vadd.xlane.f32.xlu0 %v4566_v48 }
 0x957   :  { %4560 = vadd.xlane.f32.xlu1 %v15215_v36 }
 0x958   :  { %4558 = vadd.xlane.f32.xlu0 %v15217_v3 }
 0x95b   :  { %4584 = vadd.xlane.f32.xlu1 %v4569_v4 }
 0x95c   :  { %4582 = vadd.xlane.f32.xlu0 %v4568_v51  ;;  %v17302_v51 = vld [vmem:[#allocation31_spill] sm:$0xff] }
 0x9cc   :  { %v4549_v8 = vpop.xlane.xlu1 %4548 }
 0x9cd   :  { %v4587_v12 = vmul.f32 0.0078125, %v4549_v8  ;;  %v4547_v20 = vpop.xlane.xlu0 %4546 }
 0x9ce   :  { %v4586_v17 = vmul.f32 0.0078125, %v4547_v20  ;;  %v17303_v20 = vld [vmem:[#allocation32_spill] sm:$0xff] }
 0x9cf   :  { %v4603_v37 = vmul.f32 %v4587_v12, %v4587_v12  ;;  %v4627_v41 = vsub.f32 %v15185_v44, %v4587_v12 }
 0x9d0   :  { %v4573_v22 = vpop.xlane.xlu1 %4572  ;;  %v4602_v63 = vmul.f32 %v4586_v17, %v4586_v17  ;;  %v4626_v29 = vsub.f32 %v15187_v9, %v4586_v17 }
 0x9d1   :  { %v4595_v25 = vmul.f32 0.0078125, %v4573_v22  ;;  %v4571_v58 = vpop.xlane.xlu0 %4570 }
 0x9d2   :  { %v4594_v60 = vmul.f32 0.0078125, %v4571_v58 }
 0x9d3   :  { %v4611_v31 = vsub.f32 %v4595_v25, %v4603_v37 }
 0x9d4   :  { %v4610_v40 = vsub.f32 %v4594_v60, %v4602_v63  ;;  %v4553_v2 = vpop.xlane.xlu1 %4552 }
 0x9d5   :  { %v4619_v5 = vmax.f32 %v4611_v31, 0.0  ;;  %v15225_v53 = vmul.f32 0.0078125, %v4553_v2  ;;  %v4551_v43 = vpop.xlane.xlu0 %4550 }
 0x9d6   :  { %v4618_v28 = vmax.f32 %v4610_v40, 0.0  ;;  %v15227_v13 = vmul.f32 0.0078125, %v4551_v43 }
 0x9d7   :  { %v4635_v35 = vadd.f32 1e-05, %v4619_v5  ;;  %v4605_v19 = vmul.f32 %v15225_v53, %v15225_v53  ;;  %v4629_v31 = vsub.f32 %v15195_v56, %v15225_v53 }
 0x9d8   :  { %v4634_v46 = vadd.f32 1e-05, %v4618_v28  ;;  %v4577_v32 = vpop.xlane.xlu1 %4576  ;;  %v4604_v50 = vmul.f32 %v15227_v13, %v15227_v13  ;;  %v4628_v43 = vsub.f32 %v15197_v26, %v15227_v13  ;;  %v17305_v26 = vld [vmem:[#allocation16_spill] sm:$0xff] }
 0x9d9   :  { %12594 = vrsqrt.f32 %v4635_v35  ;;  %v4597_v49 = vmul.f32 0.0078125, %v4577_v32  ;;  %v4575_v38 = vpop.xlane.xlu0 %4574 }
 0x9da   :  { %12596 = vrsqrt.f32 %v4634_v46  ;;  %v4596_v21 = vmul.f32 0.0078125, %v4575_v38 }
 0x9db   :  { %v4613_v39 = vsub.f32 %v4597_v49, %v4605_v19 }
 0x9dc   :  { %v4612_v24 = vsub.f32 %v4596_v21, %v4604_v50  ;;  %v4557_v0 = vpop.xlane.xlu1 %4556  ;;  %v17304_v50 = vld [vmem:[#allocation17_spill] sm:$0xff] }
 0x9dd   :  { %v4621_v52 = vmax.f32 %v4613_v39, 0.0  ;;  %v15233_v42 = vmul.f32 0.0078125, %v4557_v0  ;;  %v4555_v16 = vpop.xlane.xlu0 %4554 }
 0x9de   :  { %v4620_v27 = vmax.f32 %v4612_v24, 0.0  ;;  %v15235_v47 = vmul.f32 0.0078125, %v4555_v16 }
 0x9df   :  { %v4637_v23 = vadd.f32 1e-05, %v4621_v52  ;;  %v4607_v61 = vmul.f32 %v15233_v42, %v15233_v42  ;;  %v4631_v16 = vsub.f32 %v15205_v34, %v15233_v42  ;;  %v17306_v34 = vld [vmem:[#allocation19_spill] sm:$0xff] }
 0x9e0   :  { %v4636_v59 = vadd.f32 1e-05, %v4620_v27  ;;  %v4581_v11 = vpop.xlane.xlu1 %4580  ;;  %v4606_v54 = vmul.f32 %v15235_v47, %v15235_v47 }
 0x9e1   :  { %12598 = vrsqrt.f32 %v4637_v23  ;;  %v4599_v15 = vmul.f32 0.0078125, %v4581_v11  ;;  %v4579_v55 = vpop.xlane.xlu0 %4578  ;;  %v4630_v23 = vsub.f32 %v15207_v57, %v15235_v47  ;;  %v15287_v57 = vld [vmem:[#allocation5 + $0x108] sm:$0xff] }
 0x9e2   :  { %12600 = vrsqrt.f32 %v4636_v59  ;;  %v4598_v30 = vmul.f32 0.0078125, %v4579_v55 }
 0x9e3   :  { %v12595_v14 = vpop.eup %12594  ;;  %v4615_v18 = vsub.f32 %v4599_v15, %v4607_v61 }
 0x9e4   :  { %v12597_v62 = vpop.eup %12596  ;;  %v4614_v45 = vsub.f32 %v4598_v30, %v4606_v54  ;;  %v4561_v10 = vpop.xlane.xlu1 %4560  ;;  %v4651_v33 = vmul.f32 %v12595_v14, %v4627_v41  ;;  %v17307_v41 = vld [vmem:[#allocation18_spill] sm:$0xff]  ;;  %v15285_v30 = vld [vmem:[#allocation5 + $0x100] sm:$0xff] }
 0x9e5   :  { %v4623_v1 = vmax.f32 %v4615_v18, 0.0  ;;  %v15243_v6 = vmul.f32 0.0078125, %v4561_v10  ;;  %v4559_v7 = vpop.xlane.xlu0 %4558  ;;  %v4650_v48 = vmul.f32 %v12597_v62, %v4626_v29  ;;  %v4812_v14 = vand.u32 4294901760, %v15285_v30 }
 0x9e6   :  { %v4622_v4 = vmax.f32 %v4614_v45, 0.0  ;;  %v15245_v44 = vmul.f32 0.0078125, %v4559_v7  ;;  %v4659_v8 = vadd.f32 %v4651_v33, %v17302_v51  ;;  %v4815_v29 = vand.u32 4294901760, %v15287_v57  ;;  %v15309_v7 = vld [vmem:[#allocation5 + $0x118] sm:$0xff] }
 0x9e7   :  { %v4639_v12 = vadd.f32 1e-05, %v4623_v1  ;;  %v4658_v22 = vadd.f32 %v4650_v48, %v17303_v20  ;;  %v4609_v25 = vmul.f32 %v15243_v6, %v15243_v6  ;;  %v4633_v62 = vsub.f32 %v15215_v36, %v15243_v6  ;;  %v15307_v1 = vld [vmem:[#allocation5 + $0x110] sm:$0xff] }
 0x9e8   :  { %v4638_v37 = vadd.f32 1e-05, %v4622_v4  ;;  %v4585_v9 = vpop.xlane.xlu1 %4584  ;;  %v15249_v17 = vmax.f32 %v4659_v8, 0.0  ;;  %v4608_v40 = vmul.f32 %v15245_v44, %v15245_v44  ;;  %v15302_v45 = vpack.c.bf16 %v4815_v29, %v4812_v14  ;;  %v17308_v8 = vld [vmem:[#allocation21_spill] sm:$0xff] }
 0x9e9   :  { %12602 = vrsqrt.f32 %v4639_v12  ;;  %v4601_v58 = vmul.f32 0.0078125, %v4585_v9  ;;  %v4583_v63 = vpop.xlane.xlu0 %4582  ;;  %v15253_v60 = vmax.f32 %v4658_v22, 0.0  ;;  %v4632_v33 = vsub.f32 %v15217_v3, %v15245_v44  ;;  %v17309_v22 = vld [vmem:[#allocation20_spill] sm:$0xff]  ;;  %v15327_v9 = vld [vmem:[#allocation5 + $0x120] sm:$0xff] }
 0x9ea   :  { %12604 = vrsqrt.f32 %v4638_v37  ;;  %v4600_v2 = vmul.f32 0.0078125, %v4583_v63  ;;  %4676 = vadd.xlane.f32.xlu1 %v15249_v17  ;;  %v4691_v32 = vmul.f32 %v15249_v17, %v15249_v17  ;;  %11596 = vmatprep.subr.bf16.mxu0 %v15302_v45  ;;  %v4818_v4 = vand.u32 4294901760, %v15307_v1 }
 0x9eb   :  { %v12599_v5 = vpop.eup %12598  ;;  %v4617_v28 = vsub.f32 %v4601_v58, %v4609_v25  ;;  %4674 = vadd.xlane.f32.xlu0 %v15253_v60  ;;  %v4690_v19 = vmul.f32 %v15253_v60, %v15253_v60  ;;  %v4821_v51 = vand.u32 4294901760, %v15309_v7  ;;  %11598 = vmatpush3.bf16.msra.mxu0 %v15302_v45  ;;  %v15329_v25 = vld [vmem:[#allocation5 + $0x128] sm:$0xff]  ;;  %v4824_v63 = vand.u32 4294901760, %v15327_v9 }
 0x9ec   :  { %v12601_v35 = vpop.eup %12600  ;;  %v4616_v46 = vsub.f32 %v4600_v2, %v4608_v40  ;;  %v4653_v56 = vmul.f32 %v12599_v5, %v4629_v31  ;;  %v4827_v31 = vand.u32 4294901760, %v15329_v25  ;;  %v15347_v5 = vld [vmem:[#allocation5 + $0x130] sm:$0xff] }
 0x9ed   :  { %v4625_v53 = vmax.f32 %v4617_v28, 0.0  ;;  %v4652_v49 = vmul.f32 %v12601_v35, %v4628_v43  ;;  %v15324_v20 = vpack.c.bf16 %v4821_v51, %v4818_v4  ;;  %v15349_v43 = vld [vmem:[#allocation5 + $0x138] sm:$0xff]  ;;  %v4830_v35 = vand.u32 4294901760, %v15347_v5 }
 0x9ee   :  { %v4624_v38 = vmax.f32 %v4616_v46, 0.0  ;;  %4700 = vadd.xlane.f32.xlu1 %v4691_v32  ;;  %v4661_v21 = vadd.f32 %v4653_v56, %v17304_v50  ;;  %v15344_v2 = vpack.c.bf16 %v4827_v31, %v4824_v63  ;;  %v4833_v46 = vand.u32 4294901760, %v15349_v43 }
 0x9ef   :  { %v4641_v39 = vadd.f32 1e-05, %v4625_v53  ;;  %4698 = vadd.xlane.f32.xlu0 %v4690_v19  ;;  %v4660_v13 = vadd.f32 %v4652_v49, %v17305_v26  ;;  %11600 = vmatprep.subr.bf16.mxu0 %v15324_v20  ;;  %v15361_v53 = vld [vmem:[#allocation5 + $0x140] sm:$0xff]  ;;  %v15363_v19 = vld [vmem:[#allocation5 + $0x148] sm:$0xff] }
 0x9f0   :  { %v4640_v24 = vadd.f32 1e-05, %v4624_v38  ;;  %v15269_v0 = vmax.f32 %v4661_v21, 0.0  ;;  %11602 = vmatpush3.bf16.msra.mxu0 %v15324_v20  ;;  %v15359_v56 = vpack.c.bf16 %v4833_v46, %v4830_v35  ;;  %v4836_v49 = vand.u32 4294901760, %v15361_v53  ;;  %v15371_v21 = vld [vmem:[#allocation5 + $0x150] sm:$0xff] }
 0x9f1   :  { %12606 = vrsqrt.f32 %v4641_v39  ;;  %v15271_v52 = vmax.f32 %v4660_v13, 0.0  ;;  %11604 = vmatprep.subr.bf16.mxu0 %v15344_v2  ;;  %v4839_v38 = vand.u32 4294901760, %v15363_v19  ;;  %v15373_v39 = vld [vmem:[#allocation5 + $0x158] sm:$0xff]  ;;  %v4842_v26 = vand.u32 4294901760, %v15371_v21 }
 0x9f2   :  { %12608 = vrsqrt.f32 %v4640_v24  ;;  %4680 = vadd.xlane.f32.xlu1 %v15269_v0  ;;  %v4693_v11 = vmul.f32 %v15269_v0, %v15269_v0  ;;  %v4845_v13 = vand.u32 4294901760, %v15373_v39 }
 0x9f3   :  { %v12603_v27 = vpop.eup %12602  ;;  %4678 = vadd.xlane.f32.xlu0 %v15271_v52  ;;  %v4692_v15 = vmul.f32 %v15271_v52, %v15271_v52  ;;  %v15369_v50 = vpack.c.bf16 %v4839_v38, %v4836_v49 }
 0x9f4   :  { %v12605_v59 = vpop.eup %12604  ;;  %v4655_v61 = vmul.f32 %v12603_v27, %v4631_v16  ;;  %11606 = vmatpush3.bf16.msra.mxu0 %v15344_v2  ;;  %v15379_v24 = vpack.c.bf16 %v4845_v13, %v4842_v26  ;;  %v15381_v16 = vld [vmem:[#allocation5 + $0x160] sm:$0xff]  ;;  %v15383_v27 = vld [vmem:[#allocation5 + $0x168] sm:$0xff] }
 0x9f5   :  { %v4654_v55 = vmul.f32 %v12605_v59, %v4630_v23  ;;  %11608 = vmatprep.subr.bf16.mxu0 %v15359_v56  ;;  %v4848_v23 = vand.u32 4294901760, %v15381_v16  ;;  %v4851_v59 = vand.u32 4294901760, %v15383_v27 }
 0x9f6   :  { %4704 = vadd.xlane.f32.xlu1 %v4693_v11  ;;  %v4663_v42 = vadd.f32 %v4655_v61, %v17306_v34  ;;  %v15398_v61 = vsub.f32 %v15285_v30, %v4812_v14  ;;  %v15407_v34 = vld [vmem:[#allocation5 + $0x178] sm:$0xff] }
 0x9f7   :  { %4702 = vadd.xlane.f32.xlu0 %v4692_v15  ;;  %v4662_v54 = vadd.f32 %v4654_v55, %v17307_v41  ;;  %v15393_v11 = vpack.c.bf16 %v4851_v59, %v4848_v23  ;;  %v15403_v15 = vsub.f32 %v15287_v57, %v4815_v29  ;;  %v15405_v55 = vld [vmem:[#allocation5 + $0x170] sm:$0xff]  ;;  %v4857_v41 = vand.u32 4294901760, %v15407_v34 }
 0x9f8   :  { %v15289_v47 = vmax.f32 %v4663_v42, 0.0  ;;  %11610 = vmatpush3.bf16.msra.mxu0 %v15359_v56  ;;  %v4854_v42 = vand.u32 4294901760, %v15405_v55 }
 0x9f9   :  { %v15293_v18 = vmax.f32 %v4662_v54, 0.0  ;;  %11612 = vmatprep.subr.bf16.mxu0 %v15369_v50  ;;  %v17101_v54 = vand.u32 4294901760, %v15398_v61  ;;  %v17100_v30 = vand.u32 4294901760, %v15403_v15 }
 0x9fa   :  { %4684 = vadd.xlane.f32.xlu1 %v15289_v47  ;;  %v4695_v36 = vmul.f32 %v15289_v47, %v15289_v47  ;;  %v15419_v57 = vpack.c.bf16 %v4857_v41, %v4854_v42 }
 0x9fb   :  { %v12607_v10 = vpop.eup %12606  ;;  %4682 = vadd.xlane.f32.xlu0 %v15293_v18  ;;  %v4694_v3 = vmul.f32 %v15293_v18, %v15293_v18  ;;  %v4976_v14 = vsub.f32 %v15398_v61, %v17101_v54  ;;  %v4983_v29 = vsub.f32 %v15403_v15, %v17100_v30 }
 0x9fc   :  { %v12609_v48 = vpop.eup %12608  ;;  %v4657_v6 = vmul.f32 %v12607_v10, %v4633_v62  ;;  %11614 = vmatpush3.bf16.msra.mxu0 %v15369_v50  ;;  %v15430_v62 = vsub.f32 %v15307_v1, %v4818_v4  ;;  %v15435_v10 = vsub.f32 %v15309_v7, %v4821_v51  ;;  %v15452_v4 = vsub.f32 %v15327_v9, %v4824_v63 }
 0x9fd   :  { %v4656_v44 = vmul.f32 %v12609_v48, %v4632_v33  ;;  %11616 = vmatprep.subr.bf16.mxu0 %v15379_v24  ;;  %v4977_v33 = vand.u32 4294901760, %v4976_v14  ;;  %v4984_v48 = vand.u32 4294901760, %v4983_v29  ;;  %v15457_v51 = vsub.f32 %v15329_v25, %v4827_v31 }
 0x9fe   :  { %4708 = vadd.xlane.f32.xlu1 %v4695_v36  ;;  %v4665_v12 = vadd.f32 %v4657_v6, %v17308_v8  ;;  %v17099_v36 = vand.u32 4294901760, %v15430_v62  ;;  %v17098_v6 = vand.u32 4294901760, %v15435_v10  ;;  %v15471_v25 = vsub.f32 %v15347_v5, %v4830_v35 }
 0x9ff   :  { %4706 = vadd.xlane.f32.xlu0 %v4694_v3  ;;  %v4664_v37 = vadd.f32 %v4656_v44, %v17309_v22  ;;  %v15441_v3 = vpack.c.bf16 %v4984_v48, %v4977_v33  ;;  %v17096_v22 = vand.u32 4294901760, %v15457_v51  ;;  %v15474_v31 = vsub.f32 %v15349_v43, %v4833_v46 }
 0xa00   :  { %v15331_v58 = vmax.f32 %v4665_v12, 0.0  ;;  %11618 = vmatpush3.bf16.msra.mxu0 %v15379_v24  ;;  %v4990_v1 = vsub.f32 %v15430_v62, %v17099_v36  ;;  %v4997_v7 = vsub.f32 %v15435_v10, %v17098_v6  ;;  %v17097_v12 = vand.u32 4294901760, %v15452_v4 }
 0xa01   :  { %v15336_v40 = vmax.f32 %v4664_v37, 0.0  ;;  %11620 = vmatprep.subr.bf16.mxu0 %v15393_v11  ;;  %v5011_v63 = vsub.f32 %v15457_v51, %v17096_v22  ;;  %v17095_v14 = vand.u32 4294901760, %v15471_v25  ;;  %v17094_v29 = vand.u32 4294901760, %v15474_v31 }
 0xa02   :  { %4688 = vadd.xlane.f32.xlu1 %v15331_v58  ;;  %v4697_v28 = vmul.f32 %v15331_v58, %v15331_v58  ;;  %v4991_v44 = vand.u32 4294901760, %v4990_v1  ;;  %v4998_v8 = vand.u32 4294901760, %v4997_v7  ;;  %v5004_v9 = vsub.f32 %v15452_v4, %v17097_v12 }
 0xa03   :  { %4686 = vadd.xlane.f32.xlu0 %v15336_v40  ;;  %v4696_v32 = vmul.f32 %v15336_v40, %v15336_v40  ;;  %v5018_v48 = vsub.f32 %v15471_v25, %v17095_v14  ;;  %v15484_v1 = vsub.f32 %v15361_v53, %v4836_v49  ;;  %v15487_v5 = vsub.f32 %v15363_v19, %v4839_v38 }
 0xa04   :  { %11622 = vmatpush3.bf16.msra.mxu0 %v15393_v11  ;;  %v15462_v37 = vpack.c.bf16 %v4998_v8, %v4991_v44  ;;  %v5025_v43 = vsub.f32 %v15474_v31, %v17094_v29  ;;  %v15501_v19 = vsub.f32 %v15371_v21, %v4842_v26  ;;  %v15504_v49 = vsub.f32 %v15373_v39, %v4845_v13 }
 0xa05   :  { %11624 = vmatprep.subr.bf16.mxu0 %v15419_v57  ;;  %17310 = vst [vmem:[#allocation23_spill] sm:$0xff] %v15484_v1  ;;  %17311 = vst [vmem:[#allocation22_spill] sm:$0xff] %v15487_v5  ;;  %v5019_v35 = vand.u32 4294901760, %v5018_v48  ;;  %v17093_v46 = vand.u32 4294901760, %v15484_v1  ;;  %v17092_v7 = vand.u32 4294901760, %v15487_v5  ;;  %v15521_v39 = vsub.f32 %v15381_v16, %v4848_v23 }
 0xa06   :  { %4712 = vadd.xlane.f32.xlu1 %v4697_v28  ;;  %v5005_v28 = vand.u32 4294901760, %v5004_v9  ;;  %v5026_v44 = vand.u32 4294901760, %v5025_v43  ;;  %17312 = vst [vmem:[#allocation15_spill] sm:$0xff] %v15501_v19  ;;  %17313 = vst [vmem:[#allocation24_spill] sm:$0xff] %v15504_v49  ;;  %v15526_v26 = vsub.f32 %v15383_v27, %v4851_v59  ;;  %v15538_v16 = vsub.f32 %v15405_v55, %v4854_v42 }
 0xa07   :  { %4710 = vadd.xlane.f32.xlu0 %v4696_v32  ;;  %v5012_v32 = vand.u32 4294901760, %v5011_v63  ;;  %v5032_v8 = vsub.f32 %v15484_v1, %v17093_v46  ;;  %v5039_v53 = vsub.f32 %v15487_v5, %v17092_v7  ;;  %17314 = vst [vmem:[#allocation25_spill] sm:$0xff] %v15521_v39  ;;  %v15543_v27 = vsub.f32 %v15407_v34, %v4857_v41 }
 0xa08   :  { %11626 = vmatpush3.bf16.msra.mxu0 %v15419_v57  ;;  %v15506_v38 = vpack.c.bf16 %v5026_v44, %v5019_v35  ;;  %17315 = vst [vmem:[#allocation26_spill] sm:$0xff] %v15526_v26  ;;  %v17089_v44 = vand.u32 4294901760, %v15521_v39  ;;  %17316 = vst [vmem:[#allocation27_spill] sm:$0xff] %v15538_v16 }
 0xa09   :  { %11628 = vmatprep.subr.bf16.mxu0 %v15441_v3  ;;  %v15478_v33 = vpack.c.bf16 %v5012_v32, %v5005_v28  ;;  %v5033_v9 = vand.u32 4294901760, %v5032_v8  ;;  %v5040_v63 = vand.u32 4294901760, %v5039_v53  ;;  %v17091_v28 = vand.u32 4294901760, %v15501_v19  ;;  %17317 = vst [vmem:[#allocation28_spill] sm:$0xff] %v15543_v27 }
 0xa0a   :  { %v17090_v32 = vand.u32 4294901760, %v15504_v49  ;;  %v17088_v8 = vand.u32 4294901760, %v15526_v26 }
 0xa0b   :  { %v15510_v48 = vpack.c.bf16 %v5040_v63, %v5033_v9  ;;  %v5046_v43 = vsub.f32 %v15501_v19, %v17091_v28  ;;  %v5060_v9 = vsub.f32 %v15521_v39, %v17089_v44  ;;  %v17086_v63 = vand.u32 4294901760, %v15538_v16 }
 0xa0c   :  { %v5053_v21 = vsub.f32 %v15504_v49, %v17090_v32  ;;  %v5067_v23 = vsub.f32 %v15526_v26, %v17088_v8 }
 0xa0d   :  { %v5047_v13 = vand.u32 4294901760, %v5046_v43  ;;  %v5061_v59 = vand.u32 4294901760, %v5060_v9  ;;  %v17087_v43 = vand.u32 4294901760, %v15543_v27  ;;  %v5074_v55 = vsub.f32 %v15538_v16, %v17086_v63 }
 0xa0e   :  { %v5054_v35 = vand.u32 4294901760, %v5053_v21  ;;  %v5068_v21 = vand.u32 4294901760, %v5067_v23  ;;  %v15562_v9 = vpack.c.bf16 %v15403_v15, %v15398_v61  ;;  %v15566_v23 = vpack.c.bf16 %v15435_v10, %v15430_v62 }
 0xa0f   :  { %v5081_v42 = vsub.f32 %v15543_v27, %v17087_v43  ;;  %v5075_v41 = vand.u32 4294901760, %v5074_v55  ;;  %v15570_v63 = vpack.c.bf16 %v15457_v51, %v15452_v4  ;;  %v15582_v55 = vpack.c.bf16 %v15504_v49, %v15501_v19 }
 0xa10   :  { %v15530_v53 = vpack.c.bf16 %v5054_v35, %v5047_v13  ;;  %v15556_v34 = vpack.c.bf16 %v5068_v21, %v5061_v59  ;;  %v15574_v59 = vpack.c.bf16 %v15474_v31, %v15471_v25  ;;  %v15578_v21 = vpack.c.bf16 %v15487_v5, %v15484_v1 }
 0xa11   :  { %v5082_v13 = vand.u32 4294901760, %v5081_v42  ;;  %v15586_v42 = vpack.c.bf16 %v15526_v26, %v15521_v39 }
 0xa13   :  { %v15558_v35 = vpack.c.bf16 %v5082_v13, %v5075_v41  ;;  %v15590_v41 = vpack.c.bf16 %v15543_v27, %v15538_v16 }
 0xa77   :  { %v4677_v13 = vpop.xlane.xlu1 %4676 }
 0xa78   :  { %v4715_v43 = vmul.f32 0.0078125, %v4677_v13  ;;  %v4675_v8 = vpop.xlane.xlu0 %4674 }
 0xa79   :  { %v4714_v44 = vmul.f32 0.0078125, %v4675_v8 }
 0xa7a   :  { %v4731_v28 = vmul.f32 %v4715_v43, %v4715_v43 }
 0xa7b   :  { %v4701_v32 = vpop.xlane.xlu1 %4700  ;;  %v4730_v29 = vmul.f32 %v4714_v44, %v4714_v44 }
 0xa7c   :  { %v4723_v7 = vmul.f32 0.0078125, %v4701_v32  ;;  %v4699_v46 = vpop.xlane.xlu0 %4698 }
 0xa7d   :  { %v4722_v14 = vmul.f32 0.0078125, %v4699_v46 }
 0xa7e   :  { %v4739_v22 = vsub.f32 %v4723_v7, %v4731_v28 }
 0xa7f   :  { %v4738_v12 = vsub.f32 %v4722_v14, %v4730_v29  ;;  %v4681_v6 = vpop.xlane.xlu1 %4680 }
 0xa80   :  { %v4747_v36 = vmax.f32 %v4739_v22, 0.0  ;;  %v15592_v30 = vmul.f32 0.0078125, %v4681_v6  ;;  %v4679_v54 = vpop.xlane.xlu0 %4678 }
 0xa81   :  { %v4746_v26 = vmax.f32 %v4738_v12, 0.0  ;;  %v15594_v27 = vmul.f32 0.0078125, %v4679_v54 }
 0xa82   :  { %v4763_v16 = vadd.f32 1e-05, %v4747_v36  ;;  %v4733_v32 = vmul.f32 %v15592_v30, %v15592_v30 }
 0xa83   :  { %v4762_v13 = vadd.f32 1e-05, %v4746_v26  ;;  %v4705_v39 = vpop.xlane.xlu1 %4704  ;;  %v4732_v14 = vmul.f32 %v15594_v27, %v15594_v27 }
 0xa84   :  { %12610 = vrsqrt.f32 %v4763_v16  ;;  %v4725_v8 = vmul.f32 0.0078125, %v4705_v39  ;;  %v4703_v49 = vpop.xlane.xlu0 %4702 }
 0xa85   :  { %12612 = vrsqrt.f32 %v4762_v13  ;;  %v4724_v22 = vmul.f32 0.0078125, %v4703_v49  ;;  %v4755_v49 = vsub.f32 %v15249_v17, %v4715_v43 }
 0xa86   :  { %v4741_v6 = vsub.f32 %v4725_v8, %v4733_v32 }
 0xa87   :  { %v4740_v29 = vsub.f32 %v4724_v22, %v4732_v14  ;;  %v4685_v46 = vpop.xlane.xlu1 %4684  ;;  %v4754_v22 = vsub.f32 %v15253_v60, %v4714_v44  ;;  %v4757_v44 = vsub.f32 %v15269_v0, %v15592_v30 }
 0xa88   :  { %v4749_v12 = vmax.f32 %v4741_v6, 0.0  ;;  %v15600_v54 = vmul.f32 0.0078125, %v4685_v46  ;;  %v4683_v36 = vpop.xlane.xlu0 %4682 }
 0xa89   :  { %v4748_v7 = vmax.f32 %v4740_v29, 0.0  ;;  %v15602_v28 = vmul.f32 0.0078125, %v4683_v36 }
 0xa8a   :  { %v4765_v26 = vadd.f32 1e-05, %v4749_v12  ;;  %v4735_v39 = vmul.f32 %v15600_v54, %v15600_v54 }
 0xa8b   :  { %v4764_v16 = vadd.f32 1e-05, %v4748_v7  ;;  %v4709_v19 = vpop.xlane.xlu1 %4708  ;;  %v4734_v32 = vmul.f32 %v15602_v28, %v15602_v28 }
 0xa8c   :  { %12614 = vrsqrt.f32 %v4765_v26  ;;  %v4727_v13 = vmul.f32 0.0078125, %v4709_v19  ;;  %v4707_v5 = vpop.xlane.xlu0 %4706 }
 0xa8d   :  { %12616 = vrsqrt.f32 %v4764_v16  ;;  %v4726_v8 = vmul.f32 0.0078125, %v4707_v5 }
 0xa8e   :  { %v12611_v14 = vpop.eup %12610  ;;  %v4743_v6 = vsub.f32 %v4727_v13, %v4735_v39 }
 0xa8f   :  { %v12613_v29 = vpop.eup %12612  ;;  %v15610_v46 = vmul.f32 %v12611_v14, %v4755_v49  ;;  %v4742_v12 = vsub.f32 %v4726_v8, %v4734_v32  ;;  %v4689_v36 = vpop.xlane.xlu1 %4688 }
 0xa90   :  { %v4751_v7 = vmax.f32 %v4743_v6, 0.0  ;;  %v15612_v26 = vmul.f32 0.0078125, %v4689_v36  ;;  %v4687_v19 = vpop.xlane.xlu0 %4686  ;;  %v15614_v1 = vmul.f32 %v12613_v29, %v4754_v22 }
 0xa91   :  { %17318 = vst [vmem:[#allocation29_spill] sm:$0xff] %v15610_v46  ;;  %v15617_v17 = vand.u32 4294901760, %v15610_v46  ;;  %v4750_v43 = vmax.f32 %v4742_v12, 0.0  ;;  %v15619_v5 = vmul.f32 0.0078125, %v4687_v19  ;;  %v4756_v12 = vsub.f32 %v15271_v52, %v15594_v27 }
 0xa92   :  { %17319 = vst [vmem:[#allocation30_spill] sm:$0xff] %v15614_v1  ;;  %v4767_v16 = vadd.f32 1e-05, %v4751_v7  ;;  %v15622_v60 = vand.u32 4294901760, %v15614_v1  ;;  %v4737_v32 = vmul.f32 %v15612_v26, %v15612_v26 }
 0xa93   :  { %v4766_v39 = vadd.f32 1e-05, %v4750_v43  ;;  %v4713_v13 = vpop.xlane.xlu1 %4712  ;;  %v15628_v49 = vsub.f32 %v15610_v46, %v15617_v17  ;;  %v4736_v0 = vmul.f32 %v15619_v5, %v15619_v5 }
 0xa94   :  { %12618 = vrsqrt.f32 %v4767_v16  ;;  %v4729_v8 = vmul.f32 0.0078125, %v4713_v13  ;;  %v4711_v14 = vpop.xlane.xlu0 %4710  ;;  %v15634_v22 = vsub.f32 %v15614_v1, %v15622_v60 }
 0xa95   :  { %12620 = vrsqrt.f32 %v4766_v39  ;;  %v4728_v30 = vmul.f32 0.0078125, %v4711_v14  ;;  %v4904_v6 = vand.u32 4294901760, %v15628_v49 }
 0xa96   :  { %v12615_v29 = vpop.eup %12614  ;;  %v4745_v36 = vsub.f32 %v4729_v8, %v4737_v32  ;;  %v4894_v7 = vand.u32 4294901760, %v15634_v22 }
 0xa97   :  { %v12617_v19 = vpop.eup %12616  ;;  %v4744_v43 = vsub.f32 %v4728_v30, %v4736_v0  ;;  %v4905_v16 = vsub.f32 %v15628_v49, %v4904_v6  ;;  %v15645_v39 = vmul.f32 %v12615_v29, %v4757_v44 }
 0xa98   :  { %v4753_v13 = vmax.f32 %v4745_v36, 0.0  ;;  %v4895_v14 = vsub.f32 %v15634_v22, %v4894_v7  ;;  %v15650_v1 = vmul.f32 %v12617_v19, %v4756_v12  ;;  %v4759_v12 = vsub.f32 %v15289_v47, %v15600_v54 }
 0xa99   :  { %17320 = vst [vmem:[#allocation31_spill] sm:$0xff] %v15645_v39  ;;  %v4752_v46 = vmax.f32 %v4744_v43, 0.0  ;;  %v15653_v52 = vand.u32 4294901760, %v15645_v39  ;;  %v4906_v30 = vand.u32 4294901760, %v4905_v16 }
 0xa9a   :  { %17321 = vst [vmem:[#allocation32_spill] sm:$0xff] %v15650_v1  ;;  %v4769_v27 = vadd.f32 1e-05, %v4753_v13  ;;  %v4896_v32 = vand.u32 4294901760, %v4895_v14  ;;  %v15656_v8 = vand.u32 4294901760, %v15650_v1 }
 0xa9b   :  { %v4768_v0 = vadd.f32 1e-05, %v4752_v46  ;;  %v15660_v44 = vsub.f32 %v15645_v39, %v15653_v52  ;;  %v4758_v46 = vsub.f32 %v15293_v18, %v15602_v28 }
 0xa9c   :  { %12622 = vrsqrt.f32 %v4769_v27  ;;  %10067 = vmatprep.mubr.f32.mxu0 %v4896_v32  ;;  %v15664_v29 = vsub.f32 %v15650_v1, %v15656_v8 }
 0xa9d   :  { %12624 = vrsqrt.f32 %v4768_v0  ;;  %10068 = vmatmul.mubr.f32.vlgmr.msra.gmra.mrb[16].mxu0 %v4906_v30  ;;  %v4924_v36 = vand.u32 4294901760, %v15660_v44  ;;  %v4761_v30 = vsub.f32 %v15331_v58, %v15612_v26 }
 0xa9e   :  { %v12619_v19 = vpop.eup %12618  ;;  %11630 = vmatpush3.bf16.msra.mxu0 %v15441_v3  ;;  %v4914_v43 = vand.u32 4294901760, %v15664_v29 }
 0xa9f   :  { %v12621_v16 = vpop.eup %12620  ;;  %11632 = vmatprep.subr.bf16.mxu0 %v15462_v37  ;;  %v4925_v13 = vsub.f32 %v15660_v44, %v4924_v36  ;;  %v15677_v47 = vmul.f32 %v12619_v19, %v4759_v12  ;;  %v4760_v19 = vsub.f32 %v15336_v40, %v15619_v5 }
 0xaa0   :  { %v4915_v54 = vsub.f32 %v15664_v29, %v4914_v43  ;;  %v15682_v14 = vmul.f32 %v12621_v16, %v4758_v46 }
 0xaa1   :  { %17322 = vst [vmem:[#allocation17_spill] sm:$0xff] %v15677_v47  ;;  %v15685_v18 = vand.u32 4294901760, %v15677_v47  ;;  %v4926_v27 = vand.u32 4294901760, %v4925_v13 }
 0xaa2   :  { %17323 = vst [vmem:[#allocation16_spill] sm:$0xff] %v15682_v14  ;;  %11634 = vmatpush3.bf16.msra.mxu0 %v15462_v37  ;;  %v4916_v3 = vand.u32 4294901760, %v4915_v54  ;;  %v15689_v28 = vand.u32 4294901760, %v15682_v14 }
 0xaa3   :  { %11636 = vmatprep.subr.bf16.mxu0 %v15478_v33  ;;  %v15694_v32 = vsub.f32 %v15677_v47, %v15685_v18 }
 0xaa4   :  { %10070 = vmatprep.mubr.f32.mxu0 %v4916_v3  ;;  %v15698_v0 = vsub.f32 %v15682_v14, %v15689_v28 }
 0xaa5   :  { %10071 = vmatmul.mubr.f32.gmra.mrb[18].mxu0 %v4926_v27  ;;  %v4944_v37 = vand.u32 4294901760, %v15694_v32 }
 0xaa6   :  { %v12623_v12 = vpop.eup %12622  ;;  %11638 = vmatpush3.bf16.msra.mxu0 %v15478_v33  ;;  %v4934_v46 = vand.u32 4294901760, %v15698_v0 }
 0xaa7   :  { %v12625_v16 = vpop.eup %12624  ;;  %11640 = vmatprep.subr.bf16.mxu0 %v15506_v38  ;;  %v4945_v13 = vsub.f32 %v15694_v32, %v4944_v37  ;;  %v15711_v54 = vmul.f32 %v12623_v12, %v4761_v30 }
 0xaa8   :  { %v4935_v58 = vsub.f32 %v15698_v0, %v4934_v46  ;;  %v15716_v26 = vmul.f32 %v12625_v16, %v4760_v19 }
 0xaa9   :  { %17324 = vst [vmem:[#allocation19_spill] sm:$0xff] %v15711_v54  ;;  %v15719_v40 = vand.u32 4294901760, %v15711_v54  ;;  %v4946_v3 = vand.u32 4294901760, %v4945_v13 }
 0xaaa   :  { %17325 = vst [vmem:[#allocation18_spill] sm:$0xff] %v15716_v26  ;;  %11642 = vmatpush3.bf16.msra.mxu0 %v15506_v38  ;;  %v4936_v33 = vand.u32 4294901760, %v4935_v58  ;;  %v15723_v5 = vand.u32 4294901760, %v15716_v26 }
 0xaab   :  { %11644 = vmatprep.subr.bf16.mxu0 %v15510_v48  ;;  %v15728_v27 = vsub.f32 %v15711_v54, %v15719_v40 }
 0xaac   :  { %10073 = vmatprep.mubr.f32.mxu0 %v4936_v33  ;;  %v15732_v30 = vsub.f32 %v15716_v26, %v15723_v5 }
 0xaad   :  { %10074 = vmatmul.mubr.f32.gmra.mrb[20].mxu0 %v4946_v3  ;;  %v4964_v12 = vand.u32 4294901760, %v15728_v27 }
 0xaae   :  { %11646 = vmatpush3.bf16.msra.mxu0 %v15510_v48  ;;  %v4954_v38 = vand.u32 4294901760, %v15732_v30  ;;  %v17326_v48 = vand.u32 4294901760, %v15398_v61  ;;  %v17330_v61 = vand.u32 4294901760, %v15452_v4  ;;  %v17334_v4 = vld [vmem:[#allocation23_spill] sm:$0xff] }
 0xaaf   :  { %11648 = vmatprep.subr.bf16.mxu0 %v15530_v53  ;;  %v4965_v19 = vsub.f32 %v15728_v27, %v4964_v12 }
 0xab0   :  { %v4955_v16 = vsub.f32 %v15732_v30, %v4954_v38 }
 0xab1   :  { %v4966_v58 = vand.u32 4294901760, %v4965_v19 }
 0xab2   :  { %11650 = vmatpush3.bf16.msra.mxu0 %v15530_v53  ;;  %v4956_v13 = vand.u32 4294901760, %v4955_v16  ;;  %v17327_v53 = vand.u32 4294901760, %v15403_v15  ;;  %v17331_v15 = vand.u32 4294901760, %v15457_v51  ;;  %v17335_v51 = vand.u32 4294901760, %v17334_v4 }
 0xab3   :  { %11652 = vmatprep.subr.bf16.mxu0 %v15556_v34 }
 0xab4   :  { %10076 = vmatprep.mubr.f32.mxu0 %v4956_v13 }
 0xab5   :  { %10077 = vmatmul.mubr.f32.gmra.mrb[22].mxu0 %v4966_v58 }
 0xab6   :  { %11654 = vmatpush3.bf16.msra.mxu0 %v15556_v34  ;;  %10111 = vmatprep.mubr.f32.mxu0 %v15622_v60  ;;  %v17328_v34 = vand.u32 4294901760, %v15430_v62  ;;  %v17332_v62 = vand.u32 4294901760, %v15471_v25  ;;  %v17338_v25 = vld [vmem:[#allocation15_spill] sm:$0xff] }
 0xab7   :  { %11656 = vmatprep.subr.bf16.mxu0 %v15558_v35 }
 0xaba   :  { %11658 = vmatpush3.bf16.msra.mxu0 %v15558_v35  ;;  %v17329_v35 = vand.u32 4294901760, %v15435_v10  ;;  %v17333_v10 = vand.u32 4294901760, %v15474_v31  ;;  %v17339_v31 = vand.u32 4294901760, %v17338_v25 }
 0xabb   :  { %11660 = vmatprep.subr.bf16.mxu0 %v15562_v9 }
 0xabd   :  { %10112 = vmatmul.mubr.f32.vlgmr.msra.gmra.mrb[16].mxu0 %v15617_v17 }
 0xabe   :  { %10114 = vmatprep.mubr.f32.mxu0 %v15656_v8  ;;  %11662 = vmatpush3.bf16.msra.mxu0 %v15562_v9  ;;  %v11727_v9 = vpack.c.bf16 %v17329_v35, %v17328_v34 }
 0xabf   :  { %11664 = vmatprep.subr.bf16.mxu0 %v15566_v23 }
 0xac1   :  { %10115 = vmatmul.mubr.f32.gmra.mrb[18].mxu0 %v15653_v52 }
 0xac2   :  { %10117 = vmatprep.mubr.f32.mxu0 %v15689_v28  ;;  %11666 = vmatpush3.bf16.msra.mxu0 %v15566_v23  ;;  %v11731_v23 = vpack.c.bf16 %v17331_v15, %v17330_v61  ;;  %v15926_v15 = vld [vmem:[#allocation7 + $0x120] sm:$0xff] }
 0xac3   :  { %11668 = vmatprep.subr.bf16.mxu0 %v15570_v63 }
 0xac5   :  { %10118 = vmatmul.mubr.f32.gmra.mrb[20].mxu0 %v15685_v18 }
 0xac6   :  { %10120 = vmatprep.mubr.f32.mxu0 %v15723_v5  ;;  %11670 = vmatpush3.bf16.msra.mxu0 %v15570_v63  ;;  %v11723_v63 = vpack.c.bf16 %v17327_v53, %v17326_v48  ;;  %v15912_v48 = vld [vmem:[#allocation7 + $0x110] sm:$0xff]  ;;  %v15914_v53 = vld [vmem:[#allocation7 + $0x118] sm:$0xff] }
 0xac7   :  { %11672 = vmatprep.subr.bf16.mxu0 %v15574_v59  ;;  %v5908_v34 = vand.u32 4294901760, %v15914_v53 }
 0xac9   :  { %10121 = vmatmul.mubr.f32.gmra.mrb[22].mxu0 %v15719_v40 }
 0xaca   :  { %11674 = vmatpush3.bf16.msra.mxu0 %v15574_v59  ;;  %10155 = vmatprep.mubr.f32.mxu0 %v15634_v22  ;;  %v11735_v59 = vpack.c.bf16 %v17333_v10, %v17332_v62  ;;  %v5911_v62 = vand.u32 4294901760, %v15926_v15 }
 0xacb   :  { %11676 = vmatprep.subr.bf16.mxu0 %v15578_v21 }
 0xace   :  { %11678 = vmatpush3.bf16.msra.mxu0 %v15578_v21  ;;  %v17336_v21 = vld [vmem:[#allocation22_spill] sm:$0xff] }
 0xacf   :  { %11680 = vmatprep.subr.bf16.mxu0 %v15582_v55 }
 0xad2   :  { %11682 = vmatpush3.bf16.msra.mxu0 %v15582_v55  ;;  %v17337_v55 = vand.u32 4294901760, %v17336_v21  ;;  %v15942_v21 = vld [vmem:[#allocation7 + $0x130] sm:$0xff] }
 0xad3   :  { %11684 = vmatprep.subr.bf16.mxu0 %v15586_v42 }
 0xad6   :  { %11686 = vmatpush3.bf16.msra.mxu0 %v15586_v42  ;;  %v11739_v42 = vpack.c.bf16 %v17337_v55, %v17335_v51  ;;  %v15944_v55 = vld [vmem:[#allocation7 + $0x138] sm:$0xff] }
 0xad7   :  { %11688 = vmatprep.subr.bf16.mxu0 %v15590_v41  ;;  %v5920_v25 = vand.u32 4294901760, %v15944_v55 }
 0xada   :  { %11690 = vmatpush3.bf16.msra.mxu0 %v15590_v41  ;;  %v17340_v41 = vld [vmem:[#allocation24_spill] sm:$0xff] }
 0xadb   :  { %11692 = vmatprep.subr.bf16.mxu0 %v15302_v45 }
 0xadd   :  { %10156 = vmatmul.mubr.f32.vlgmr.msra.gmra.mrb[16].mxu0 %v15628_v49  ;;  %v17341_v49 = vand.u32 4294901760, %v17340_v41  ;;  %v15952_v41 = vld [vmem:[#allocation7 + $0x140] sm:$0xff] }
 0xade   :  { %10158 = vmatprep.mubr.f32.mxu0 %v15664_v29  ;;  %11694 = vmatpush3.bf16.msra.mxu0 %v15302_v45 }
 0xadf   :  { %11696 = vmatprep.subr.bf16.mxu0 %v15324_v20  ;;  %v11743_v22 = vpack.c.bf16 %v17341_v49, %v17339_v31  ;;  %v15954_v49 = vld [vmem:[#allocation7 + $0x148] sm:$0xff] }
 0xae1   :  { %10159 = vmatmul.mubr.f32.gmra.mrb[18].mxu0 %v15660_v44  ;;  %v17344_v44 = vld [vmem:[#allocation26_spill] sm:$0xff] }
 0xae2   :  { %10161 = vmatprep.mubr.f32.mxu0 %v15698_v0  ;;  %11698 = vmatpush3.bf16.msra.mxu0 %v15324_v20  ;;  %v17345_v29 = vand.u32 4294901760, %v17344_v44  ;;  %v17348_v0 = vld [vmem:[#allocation28_spill] sm:$0xff]  ;;  %v15962_v44 = vld [vmem:[#allocation7 + $0x150] sm:$0xff] }
 0xae3   :  { %11700 = vmatprep.subr.bf16.mxu0 %v15344_v2 }
 0xae5   :  { %10162 = vmatmul.mubr.f32.gmra.mrb[20].mxu0 %v15694_v32 }
 0xae6   :  { %10164 = vmatprep.mubr.f32.mxu0 %v15732_v30  ;;  %11702 = vmatpush3.bf16.msra.mxu0 %v15344_v2  ;;  %v5874_v30 = vld [vmem:[#allocation7 + $0x100] sm:$0xff] }
 0xae7   :  { %11704 = vmatprep.subr.bf16.mxu0 %v15359_v56 }
 0xae9   :  { %10165 = vmatmul.mubr.f32.gmra.mrb[22].mxu0 %v15728_v27 }
 0xaea   :  { %11706 = vmatpush3.bf16.msra.mxu0 %v15359_v56  ;;  %10199 = vmatprep.mubr.f32.mxu0 %v4894_v7 }
 0xaeb   :  { %11708 = vmatprep.subr.bf16.mxu0 %v15369_v50 }
 0xaee   :  { %11710 = vmatpush3.bf16.msra.mxu0 %v15369_v50 }
 0xaef   :  { %11712 = vmatprep.subr.bf16.mxu0 %v15379_v24 }
 0xaf2   :  { %11714 = vmatpush3.bf16.msra.mxu0 %v15379_v24 }
 0xaf3   :  { %11716 = vmatprep.subr.bf16.mxu0 %v15393_v11 }
 0xaf6   :  { %11718 = vmatpush3.bf16.msra.mxu0 %v15393_v11 }
 0xaf7   :  { %11720 = vmatprep.subr.bf16.mxu0 %v15419_v57 }
 0xafa   :  { %11722 = vmatpush3.bf16.msra.mxu0 %v15419_v57 }
 0xafb   :  { %11724 = vmatprep.subr.bf16.mxu0 %v11723_v63 }
 0xafd   :  { %10200 = vmatmul.mubr.f32.vlgmr.msra.gmra.mrb[16].mxu0 %v4904_v6  ;;  %v17342_v6 = vld [vmem:[#allocation25_spill] sm:$0xff] }
 0xafe   :  { %10202 = vmatprep.mubr.f32.mxu0 %v4914_v43  ;;  %11726 = vmatpush3.bf16.msra.mxu0 %v11723_v63  ;;  %v17343_v7 = vand.u32 4294901760, %v17342_v6  ;;  %v17346_v43 = vld [vmem:[#allocation27_spill] sm:$0xff]  ;;  %v5905_v63 = vand.u32 4294901760, %v15912_v48  ;;  %v5926_v6 = vand.u32 4294901760, %v15954_v49 }
 0xaff   :  { %11728 = vmatprep.subr.bf16.mxu0 %v11727_v9  ;;  %v17347_v32 = vand.u32 4294901760, %v17346_v43 }
 0xb01   :  { %10203 = vmatmul.mubr.f32.gmra.mrb[18].mxu0 %v4924_v36  ;;  %v11747_v36 = vpack.c.bf16 %v17345_v29, %v17343_v7  ;;  %v15964_v29 = vld [vmem:[#allocation7 + $0x158] sm:$0xff] }
 0xb02   :  { %10205 = vmatprep.mubr.f32.mxu0 %v4934_v46  ;;  %11730 = vmatpush3.bf16.msra.mxu0 %v11727_v9  ;;  %v15922_v9 = vpack.c.bf16 %v5908_v34, %v5905_v63  ;;  %v5932_v43 = vand.u32 4294901760, %v15964_v29 }
 0xb03   :  { %11732 = vmatprep.subr.bf16.mxu0 %v11731_v23 }
 0xb05   :  { %10206 = vmatmul.mubr.f32.gmra.mrb[20].mxu0 %v4944_v37  ;;  %v17349_v37 = vand.u32 4294901760, %v17348_v0  ;;  %v15972_v0 = vld [vmem:[#allocation7 + $0x160] sm:$0xff] }
 0xb06   :  { %10208 = vmatprep.mubr.f32.mxu0 %v4954_v38  ;;  %11734 = vmatpush3.bf16.msra.mxu0 %v11731_v23  ;;  %v5899_v38 = vand.u32 4294901760, %v5874_v30  ;;  %v15928_v23 = vld [vmem:[#allocation7 + $0x128] sm:$0xff] }
 0xb07   :  { %11736 = vmatprep.subr.bf16.mxu0 %v11735_v59  ;;  %v11751_v46 = vpack.c.bf16 %v17349_v37, %v17347_v32  ;;  %v5914_v10 = vand.u32 4294901760, %v15928_v23  ;;  %v15974_v37 = vld [vmem:[#allocation7 + $0x168] sm:$0xff] }
 0xb09   :  { %10209 = vmatmul.mubr.f32.gmra.mrb[22].mxu0 %v4964_v12  ;;  %v5875_v12 = vld [vmem:[#allocation7 + $0x108] sm:$0xff]  ;;  %v15938_v4 = vpack.c.bf16 %v5914_v10, %v5911_v62 }
 0xb0a   :  { %11738 = vmatpush3.bf16.msra.mxu0 %v11735_v59  ;;  %10243 = vmatprep.mubr.f32.mxu0 %v15622_v60  ;;  %v5902_v19 = vand.u32 4294901760, %v5875_v12 }
 0xb0b   :  { %11740 = vmatprep.subr.bf16.mxu0 %v11739_v42 }
 0xb0c   :  { %v15908_v13 = vpack.c.bf16 %v5902_v19, %v5899_v38 }
 0xb0e   :  { %11742 = vmatpush3.bf16.msra.mxu0 %v11739_v42  ;;  %11788 = vmatprep.subr.bf16.mxu1 %v15908_v13  ;;  %v5917_v42 = vand.u32 4294901760, %v15942_v21 }
 0xb0f   :  { %11744 = vmatprep.subr.bf16.mxu0 %v11743_v22  ;;  %11790 = vmatpush3.bf16.msra.mxu1 %v15908_v13 }
 0xb10   :  { %11792 = vmatprep.subr.bf16.mxu1 %v15922_v9  ;;  %v15950_v31 = vpack.c.bf16 %v5920_v25, %v5917_v42 }
 0xb12   :  { %11746 = vmatpush3.bf16.msra.mxu0 %v11743_v22  ;;  %v5923_v22 = vand.u32 4294901760, %v15952_v41 }
 0xb13   :  { %11748 = vmatprep.subr.bf16.mxu0 %v11747_v36  ;;  %11794 = vmatpush3.bf16.msra.mxu1 %v15922_v9 }
 0xb14   :  { %11796 = vmatprep.subr.bf16.mxu1 %v15938_v4  ;;  %v15960_v7 = vpack.c.bf16 %v5926_v6, %v5923_v22 }
 0xb16   :  { %11750 = vmatpush3.bf16.msra.mxu0 %v11747_v36  ;;  %v5929_v36 = vand.u32 4294901760, %v15962_v44 }
 0xb17   :  { %11752 = vmatprep.subr.bf16.mxu0 %v11751_v46  ;;  %11798 = vmatpush3.bf16.msra.mxu1 %v15938_v4 }
 0xb18   :  { %11800 = vmatprep.subr.bf16.mxu1 %v15950_v31  ;;  %v15970_v32 = vpack.c.bf16 %v5932_v43, %v5929_v36 }
 0xb1a   :  { %11754 = vmatpush3.bf16.msra.mxu0 %v11751_v46  ;;  %v5935_v46 = vand.u32 4294901760, %v15972_v0 }
 0xb1b   :  { %11756 = vmatprep.subr.bf16.mxu0 %v15302_v45  ;;  %11802 = vmatpush3.bf16.msra.mxu1 %v15950_v31 }
 0xb1c   :  { %11804 = vmatprep.subr.bf16.mxu1 %v15960_v7 }
 0xb1d   :  { %10244 = vmatmul.mubr.f32.vlgmr.msra.gmra.mrb[16].mxu0 %v15617_v17 }
 0xb1e   :  { %10246 = vmatprep.mubr.f32.mxu0 %v15656_v8  ;;  %11758 = vmatpush3.bf16.msra.mxu0 %v15302_v45  ;;  %v7967_v45 = vld [vmem:[%s16987_s2 + $0x2] ss:$0 sm:$0xff] }
 0xb1f   :  { %11760 = vmatprep.subr.bf16.mxu0 %v15324_v20  ;;  %11806 = vmatpush3.bf16.msra.mxu1 %v15960_v7 }
 0xb20   :  { %11808 = vmatprep.subr.bf16.mxu1 %v15970_v32 }
 0xb21   :  { %10247 = vmatmul.mubr.f32.gmra.mrb[18].mxu0 %v15653_v52 }
 0xb22   :  { %10249 = vmatprep.mubr.f32.mxu0 %v15689_v28  ;;  %11762 = vmatpush3.bf16.msra.mxu0 %v15324_v20 }
 0xb23   :  { %11764 = vmatprep.subr.bf16.mxu0 %v15344_v2  ;;  %11810 = vmatpush3.bf16.msra.mxu1 %v15970_v32 }
 0xb25   :  { %10250 = vmatmul.mubr.f32.gmra.mrb[20].mxu0 %v15685_v18 }
 0xb26   :  { %10252 = vmatprep.mubr.f32.mxu0 %v15723_v5  ;;  %11766 = vmatpush3.bf16.msra.mxu0 %v15344_v2 }
 0xb27   :  { %11768 = vmatprep.subr.bf16.mxu0 %v15359_v56 }
 0xb29   :  { %10253 = vmatmul.mubr.f32.gmra.mrb[22].mxu0 %v15719_v40 }
 0xb2a   :  { %11770 = vmatpush3.bf16.msra.mxu0 %v15359_v56  ;;  %10287 = vmatprep.mubr.f32.mxu0 %v15622_v60 }
 0xb2b   :  { %11772 = vmatprep.subr.bf16.mxu0 %v15369_v50 }
 0xb2e   :  { %11774 = vmatpush3.bf16.msra.mxu0 %v15369_v50 }
 0xb2f   :  { %11776 = vmatprep.subr.bf16.mxu0 %v15379_v24 }
 0xb32   :  { %11778 = vmatpush3.bf16.msra.mxu0 %v15379_v24 }
 0xb33   :  { %11780 = vmatprep.subr.bf16.mxu0 %v15393_v11 }
 0xb36   :  { %11782 = vmatpush3.bf16.msra.mxu0 %v15393_v11 }
 0xb37   :  { %11784 = vmatprep.subr.bf16.mxu0 %v15419_v57 }
 0xb3a   :  { %11786 = vmatpush3.bf16.msra.mxu0 %v15419_v57 }
 0xb3d   :  { %10288 = vmatmul.mubr.f32.vlgmr.msra.gmra.mrb[16].mxu0 %v15617_v17 }
 0xb3e   :  { %10290 = vmatprep.mubr.f32.mxu0 %v15656_v8 }
 0xb41   :  { %10291 = vmatmul.mubr.f32.gmra.mrb[18].mxu0 %v15653_v52 }
 0xb42   :  { %10293 = vmatprep.mubr.f32.mxu0 %v15689_v28 }
 0xb45   :  { %10294 = vmatmul.mubr.f32.gmra.mrb[20].mxu0 %v15685_v18 }
 0xb46   :  { %10296 = vmatprep.mubr.f32.mxu0 %v15723_v5 }
 0xb49   :  { %10297 = vmatmul.mubr.f32.gmra.mrb[22].mxu0 %v15719_v40 }
 0xc10   :  { %v10289_v20 = vpop.f32.mrb[16].mxu0 }
 0xc11   :  { %v15880_v2 = vadd.f32 %v10289_v20, %v7967_v45  ;;  %v5707_v56 = vpop.f32.mrb[17].mxu0 }
 0xc12   :  { %v15882_v50 = vadd.f32 %v7967_v45, %v5707_v56  ;;  %v15986_v56 = vsub.f32 %v5874_v30, %v5899_v38  ;;  %v16013_v30 = vsub.f32 %v15912_v48, %v5905_v63  ;;  %v16031_v63 = vsub.f32 %v15926_v15, %v5911_v62 }
 0xc13   :  { %5755 = vadd.xlane.f32.xlu1 %v15880_v2  ;;  %v5770_v57 = vmul.f32 %v15880_v2, %v15880_v2  ;;  %v16051_v62 = vsub.f32 %v15944_v55, %v5920_v25 }
 0xc14   :  { %v10292_v24 = vpop.f32.mrb[18].mxu0  ;;  %5753 = vadd.xlane.f32.xlu0 %v15882_v50  ;;  %v5769_v17 = vmul.f32 %v15882_v50, %v15882_v50 }
 0xc15   :  { %v5719_v11 = vpop.f32.mrb[19].mxu0  ;;  %v15890_v52 = vadd.f32 %v10292_v24, %v7967_v45  ;;  %v15988_v24 = vsub.f32 %v5875_v12, %v5902_v19  ;;  %v16016_v12 = vsub.f32 %v15914_v53, %v5908_v34  ;;  %v16034_v34 = vsub.f32 %v15928_v23, %v5914_v10  ;;  %17351 = vst [vmem:[#allocation20_spill] sm:$0xff] %v16051_v62 }
 0xc16   :  { %v15892_v18 = vadd.f32 %v7967_v45, %v5719_v11  ;;  %v15990_v11 = vld [vmem:[#allocation7 + $0x170] sm:$0xff]  ;;  %v16048_v23 = vsub.f32 %v15942_v21, %v5917_v42  ;;  %v16064_v21 = vsub.f32 %v15954_v49, %v5926_v6  ;;  %v16078_v49 = vsub.f32 %v15962_v44, %v5929_v36 }
 0xc17   :  { %5779 = vadd.xlane.f32.xlu1 %v5770_v57  ;;  %v5772_v33 = vmul.f32 %v15890_v52, %v15890_v52  ;;  %v15992_v57 = vld [vmem:[#allocation7 + $0x178] sm:$0xff] }
 0xc18   :  { %v10295_v60 = vpop.f32.mrb[20].mxu0  ;;  %5777 = vadd.xlane.f32.xlu0 %v5769_v17  ;;  %v5771_v5 = vmul.f32 %v15892_v18, %v15892_v18  ;;  %v5941_v17 = vand.u32 4294901760, %v15990_v11  ;;  %17350 = vst [vmem:[#allocation21_spill] sm:$0xff] %v16048_v23  ;;  %17353 = vst [vmem:[#allocation22_spill] sm:$0xff] %v16064_v21 }
 0xc19   :  { %v5731_v8 = vpop.f32.mrb[21].mxu0  ;;  %v15900_v3 = vadd.f32 %v10295_v60, %v7967_v45  ;;  %v5944_v60 = vand.u32 4294901760, %v15992_v57  ;;  %17354 = vst [vmem:[#allocation15_spill] sm:$0xff] %v16078_v49 }
 0xc1a   :  { %v15902_v27 = vadd.f32 %v7967_v45, %v5731_v8  ;;  %v17127_v8 = vand.u32 4294901760, %v15986_v56 }
 0xc1b   :  { %5759 = vadd.xlane.f32.xlu1 %v15890_v52  ;;  %v5774_v16 = vmul.f32 %v15900_v3, %v15900_v3 }
 0xc1c   :  { %v10298_v28 = vpop.f32.mrb[22].mxu0  ;;  %5757 = vadd.xlane.f32.xlu0 %v15892_v18  ;;  %v5773_v58 = vmul.f32 %v15902_v27, %v15902_v27 }
 0xc1d   :  { %v5743_v40 = vpop.f32.mrb[23].mxu0  ;;  %v15920_v35 = vadd.f32 %v10298_v28, %v7967_v45  ;;  %v17126_v28 = vand.u32 4294901760, %v15988_v24 }
 0xc1e   :  { %v15924_v61 = vadd.f32 %v7967_v45, %v5743_v40  ;;  %v5938_v45 = vand.u32 4294901760, %v15974_v37  ;;  %v16004_v40 = vpack.c.bf16 %v5944_v60, %v5941_v17 }
 0xc1f   :  { %5783 = vadd.xlane.f32.xlu1 %v5772_v33  ;;  %v5776_v59 = vmul.f32 %v15920_v35, %v15920_v35  ;;  %v6063_v33 = vsub.f32 %v15986_v56, %v17127_v8 }
 0xc20   :  { %5781 = vadd.xlane.f32.xlu0 %v5771_v5  ;;  %v5775_v51 = vmul.f32 %v15924_v61, %v15924_v61  ;;  %v15984_v20 = vpack.c.bf16 %v5938_v45, %v5935_v46  ;;  %v6070_v5 = vsub.f32 %v15988_v24, %v17126_v28  ;;  %v16103_v36 = vsub.f32 %v15974_v37, %v5938_v45 }
 0xc21   :  { %v6064_v38 = vand.u32 4294901760, %v6063_v33  ;;  %v16120_v37 = vsub.f32 %v15992_v57, %v5944_v60 }
 0xc22   :  { %11812 = vmatprep.subr.bf16.mxu1 %v15984_v20  ;;  %v6071_v19 = vand.u32 4294901760, %v6070_v5  ;;  %v17113_v5 = vand.u32 4294901760, %v16031_v63  ;;  %17357 = vst [vmem:[#allocation26_spill] sm:$0xff] %v16103_v36 }
 0xc23   :  { %5763 = vadd.xlane.f32.xlu1 %v15900_v3  ;;  %11814 = vmatpush3.bf16.msra.mxu1 %v15984_v20  ;;  %17359 = vst [vmem:[#allocation28_spill] sm:$0xff] %v16120_v37 }
 0xc24   :  { %5761 = vadd.xlane.f32.xlu0 %v15902_v27  ;;  %11816 = vmatprep.subr.bf16.mxu1 %v16004_v40 }
 0xc27   :  { %5787 = vadd.xlane.f32.xlu1 %v5774_v16  ;;  %11818 = vmatpush3.bf16.msra.mxu1 %v16004_v40  ;;  %v17125_v16 = vand.u32 4294901760, %v16013_v30 }
 0xc28   :  { %5785 = vadd.xlane.f32.xlu0 %v5773_v58  ;;  %v17112_v58 = vand.u32 4294901760, %v16016_v12 }
 0xc29   :  { %v6077_v48 = vsub.f32 %v16013_v30, %v17125_v16 }
 0xc2a   :  { %v6084_v53 = vsub.f32 %v16016_v12, %v17112_v58  ;;  %v6091_v58 = vsub.f32 %v16031_v63, %v17113_v5 }
 0xc2b   :  { %5767 = vadd.xlane.f32.xlu1 %v15920_v35 }
 0xc2c   :  { %5765 = vadd.xlane.f32.xlu0 %v15924_v61  ;;  %v6085_v33 = vand.u32 4294901760, %v6084_v53  ;;  %v6092_v10 = vand.u32 4294901760, %v6091_v58  ;;  %v17116_v53 = vand.u32 4294901760, %v16048_v23  ;;  %v17117_v58 = vand.u32 4294901760, %v16064_v21 }
 0xc2e   :  { %v6105_v5 = vsub.f32 %v16048_v23, %v17116_v53 }
 0xc2f   :  { %5791 = vadd.xlane.f32.xlu1 %v5776_v59  ;;  %v16022_v59 = vpack.c.bf16 %v6071_v19, %v6064_v38  ;;  %v17114_v38 = vand.u32 4294901760, %v16034_v34 }
 0xc30   :  { %5789 = vadd.xlane.f32.xlu0 %v5775_v51  ;;  %v6078_v51 = vand.u32 4294901760, %v6077_v48  ;;  %v6106_v42 = vand.u32 4294901760, %v6105_v5 }
 0xc31   :  { %11820 = vmatprep.subr.bf16.mxu1 %v16022_v59  ;;  %v6098_v15 = vsub.f32 %v16034_v34, %v17114_v38  ;;  %v16061_v38 = vsub.f32 %v15952_v41, %v5923_v22  ;;  %v6126_v41 = vsub.f32 %v16064_v21, %v17117_v58  ;;  %v16081_v22 = vsub.f32 %v15964_v29, %v5932_v43 }
 0xc32   :  { %v16039_v19 = vpack.c.bf16 %v6085_v33, %v6078_v51  ;;  %v17115_v51 = vand.u32 4294901760, %v16051_v62  ;;  %v16098_v29 = vsub.f32 %v15972_v0, %v5935_v46  ;;  %v16115_v0 = vsub.f32 %v15990_v11, %v5941_v17 }
 0xc33   :  { %v6099_v48 = vand.u32 4294901760, %v6098_v15  ;;  %17352 = vst [vmem:[#allocation23_spill] sm:$0xff] %v16061_v38  ;;  %v17124_v25 = vand.u32 4294901760, %v16061_v38  ;;  %17355 = vst [vmem:[#allocation24_spill] sm:$0xff] %v16081_v22 }
 0xc34   :  { %v6112_v55 = vsub.f32 %v16051_v62, %v17115_v51  ;;  %v17122_v51 = vand.u32 4294901760, %v16081_v22  ;;  %17356 = vst [vmem:[#allocation25_spill] sm:$0xff] %v16098_v29  ;;  %17358 = vst [vmem:[#allocation27_spill] sm:$0xff] %v16115_v0 }
 0xc35   :  { %v16055_v33 = vpack.c.bf16 %v6099_v48, %v6092_v10  ;;  %v6119_v10 = vsub.f32 %v16061_v38, %v17124_v25  ;;  %v6127_v48 = vand.u32 4294901760, %v6126_v41 }
 0xc36   :  { %v6113_v15 = vand.u32 4294901760, %v6112_v55  ;;  %v17123_v55 = vand.u32 4294901760, %v16078_v49  ;;  %v6140_v44 = vsub.f32 %v16081_v22, %v17122_v51 }
 0xc37   :  { %v6120_v5 = vand.u32 4294901760, %v6119_v10  ;;  %v17120_v10 = vand.u32 4294901760, %v16103_v36 }
 0xc38   :  { %v16083_v6 = vpack.c.bf16 %v6113_v15, %v6106_v42  ;;  %v6133_v58 = vsub.f32 %v16078_v49, %v17123_v55  ;;  %v6141_v42 = vand.u32 4294901760, %v6140_v44  ;;  %v17121_v15 = vand.u32 4294901760, %v16098_v29 }
 0xc39   :  { %v16087_v53 = vpack.c.bf16 %v6127_v48, %v6120_v5  ;;  %v6154_v46 = vsub.f32 %v16103_v36, %v17120_v10  ;;  %v17119_v48 = vand.u32 4294901760, %v16120_v37 }
 0xc3a   :  { %v6134_v43 = vand.u32 4294901760, %v6133_v58  ;;  %v6147_v5 = vsub.f32 %v16098_v29, %v17121_v15  ;;  %v17118_v58 = vand.u32 4294901760, %v16115_v0 }
 0xc3b   :  { %v6155_v44 = vand.u32 4294901760, %v6154_v46  ;;  %v6168_v17 = vsub.f32 %v16120_v37, %v17119_v48  ;;  %v16143_v46 = vpack.c.bf16 %v16016_v12, %v16013_v30 }
 0xc3c   :  { %v16107_v41 = vpack.c.bf16 %v6141_v42, %v6134_v43  ;;  %v6148_v45 = vand.u32 4294901760, %v6147_v5  ;;  %v6161_v11 = vsub.f32 %v16115_v0, %v17118_v58  ;;  %v16139_v5 = vpack.c.bf16 %v15988_v24, %v15986_v56 }
 0xc3d   :  { %v6169_v43 = vand.u32 4294901760, %v6168_v17  ;;  %v16147_v58 = vpack.c.bf16 %v16034_v34, %v16031_v63  ;;  %v16163_v17 = vpack.c.bf16 %v16103_v36, %v16098_v29 }
 0xc3e   :  { %v16133_v57 = vpack.c.bf16 %v6155_v44, %v6148_v45  ;;  %v6162_v60 = vand.u32 4294901760, %v6161_v11  ;;  %v16151_v45 = vpack.c.bf16 %v16051_v62, %v16048_v23  ;;  %v16155_v44 = vpack.c.bf16 %v16064_v21, %v16061_v38 }
 0xc3f   :  { %v16159_v11 = vpack.c.bf16 %v16081_v22, %v16078_v49 }
 0xc40   :  { %v16135_v42 = vpack.c.bf16 %v6169_v43, %v6162_v60  ;;  %v16167_v60 = vpack.c.bf16 %v16120_v37, %v16115_v0 }
 0xca0   :  { %v5756_v43 = vpop.xlane.xlu1 %5755 }
 0xca1   :  { %v5794_v48 = vmul.f32 0.0078125, %v5756_v43  ;;  %v5754_v10 = vpop.xlane.xlu0 %5753 }
 0xca2   :  { %v5793_v15 = vmul.f32 0.0078125, %v5754_v10 }
 0xca3   :  { %v5810_v55 = vmul.f32 %v5794_v48, %v5794_v48 }
 0xca4   :  { %v5780_v51 = vpop.xlane.xlu1 %5779  ;;  %v5809_v28 = vmul.f32 %v5793_v15, %v5793_v15 }
 0xca5   :  { %v5802_v25 = vmul.f32 0.0078125, %v5780_v51  ;;  %v5778_v16 = vpop.xlane.xlu0 %5777 }
 0xca6   :  { %v5801_v8 = vmul.f32 0.0078125, %v5778_v16 }
 0xca7   :  { %v5818_v26 = vsub.f32 %v5802_v25, %v5810_v55 }
 0xca8   :  { %v5817_v54 = vsub.f32 %v5801_v8, %v5809_v28  ;;  %v5760_v14 = vpop.xlane.xlu1 %5759 }
 0xca9   :  { %v5826_v47 = vmax.f32 %v5818_v26, 0.0  ;;  %v16169_v1 = vmul.f32 0.0078125, %v5760_v14  ;;  %v5758_v39 = vpop.xlane.xlu0 %5757 }
 0xcaa   :  { %v5825_v36 = vmax.f32 %v5817_v54, 0.0  ;;  %v16171_v37 = vmul.f32 0.0078125, %v5758_v39 }
 0xcab   :  { %v5842_v0 = vadd.f32 1e-05, %v5826_v47  ;;  %v5812_v51 = vmul.f32 %v16169_v1, %v16169_v1 }
 0xcac   :  { %v5841_v43 = vadd.f32 1e-05, %v5825_v36  ;;  %v5784_v29 = vpop.xlane.xlu1 %5783  ;;  %v5811_v8 = vmul.f32 %v16171_v37, %v16171_v37 }
 0xcad   :  { %12626 = vrsqrt.f32 %v5842_v0  ;;  %v5804_v10 = vmul.f32 0.0078125, %v5784_v29  ;;  %v5782_v22 = vpop.xlane.xlu0 %5781 }
 0xcae   :  { %12628 = vrsqrt.f32 %v5841_v43  ;;  %v5803_v26 = vmul.f32 0.0078125, %v5782_v22  ;;  %v5834_v22 = vsub.f32 %v15880_v2, %v5794_v48 }
 0xcaf   :  { %v5820_v14 = vsub.f32 %v5804_v10, %v5812_v51 }
 0xcb0   :  { %v5819_v28 = vsub.f32 %v5803_v26, %v5811_v8  ;;  %v5764_v16 = vpop.xlane.xlu1 %5763  ;;  %v5833_v26 = vsub.f32 %v15882_v50, %v5793_v15  ;;  %v5836_v50 = vsub.f32 %v15890_v52, %v16169_v1  ;;  %v5835_v1 = vsub.f32 %v15892_v18, %v16171_v37 }
 0xcb1   :  { %v5828_v54 = vmax.f32 %v5820_v14, 0.0  ;;  %v16177_v39 = vmul.f32 0.0078125, %v5764_v16  ;;  %v5762_v47 = vpop.xlane.xlu0 %5761 }
 0xcb2   :  { %v5827_v25 = vmax.f32 %v5819_v28, 0.0  ;;  %v16179_v55 = vmul.f32 0.0078125, %v5762_v47 }
 0xcb3   :  { %v5844_v36 = vadd.f32 1e-05, %v5828_v54  ;;  %v5814_v29 = vmul.f32 %v16177_v39, %v16177_v39 }
 0xcb4   :  { %v5843_v0 = vadd.f32 1e-05, %v5827_v25  ;;  %v5788_v49 = vpop.xlane.xlu1 %5787  ;;  %v5813_v51 = vmul.f32 %v16179_v55, %v16179_v55 }
 0xcb5   :  { %12630 = vrsqrt.f32 %v5844_v36  ;;  %v5806_v43 = vmul.f32 0.0078125, %v5788_v49  ;;  %v5786_v21 = vpop.xlane.xlu0 %5785 }
 0xcb6   :  { %12632 = vrsqrt.f32 %v5843_v0  ;;  %v5805_v10 = vmul.f32 0.0078125, %v5786_v21 }
 0xcb7   :  { %v12627_v8 = vpop.eup %12626  ;;  %v5822_v14 = vsub.f32 %v5806_v43, %v5814_v29 }
 0xcb8   :  { %v12629_v28 = vpop.eup %12628  ;;  %v5858_v16 = vmul.f32 %v12627_v8, %v5834_v22  ;;  %v5821_v54 = vsub.f32 %v5805_v10, %v5813_v51  ;;  %v5768_v47 = vpop.xlane.xlu1 %5767 }
 0xcb9   :  { %v5830_v25 = vmax.f32 %v5822_v14, 0.0  ;;  %v16187_v36 = vmul.f32 0.0078125, %v5768_v47  ;;  %v5766_v49 = vpop.xlane.xlu0 %5765  ;;  %v5857_v38 = vmul.f32 %v12629_v28, %v5833_v26 }
 0xcba   :  { %v5866_v62 = vmax.f32 %v5858_v16, 0.0  ;;  %v5829_v2 = vmax.f32 %v5821_v54, 0.0  ;;  %v16189_v48 = vmul.f32 0.0078125, %v5766_v49 }
 0xcbb   :  { %v5846_v0 = vadd.f32 1e-05, %v5830_v25  ;;  %v5865_v23 = vmax.f32 %v5857_v38, 0.0  ;;  %v5816_v43 = vmul.f32 %v16187_v36, %v16187_v36 }
 0xcbc   :  { %v16191_v21 = vand.u32 4294901760, %v5866_v62  ;;  %v5845_v15 = vadd.f32 1e-05, %v5829_v2  ;;  %v5792_v29 = vpop.xlane.xlu1 %5791  ;;  %v5815_v8 = vmul.f32 %v16189_v48, %v16189_v48 }
 0xcbd   :  { %12634 = vrsqrt.f32 %v5846_v0  ;;  %v5808_v22 = vmul.f32 0.0078125, %v5792_v29  ;;  %v5790_v51 = vpop.xlane.xlu0 %5789  ;;  %v16197_v10 = vand.u32 4294901760, %v5865_v23 }
 0xcbe   :  { %12636 = vrsqrt.f32 %v5845_v15  ;;  %v5807_v38 = vmul.f32 0.0078125, %v5790_v51  ;;  %v16202_v26 = vsub.f32 %v5866_v62, %v16191_v21 }
 0xcbf   :  { %v12631_v14 = vpop.eup %12630  ;;  %v5824_v52 = vsub.f32 %v5808_v22, %v5816_v43  ;;  %v16207_v28 = vsub.f32 %v5865_v23, %v16197_v10 }
 0xcc0   :  { %v12633_v16 = vpop.eup %12632  ;;  %v5823_v54 = vsub.f32 %v5807_v38, %v5815_v8  ;;  %v5991_v47 = vand.u32 4294901760, %v16202_v26  ;;  %v5860_v25 = vmul.f32 %v12631_v14, %v5836_v50  ;;  %v5838_v8 = vsub.f32 %v15900_v3, %v16177_v39 }
 0xcc1   :  { %v5832_v49 = vmax.f32 %v5824_v52, 0.0  ;;  %v5981_v2 = vand.u32 4294901760, %v16207_v28  ;;  %v5859_v0 = vmul.f32 %v12633_v16, %v5835_v1  ;;  %v5837_v52 = vsub.f32 %v15902_v27, %v16179_v55 }
 0xcc2   :  { %v5831_v15 = vmax.f32 %v5823_v54, 0.0  ;;  %v5992_v62 = vsub.f32 %v16202_v26, %v5991_v47  ;;  %v5868_v29 = vmax.f32 %v5860_v25, 0.0 }
 0xcc3   :  { %v5848_v18 = vadd.f32 1e-05, %v5832_v49  ;;  %v5982_v23 = vsub.f32 %v16207_v28, %v5981_v2  ;;  %v5867_v37 = vmax.f32 %v5859_v0, 0.0 }
 0xcc4   :  { %v5847_v43 = vadd.f32 1e-05, %v5831_v15  ;;  %v16217_v22 = vand.u32 4294901760, %v5868_v29  ;;  %v5993_v38 = vand.u32 4294901760, %v5992_v62 }
 0xcc5   :  { %12638 = vrsqrt.f32 %v5848_v18  ;;  %v5983_v50 = vand.u32 4294901760, %v5982_v23  ;;  %v16219_v51 = vand.u32 4294901760, %v5867_v37  ;;  %v5840_v18 = vsub.f32 %v15920_v35, %v16187_v36 }
 0xcc6   :  { %12640 = vrsqrt.f32 %v5847_v43  ;;  %v16224_v14 = vsub.f32 %v5868_v29, %v16217_v22 }
 0xcc7   :  { %v12635_v1 = vpop.eup %12634  ;;  %10331 = vmatprep.mubr.f32.mxu1 %v5983_v50  ;;  %v16229_v16 = vsub.f32 %v5867_v37, %v16219_v51  ;;  %v5839_v50 = vsub.f32 %v15924_v61, %v16189_v48 }
 0xcc8   :  { %v12637_v54 = vpop.eup %12636  ;;  %10332 = vmatmul.mubr.f32.vlgmr.msra.gmra.mrb[24].mxu1 %v5993_v38  ;;  %v6011_v25 = vand.u32 4294901760, %v16224_v14  ;;  %v5862_v49 = vmul.f32 %v12635_v1, %v5838_v8 }
 0xcc9   :  { %11822 = vmatpush3.bf16.msra.mxu1 %v16022_v59  ;;  %v6001_v3 = vand.u32 4294901760, %v16229_v16  ;;  %v5861_v39 = vmul.f32 %v12637_v54, %v5837_v52 }
 0xcca   :  { %11824 = vmatprep.subr.bf16.mxu1 %v16039_v19  ;;  %v6012_v27 = vsub.f32 %v16224_v14, %v6011_v25  ;;  %v5870_v55 = vmax.f32 %v5862_v49, 0.0 }
 0xccb   :  { %v6002_v0 = vsub.f32 %v16229_v16, %v6001_v3  ;;  %v5869_v15 = vmax.f32 %v5861_v39, 0.0 }
 0xccc   :  { %v16241_v62 = vand.u32 4294901760, %v5870_v55  ;;  %v6013_v23 = vand.u32 4294901760, %v6012_v27 }
 0xccd   :  { %11826 = vmatpush3.bf16.msra.mxu1 %v16039_v19  ;;  %v6003_v59 = vand.u32 4294901760, %v6002_v0  ;;  %v16244_v29 = vand.u32 4294901760, %v5869_v15 }
 0xcce   :  { %11828 = vmatprep.subr.bf16.mxu1 %v16055_v33  ;;  %v16250_v37 = vsub.f32 %v5870_v55, %v16241_v62 }
 0xccf   :  { %v12639_v43 = vpop.eup %12638  ;;  %10334 = vmatprep.mubr.f32.mxu1 %v6003_v59  ;;  %v16255_v8 = vsub.f32 %v5869_v15, %v16244_v29 }
 0xcd0   :  { %v12641_v19 = vpop.eup %12640  ;;  %10335 = vmatmul.mubr.f32.gmra.mrb[26].mxu1 %v6013_v23  ;;  %v6031_v38 = vand.u32 4294901760, %v16250_v37  ;;  %v5864_v1 = vmul.f32 %v12639_v43, %v5840_v18 }
 0xcd1   :  { %11830 = vmatpush3.bf16.msra.mxu1 %v16055_v33  ;;  %v6021_v35 = vand.u32 4294901760, %v16255_v8  ;;  %v5863_v36 = vmul.f32 %v12641_v19, %v5839_v50  ;;  %v17382_v19 = vld [vmem:[#allocation27_spill] sm:$0xff] }
 0xcd2   :  { %11832 = vmatprep.subr.bf16.mxu1 %v16083_v6  ;;  %v6032_v61 = vsub.f32 %v16250_v37, %v6031_v38  ;;  %v5872_v48 = vmax.f32 %v5864_v1, 0.0  ;;  %v17384_v1 = vld [vmem:[#allocation28_spill] sm:$0xff] }
 0xcd3   :  { %v6022_v52 = vsub.f32 %v16255_v8, %v6021_v35  ;;  %v5871_v54 = vmax.f32 %v5863_v36, 0.0 }
 0xcd4   :  { %v16267_v49 = vand.u32 4294901760, %v5872_v48  ;;  %v6033_v27 = vand.u32 4294901760, %v6032_v61 }
 0xcd5   :  { %11834 = vmatpush3.bf16.msra.mxu1 %v16083_v6  ;;  %v6023_v33 = vand.u32 4294901760, %v6022_v52  ;;  %v16270_v39 = vand.u32 4294901760, %v5871_v54 }
 0xcd6   :  { %11836 = vmatprep.subr.bf16.mxu1 %v16087_v53  ;;  %v16274_v55 = vsub.f32 %v5872_v48, %v16267_v49 }
 0xcd7   :  { %10337 = vmatprep.mubr.f32.mxu1 %v6023_v33  ;;  %v16277_v0 = vsub.f32 %v5871_v54, %v16270_v39  ;;  %v6968_v33 = vld [vmem:[#allocation8] sm:$0xff] }
 0xcd8   :  { %10338 = vmatmul.mubr.f32.gmra.mrb[28].mxu1 %v6033_v27  ;;  %v6051_v15 = vand.u32 4294901760, %v16274_v55 }
 0xcd9   :  { %11838 = vmatpush3.bf16.msra.mxu1 %v16087_v53  ;;  %v6041_v6 = vand.u32 4294901760, %v16277_v0  ;;  %v17360_v53 = vand.u32 4294901760, %v15986_v56  ;;  %v17364_v56 = vand.u32 4294901760, %v16031_v63  ;;  %v17370_v63 = vld [vmem:[#allocation23_spill] sm:$0xff] }
 0xcda   :  { %11840 = vmatprep.subr.bf16.mxu1 %v16107_v41  ;;  %v6052_v59 = vsub.f32 %v16274_v55, %v6051_v15 }
 0xcdb   :  { %v6042_v18 = vsub.f32 %v16277_v0, %v6041_v6 }
 0xcdc   :  { %v6053_v43 = vand.u32 4294901760, %v6052_v59  ;;  %v16457_v59 = vld [vmem:[#allocation8 + $0x10] sm:$0xff] }
 0xcdd   :  { %11842 = vmatpush3.bf16.msra.mxu1 %v16107_v41  ;;  %v6043_v23 = vand.u32 4294901760, %v6042_v18  ;;  %v17361_v41 = vand.u32 4294901760, %v15988_v24  ;;  %v17365_v24 = vand.u32 4294901760, %v16034_v34  ;;  %v17371_v34 = vand.u32 4294901760, %v17370_v63  ;;  %v16459_v18 = vld [vmem:[#allocation8 + $0x18] sm:$0xff] }
 0xcde   :  { %11844 = vmatprep.subr.bf16.mxu1 %v16133_v57 }
 0xcdf   :  { %10340 = vmatprep.mubr.f32.mxu1 %v6043_v23 }
 0xce0   :  { %10341 = vmatmul.mubr.f32.gmra.mrb[30].mxu1 %v6053_v43  ;;  %v6998_v43 = vand.u32 4294901760, %v16457_v59 }
 0xce1   :  { %11846 = vmatpush3.bf16.msra.mxu1 %v16133_v57  ;;  %10375 = vmatprep.mubr.f32.mxu1 %v16197_v10  ;;  %v17362_v57 = vand.u32 4294901760, %v16013_v30  ;;  %v17366_v30 = vld [vmem:[#allocation21_spill] sm:$0xff] }
 0xce2   :  { %11848 = vmatprep.subr.bf16.mxu1 %v16135_v42 }
 0xce5   :  { %11850 = vmatpush3.bf16.msra.mxu1 %v16135_v42  ;;  %v17363_v42 = vand.u32 4294901760, %v16016_v12  ;;  %v17367_v12 = vand.u32 4294901760, %v17366_v30 }
 0xce6   :  { %11852 = vmatprep.subr.bf16.mxu1 %v16139_v5 }
 0xce8   :  { %10376 = vmatmul.mubr.f32.vlgmr.msra.gmra.mrb[24].mxu1 %v16191_v21 }
 0xce9   :  { %10378 = vmatprep.mubr.f32.mxu1 %v16219_v51  ;;  %11854 = vmatpush3.bf16.msra.mxu1 %v16139_v5  ;;  %v11919_v5 = vpack.c.bf16 %v17363_v42, %v17362_v57  ;;  %v16473_v57 = vld [vmem:[#allocation8 + $0x20] sm:$0xff]  ;;  %v16475_v42 = vld [vmem:[#allocation8 + $0x28] sm:$0xff] }
 0xcea   :  { %11856 = vmatprep.subr.bf16.mxu1 %v16143_v46 }
 0xcec   :  { %10379 = vmatmul.mubr.f32.gmra.mrb[26].mxu1 %v16217_v22 }
 0xced   :  { %10381 = vmatprep.mubr.f32.mxu1 %v16244_v29  ;;  %11858 = vmatpush3.bf16.msra.mxu1 %v16143_v46  ;;  %v11923_v46 = vpack.c.bf16 %v17365_v24, %v17364_v56  ;;  %v7004_v56 = vand.u32 4294901760, %v16473_v57  ;;  %v7007_v24 = vand.u32 4294901760, %v16475_v42 }
 0xcee   :  { %11860 = vmatprep.subr.bf16.mxu1 %v16147_v58 }
 0xcef   :  { %v16485_v30 = vpack.c.bf16 %v7007_v24, %v7004_v56 }
 0xcf0   :  { %10382 = vmatmul.mubr.f32.gmra.mrb[28].mxu1 %v16241_v62 }
 0xcf1   :  { %10384 = vmatprep.mubr.f32.mxu1 %v16270_v39  ;;  %11862 = vmatpush3.bf16.msra.mxu1 %v16147_v58  ;;  %v11915_v58 = vpack.c.bf16 %v17361_v41, %v17360_v53  ;;  %v7001_v53 = vand.u32 4294901760, %v16459_v18 }
 0xcf2   :  { %11864 = vmatprep.subr.bf16.mxu1 %v16151_v45 }
 0xcf4   :  { %10385 = vmatmul.mubr.f32.gmra.mrb[30].mxu1 %v16267_v49 }
 0xcf5   :  { %11866 = vmatpush3.bf16.msra.mxu1 %v16151_v45  ;;  %10419 = vmatprep.mubr.f32.mxu1 %v16207_v28  ;;  %v17368_v45 = vld [vmem:[#allocation20_spill] sm:$0xff]  ;;  %v17374_v28 = vld [vmem:[#allocation15_spill] sm:$0xff] }
 0xcf6   :  { %11868 = vmatprep.subr.bf16.mxu1 %v16155_v44 }
 0xcf9   :  { %11870 = vmatpush3.bf16.msra.mxu1 %v16155_v44  ;;  %v17369_v44 = vand.u32 4294901760, %v17368_v45  ;;  %v6975_v45 = vld [vmem:[#allocation8 + $0x38] sm:$0xff] }
 0xcfa   :  { %11872 = vmatprep.subr.bf16.mxu1 %v16159_v11 }
 0xcfd   :  { %11874 = vmatpush3.bf16.msra.mxu1 %v16159_v11  ;;  %v11927_v11 = vpack.c.bf16 %v17369_v44, %v17367_v12  ;;  %v6974_v12 = vld [vmem:[#allocation8 + $0x30] sm:$0xff] }
 0xcfe   :  { %11876 = vmatprep.subr.bf16.mxu1 %v16163_v17  ;;  %v7010_v44 = vand.u32 4294901760, %v6974_v12 }
 0xd01   :  { %11878 = vmatpush3.bf16.msra.mxu1 %v16163_v17  ;;  %v17372_v17 = vld [vmem:[#allocation22_spill] sm:$0xff] }
 0xd02   :  { %11880 = vmatprep.subr.bf16.mxu1 %v16167_v60 }
 0xd05   :  { %11882 = vmatpush3.bf16.msra.mxu1 %v16167_v60  ;;  %v17373_v60 = vand.u32 4294901760, %v17372_v17  ;;  %v16493_v17 = vld [vmem:[#allocation8 + $0x48] sm:$0xff] }
 0xd06   :  { %11884 = vmatprep.subr.bf16.mxu1 %v15908_v13 }
 0xd08   :  { %10420 = vmatmul.mubr.f32.vlgmr.msra.gmra.mrb[24].mxu1 %v16202_v26  ;;  %v11931_v26 = vpack.c.bf16 %v17373_v60, %v17371_v34  ;;  %v16491_v34 = vld [vmem:[#allocation8 + $0x40] sm:$0xff] }
 0xd09   :  { %10422 = vmatprep.mubr.f32.mxu1 %v16229_v16  ;;  %11886 = vmatpush3.bf16.msra.mxu1 %v15908_v13  ;;  %v7016_v60 = vand.u32 4294901760, %v16491_v34 }
 0xd0a   :  { %11888 = vmatprep.subr.bf16.mxu1 %v15922_v9 }
 0xd0c   :  { %10423 = vmatmul.mubr.f32.gmra.mrb[26].mxu1 %v16224_v14 }
 0xd0d   :  { %10425 = vmatprep.mubr.f32.mxu1 %v16255_v8  ;;  %11890 = vmatpush3.bf16.msra.mxu1 %v15922_v9 }
 0xd0e   :  { %11892 = vmatprep.subr.bf16.mxu1 %v15938_v4 }
 0xd10   :  { %10426 = vmatmul.mubr.f32.gmra.mrb[28].mxu1 %v16250_v37  ;;  %v17380_v37 = vld [vmem:[#allocation26_spill] sm:$0xff] }
 0xd11   :  { %10428 = vmatprep.mubr.f32.mxu1 %v16277_v0  ;;  %11894 = vmatpush3.bf16.msra.mxu1 %v15938_v4  ;;  %v17381_v50 = vand.u32 4294901760, %v17380_v37  ;;  %v16513_v37 = vld [vmem:[#allocation8 + $0x68] sm:$0xff] }
 0xd12   :  { %11896 = vmatprep.subr.bf16.mxu1 %v15950_v31 }
 0xd14   :  { %10429 = vmatmul.mubr.f32.gmra.mrb[30].mxu1 %v16274_v55  ;;  %v6992_v55 = vand.u32 4294901760, %v6968_v33 }
 0xd15   :  { %11898 = vmatpush3.bf16.msra.mxu1 %v15950_v31  ;;  %10463 = vmatprep.mubr.f32.mxu1 %v5981_v2  ;;  %v17376_v2 = vld [vmem:[#allocation24_spill] sm:$0xff] }
 0xd16   :  { %11900 = vmatprep.subr.bf16.mxu1 %v15960_v7  ;;  %v17377_v14 = vand.u32 4294901760, %v17376_v2  ;;  %v16503_v2 = vld [vmem:[#allocation8 + $0x58] sm:$0xff] }
 0xd19   :  { %11902 = vmatpush3.bf16.msra.mxu1 %v15960_v7 }
 0xd1a   :  { %11904 = vmatprep.subr.bf16.mxu1 %v15970_v32 }
 0xd1d   :  { %11906 = vmatpush3.bf16.msra.mxu1 %v15970_v32 }
 0xd1e   :  { %11908 = vmatprep.subr.bf16.mxu1 %v15984_v20 }
 0xd21   :  { %11910 = vmatpush3.bf16.msra.mxu1 %v15984_v20 }
 0xd22   :  { %11912 = vmatprep.subr.bf16.mxu1 %v16004_v40 }
 0xd25   :  { %11914 = vmatpush3.bf16.msra.mxu1 %v16004_v40 }
 0xd26   :  { %11916 = vmatprep.subr.bf16.mxu1 %v11915_v58 }
 0xd28   :  { %10464 = vmatmul.mubr.f32.vlgmr.msra.gmra.mrb[24].mxu1 %v5991_v47  ;;  %v17375_v47 = vand.u32 4294901760, %v17374_v28 }
 0xd29   :  { %10466 = vmatprep.mubr.f32.mxu1 %v6001_v3  ;;  %11918 = vmatpush3.bf16.msra.mxu1 %v11915_v58  ;;  %v16470_v58 = vpack.c.bf16 %v7001_v53, %v6998_v43 }
 0xd2a   :  { %11920 = vmatprep.subr.bf16.mxu1 %v11919_v5  ;;  %v11935_v16 = vpack.c.bf16 %v17377_v14, %v17375_v47  ;;  %v16501_v47 = vld [vmem:[#allocation8 + $0x50] sm:$0xff] }
 0xd2b   :  { %v7022_v14 = vand.u32 4294901760, %v16501_v47 }
 0xd2c   :  { %10467 = vmatmul.mubr.f32.gmra.mrb[26].mxu1 %v6011_v25  ;;  %v17378_v25 = vld [vmem:[#allocation25_spill] sm:$0xff] }
 0xd2d   :  { %10469 = vmatprep.mubr.f32.mxu1 %v6021_v35  ;;  %11922 = vmatpush3.bf16.msra.mxu1 %v11919_v5  ;;  %v17379_v3 = vand.u32 4294901760, %v17378_v25  ;;  %v17385_v35 = vand.u32 4294901760, %v17384_v1 }
 0xd2e   :  { %11924 = vmatprep.subr.bf16.mxu1 %v11923_v46 }
 0xd2f   :  { %v11939_v8 = vpack.c.bf16 %v17381_v50, %v17379_v3  ;;  %v16511_v3 = vld [vmem:[#allocation8 + $0x60] sm:$0xff] }
 0xd30   :  { %10470 = vmatmul.mubr.f32.gmra.mrb[28].mxu1 %v6031_v38  ;;  %v17383_v38 = vand.u32 4294901760, %v17382_v19  ;;  %v7028_v50 = vand.u32 4294901760, %v16511_v3 }
 0xd31   :  { %10472 = vmatprep.mubr.f32.mxu1 %v6041_v6  ;;  %11926 = vmatpush3.bf16.msra.mxu1 %v11923_v46 }
 0xd32   :  { %11928 = vmatprep.subr.bf16.mxu1 %v11927_v11  ;;  %v11943_v36 = vpack.c.bf16 %v17385_v35, %v17383_v38  ;;  %v16525_v38 = vsub.f32 %v6968_v33, %v6992_v55  ;;  %v16529_v35 = vld [vmem:[#allocation8 + $0x70] sm:$0xff] }
 0xd34   :  { %10473 = vmatmul.mubr.f32.gmra.mrb[30].mxu1 %v6051_v15 }
 0xd35   :  { %11930 = vmatpush3.bf16.msra.mxu1 %v11927_v11  ;;  %10507 = vmatprep.mubr.f32.mxu1 %v16197_v10  ;;  %v7013_v11 = vand.u32 4294901760, %v6975_v45 }
 0xd36   :  { %11932 = vmatprep.subr.bf16.mxu1 %v11931_v26 }
 0xd37   :  { %v16489_v63 = vpack.c.bf16 %v7013_v11, %v7010_v44 }
 0xd39   :  { %11934 = vmatpush3.bf16.msra.mxu1 %v11931_v26  ;;  %v7019_v26 = vand.u32 4294901760, %v16493_v17 }
 0xd3a   :  { %11936 = vmatprep.subr.bf16.mxu1 %v11935_v16 }
 0xd3b   :  { %v16499_v28 = vpack.c.bf16 %v7019_v26, %v7016_v60 }
 0xd3d   :  { %11938 = vmatpush3.bf16.msra.mxu1 %v11935_v16  ;;  %v7025_v16 = vand.u32 4294901760, %v16503_v2 }
 0xd3e   :  { %11940 = vmatprep.subr.bf16.mxu1 %v11939_v8 }
 0xd3f   :  { %v16509_v25 = vpack.c.bf16 %v7025_v16, %v7022_v14 }
 0xd41   :  { %11942 = vmatpush3.bf16.msra.mxu1 %v11939_v8  ;;  %v7031_v8 = vand.u32 4294901760, %v16513_v37 }
 0xd42   :  { %11944 = vmatprep.subr.bf16.mxu1 %v11943_v36 }
 0xd43   :  { %v16523_v19 = vpack.c.bf16 %v7031_v8, %v7028_v50 }
 0xd45   :  { %11946 = vmatpush3.bf16.msra.mxu1 %v11943_v36  ;;  %v16531_v36 = vld [vmem:[#allocation8 + $0x78] sm:$0xff] }
 0xd46   :  { %11948 = vmatprep.subr.bf16.mxu1 %v15908_v13 }
 0xd48   :  { %10508 = vmatmul.mubr.f32.vlgmr.msra.gmra.mrb[24].mxu1 %v16191_v21 }
 0xd49   :  { %10510 = vmatprep.mubr.f32.mxu1 %v16219_v51  ;;  %11950 = vmatpush3.bf16.msra.mxu1 %v15908_v13  ;;  %v7969_v13 = vld [vmem:[%s16989_s4 + $0x2] ss:$0 sm:$0xff] }
 0xd4a   :  { %11952 = vmatprep.subr.bf16.mxu1 %v15922_v9 }
 0xd4c   :  { %10511 = vmatmul.mubr.f32.gmra.mrb[26].mxu1 %v16217_v22 }
 0xd4d   :  { %10513 = vmatprep.mubr.f32.mxu1 %v16244_v29  ;;  %11954 = vmatpush3.bf16.msra.mxu1 %v15922_v9 }
 0xd4e   :  { %11956 = vmatprep.subr.bf16.mxu1 %v15938_v4 }
 0xd50   :  { %10514 = vmatmul.mubr.f32.gmra.mrb[28].mxu1 %v16241_v62 }
 0xd51   :  { %10516 = vmatprep.mubr.f32.mxu1 %v16270_v39  ;;  %11958 = vmatpush3.bf16.msra.mxu1 %v15938_v4 }
 0xd52   :  { %11960 = vmatprep.subr.bf16.mxu1 %v15950_v31 }
 0xd54   :  { %10517 = vmatmul.mubr.f32.gmra.mrb[30].mxu1 %v16267_v49 }
 0xd55   :  { %11962 = vmatpush3.bf16.msra.mxu1 %v15950_v31  ;;  %10551 = vmatprep.mubr.f32.mxu1 %v16197_v10 }
 0xd56   :  { %11964 = vmatprep.subr.bf16.mxu1 %v15960_v7 }
 0xd59   :  { %11966 = vmatpush3.bf16.msra.mxu1 %v15960_v7 }
 0xd5a   :  { %11968 = vmatprep.subr.bf16.mxu1 %v15970_v32 }
 0xd5d   :  { %11970 = vmatpush3.bf16.msra.mxu1 %v15970_v32 }
 0xd5e   :  { %11972 = vmatprep.subr.bf16.mxu1 %v15984_v20 }
 0xd61   :  { %11974 = vmatpush3.bf16.msra.mxu1 %v15984_v20 }
 0xd62   :  { %11976 = vmatprep.subr.bf16.mxu1 %v16004_v40 }
 0xd65   :  { %11978 = vmatpush3.bf16.msra.mxu1 %v16004_v40 }
 0xd68   :  { %10552 = vmatmul.mubr.f32.vlgmr.msra.gmra.mrb[24].mxu1 %v16191_v21 }
 0xd69   :  { %10554 = vmatprep.mubr.f32.mxu1 %v16219_v51 }
 0xd6c   :  { %10555 = vmatmul.mubr.f32.gmra.mrb[26].mxu1 %v16217_v22 }
 0xd6d   :  { %10557 = vmatprep.mubr.f32.mxu1 %v16244_v29 }
 0xd70   :  { %10558 = vmatmul.mubr.f32.gmra.mrb[28].mxu1 %v16241_v62 }
 0xd71   :  { %10560 = vmatprep.mubr.f32.mxu1 %v16270_v39  ;;  %v6969_v39 = vld [vmem:[#allocation8 + $0x8] sm:$0xff] }
 0xd72   :  { %v6995_v0 = vand.u32 4294901760, %v6969_v39 }
 0xd74   :  { %10561 = vmatmul.mubr.f32.gmra.mrb[30].mxu1 %v16267_v49  ;;  %v16455_v6 = vpack.c.bf16 %v6995_v0, %v6992_v55  ;;  %v16527_v1 = vsub.f32 %v6969_v39, %v6995_v0  ;;  %v16570_v55 = vsub.f32 %v16473_v57, %v7004_v56  ;;  %v16573_v0 = vsub.f32 %v16475_v42, %v7007_v24 }
 0xd75   :  { %v16586_v42 = vsub.f32 %v6974_v12, %v7010_v44  ;;  %v16588_v56 = vsub.f32 %v6975_v45, %v7013_v11  ;;  %v16601_v12 = vsub.f32 %v16493_v17, %v7019_v26  ;;  %v16615_v17 = vsub.f32 %v16501_v47, %v7022_v14 }
 0xd76   :  { %11980 = vmatprep.subr.bf16.mxu0 %v16455_v6  ;;  %17386 = vst [vmem:[#allocation21_spill] sm:$0xff] %v16570_v55  ;;  %17387 = vst [vmem:[#allocation20_spill] sm:$0xff] %v16573_v0  ;;  %v16640_v14 = vsub.f32 %v16513_v37, %v7031_v8 }
 0xd77   :  { %11982 = vmatpush3.bf16.msra.mxu0 %v16455_v6  ;;  %17388 = vst [vmem:[#allocation23_spill] sm:$0xff] %v16586_v42  ;;  %17389 = vst [vmem:[#allocation22_spill] sm:$0xff] %v16588_v56 }
 0xd78   :  { %11984 = vmatprep.subr.bf16.mxu0 %v16470_v58  ;;  %17391 = vst [vmem:[#allocation24_spill] sm:$0xff] %v16601_v12  ;;  %17392 = vst [vmem:[#allocation25_spill] sm:$0xff] %v16615_v17 }
 0xd79   :  { %17395 = vst [vmem:[#allocation28_spill] sm:$0xff] %v16640_v14 }
 0xd7b   :  { %11986 = vmatpush3.bf16.msra.mxu0 %v16470_v58 }
 0xd7c   :  { %11988 = vmatprep.subr.bf16.mxu0 %v16485_v30 }
 0xd7f   :  { %11990 = vmatpush3.bf16.msra.mxu0 %v16485_v30 }
 0xd80   :  { %11992 = vmatprep.subr.bf16.mxu0 %v16489_v63 }
 0xd83   :  { %11994 = vmatpush3.bf16.msra.mxu0 %v16489_v63 }
 0xd84   :  { %11996 = vmatprep.subr.bf16.mxu0 %v16499_v28 }
 0xd87   :  { %11998 = vmatpush3.bf16.msra.mxu0 %v16499_v28 }
 0xd88   :  { %12000 = vmatprep.subr.bf16.mxu0 %v16509_v25 }
 0xd8b   :  { %12002 = vmatpush3.bf16.msra.mxu0 %v16509_v25 }
 0xd8c   :  { %12004 = vmatprep.subr.bf16.mxu0 %v16523_v19 }
 0xd8f   :  { %12006 = vmatpush3.bf16.msra.mxu0 %v16523_v19 }
 0xe3b   :  { %v10553_v9 = vpop.f32.mrb[24].mxu1 }
 0xe3c   :  { %v16425_v4 = vadd.f32 %v10553_v9, %v7969_v13  ;;  %v6794_v31 = vpop.f32.mrb[25].mxu1  ;;  %v7037_v9 = vand.u32 4294901760, %v16531_v36 }
 0xe3d   :  { %v16427_v7 = vadd.f32 %v7969_v13, %v6794_v31  ;;  %v17159_v31 = vand.u32 4294901760, %v16525_v38 }
 0xe3e   :  { %6842 = vadd.xlane.f32.xlu1 %v16425_v4  ;;  %v6857_v40 = vmul.f32 %v16425_v4, %v16425_v4  ;;  %v16657_v37 = vsub.f32 %v16531_v36, %v7037_v9 }
 0xe3f   :  { %v10556_v32 = vpop.f32.mrb[26].mxu1  ;;  %6840 = vadd.xlane.f32.xlu0 %v16427_v7  ;;  %v6856_v21 = vmul.f32 %v16427_v7, %v16427_v7 }
 0xe40   :  { %v6806_v20 = vpop.f32.mrb[27].mxu1  ;;  %v16435_v22 = vadd.f32 %v10556_v32, %v7969_v13  ;;  %v17158_v32 = vand.u32 4294901760, %v16527_v1  ;;  %17397 = vst [vmem:[#allocation34_spill] sm:$0xff] %v16657_v37 }
 0xe41   :  { %v16437_v62 = vadd.f32 %v7969_v13, %v6806_v20 }
 0xe42   :  { %6866 = vadd.xlane.f32.xlu1 %v6857_v40  ;;  %v6859_v48 = vmul.f32 %v16435_v22, %v16435_v22  ;;  %v7156_v40 = vsub.f32 %v16525_v38, %v17159_v31 }
 0xe43   :  { %v10559_v10 = vpop.f32.mrb[28].mxu1  ;;  %6864 = vadd.xlane.f32.xlu0 %v6856_v21  ;;  %v6858_v52 = vmul.f32 %v16437_v62, %v16437_v62  ;;  %v7163_v21 = vsub.f32 %v16527_v1, %v17158_v32 }
 0xe44   :  { %v6818_v51 = vpop.f32.mrb[29].mxu1  ;;  %v16445_v54 = vadd.f32 %v10559_v10, %v7969_v13  ;;  %v16552_v10 = vsub.f32 %v16457_v59, %v6998_v43  ;;  %v17154_v43 = vand.u32 4294901760, %v16573_v0 }
 0xe45   :  { %v16447_v49 = vadd.f32 %v7969_v13, %v6818_v51  ;;  %v16555_v51 = vsub.f32 %v16459_v18, %v7001_v53  ;;  %v17155_v18 = vand.u32 4294901760, %v16570_v55 }
 0xe46   :  { %6846 = vadd.xlane.f32.xlu1 %v16435_v22  ;;  %v6861_v27 = vmul.f32 %v16445_v54, %v16445_v54  ;;  %v7191_v57 = vsub.f32 %v16573_v0, %v17154_v43 }
 0xe47   :  { %v10562_v29 = vpop.f32.mrb[30].mxu1  ;;  %6844 = vadd.xlane.f32.xlu0 %v16437_v62  ;;  %v6860_v15 = vmul.f32 %v16447_v49, %v16447_v49 }
 0xe48   :  { %v6830_v61 = vpop.f32.mrb[31].mxu1  ;;  %v16461_v23 = vadd.f32 %v10562_v29, %v7969_v13  ;;  %v7157_v29 = vand.u32 4294901760, %v7156_v40  ;;  %v17153_v40 = vand.u32 4294901760, %v16586_v42 }
 0xe49   :  { %v16466_v41 = vadd.f32 %v7969_v13, %v6830_v61  ;;  %v7034_v13 = vand.u32 4294901760, %v16529_v35  ;;  %v7164_v61 = vand.u32 4294901760, %v7163_v21  ;;  %v17152_v21 = vand.u32 4294901760, %v16588_v56 }
 0xe4a   :  { %6870 = vadd.xlane.f32.xlu1 %v6859_v48  ;;  %v6863_v5 = vmul.f32 %v16461_v23, %v16461_v23  ;;  %v17157_v48 = vand.u32 4294901760, %v16552_v10 }
 0xe4b   :  { %6868 = vadd.xlane.f32.xlu0 %v6858_v52  ;;  %v6862_v46 = vmul.f32 %v16466_v41, %v16466_v41  ;;  %v16543_v20 = vpack.c.bf16 %v7037_v9, %v7034_v13  ;;  %v17156_v52 = vand.u32 4294901760, %v16555_v51  ;;  %v16561_v33 = vpack.c.bf16 %v7164_v61, %v7157_v29 }
 0xe4c   :  { %v7170_v39 = vsub.f32 %v16552_v10, %v17157_v48  ;;  %v7198_v61 = vsub.f32 %v16586_v42, %v17153_v40  ;;  %v7205_v45 = vsub.f32 %v16588_v56, %v17152_v21 }
 0xe4d   :  { %12008 = vmatprep.subr.bf16.mxu0 %v16543_v20 }
 0xe4e   :  { %6850 = vadd.xlane.f32.xlu1 %v16445_v54  ;;  %12010 = vmatpush3.bf16.msra.mxu0 %v16543_v20  ;;  %v7199_v44 = vand.u32 4294901760, %v7198_v61 }
 0xe4f   :  { %6848 = vadd.xlane.f32.xlu0 %v16447_v49  ;;  %12012 = vmatprep.subr.bf16.mxu0 %v16561_v33 }
 0xe52   :  { %6874 = vadd.xlane.f32.xlu1 %v6861_v27  ;;  %v7177_v27 = vsub.f32 %v16555_v51, %v17156_v52 }
 0xe53   :  { %6872 = vadd.xlane.f32.xlu0 %v6860_v15  ;;  %v7171_v15 = vand.u32 4294901760, %v7170_v39  ;;  %v16598_v39 = vsub.f32 %v16491_v34, %v7016_v60  ;;  %v16618_v60 = vsub.f32 %v16503_v2, %v7025_v16  ;;  %v16635_v2 = vsub.f32 %v16511_v3, %v7028_v50 }
 0xe54   :  { %v7178_v59 = vand.u32 4294901760, %v7177_v27  ;;  %v17150_v27 = vand.u32 4294901760, %v16601_v12  ;;  %v16652_v3 = vsub.f32 %v16529_v35, %v7034_v13 }
 0xe55   :  { %17390 = vst [vmem:[#allocation15_spill] sm:$0xff] %v16598_v39  ;;  %v17151_v11 = vand.u32 4294901760, %v16598_v39  ;;  %17393 = vst [vmem:[#allocation26_spill] sm:$0xff] %v16618_v60 }
 0xe56   :  { %6854 = vadd.xlane.f32.xlu1 %v16461_v23  ;;  %v16578_v53 = vpack.c.bf16 %v7178_v59, %v7171_v15  ;;  %v7206_v15 = vand.u32 4294901760, %v7205_v45  ;;  %v7219_v34 = vsub.f32 %v16601_v12, %v17150_v27  ;;  %17394 = vst [vmem:[#allocation27_spill] sm:$0xff] %v16635_v2  ;;  %17396 = vst [vmem:[#allocation33_spill] sm:$0xff] %v16652_v3 }
 0xe57   :  { %6852 = vadd.xlane.f32.xlu0 %v16466_v41  ;;  %v7212_v59 = vsub.f32 %v16598_v39, %v17151_v11 }
 0xe58   :  { %v16620_v26 = vpack.c.bf16 %v7206_v15, %v7199_v44  ;;  %v17147_v15 = vand.u32 4294901760, %v16635_v2 }
 0xe5a   :  { %6878 = vadd.xlane.f32.xlu1 %v6863_v5  ;;  %v7184_v5 = vsub.f32 %v16570_v55, %v17155_v18 }
 0xe5b   :  { %6876 = vadd.xlane.f32.xlu0 %v6862_v46  ;;  %v7192_v46 = vand.u32 4294901760, %v7191_v57  ;;  %v7220_v57 = vand.u32 4294901760, %v7219_v34 }
 0xe5c   :  { %v7185_v24 = vand.u32 4294901760, %v7184_v5  ;;  %v7213_v5 = vand.u32 4294901760, %v7212_v59  ;;  %v17146_v59 = vand.u32 4294901760, %v16640_v14 }
 0xe5e   :  { %v16592_v29 = vpack.c.bf16 %v7192_v46, %v7185_v24  ;;  %v17149_v24 = vand.u32 4294901760, %v16615_v17  ;;  %v17148_v46 = vand.u32 4294901760, %v16618_v60  ;;  %v16624_v61 = vpack.c.bf16 %v7220_v57, %v7213_v5 }
 0xe5f   :  { %v7240_v5 = vsub.f32 %v16635_v2, %v17147_v15  ;;  %v7247_v50 = vsub.f32 %v16640_v14, %v17146_v59  ;;  %v17144_v57 = vand.u32 4294901760, %v16652_v3 }
 0xe60   :  { %v7226_v45 = vsub.f32 %v16615_v17, %v17149_v24  ;;  %v7233_v47 = vsub.f32 %v16618_v60, %v17148_v46 }
 0xe61   :  { %v7241_v8 = vand.u32 4294901760, %v7240_v5  ;;  %v7254_v35 = vsub.f32 %v16652_v3, %v17144_v57  ;;  %v16676_v5 = vpack.c.bf16 %v16527_v1, %v16525_v38  ;;  %v16684_v57 = vpack.c.bf16 %v16573_v0, %v16570_v55 }
 0xe62   :  { %v7227_v16 = vand.u32 4294901760, %v7226_v45  ;;  %v7234_v44 = vand.u32 4294901760, %v7233_v47  ;;  %v17145_v45 = vand.u32 4294901760, %v16657_v37  ;;  %v7248_v47 = vand.u32 4294901760, %v7247_v50 }
 0xe63   :  { %v7255_v9 = vand.u32 4294901760, %v7254_v35  ;;  %v16680_v50 = vpack.c.bf16 %v16555_v51, %v16552_v10  ;;  %v16696_v35 = vpack.c.bf16 %v16618_v60, %v16615_v17 }
 0xe64   :  { %v16644_v34 = vpack.c.bf16 %v7234_v44, %v7227_v16  ;;  %v7261_v13 = vsub.f32 %v16657_v37, %v17145_v45  ;;  %v16670_v36 = vpack.c.bf16 %v7248_v47, %v7241_v8  ;;  %v16688_v8 = vpack.c.bf16 %v16588_v56, %v16586_v42  ;;  %v17398_v56 = vld [vmem:[#allocation29_spill] sm:$0xff] }
 0xe65   :  { %v16692_v47 = vpack.c.bf16 %v16601_v12, %v16598_v39 }
 0xe66   :  { %v7262_v16 = vand.u32 4294901760, %v7261_v13  ;;  %v16700_v13 = vpack.c.bf16 %v16640_v14, %v16635_v2 }
 0xe68   :  { %v16672_v44 = vpack.c.bf16 %v7262_v16, %v7255_v9  ;;  %v16704_v9 = vpack.c.bf16 %v16657_v37, %v16652_v3 }
 0xecb   :  { %v6843_v16 = vpop.xlane.xlu1 %6842 }
 0xecc   :  { %v6881_v45 = vmul.f32 0.0078125, %v6843_v16  ;;  %v6841_v59 = vpop.xlane.xlu0 %6840 }
 0xecd   :  { %v6880_v15 = vmul.f32 0.0078125, %v6841_v59 }
 0xece   :  { %v6897_v24 = vmul.f32 %v6881_v45, %v6881_v45 }
 0xecf   :  { %v6867_v46 = vpop.xlane.xlu1 %6866  ;;  %v6896_v21 = vmul.f32 %v6880_v15, %v6880_v15 }
 0xed0   :  { %v6889_v27 = vmul.f32 0.0078125, %v6867_v46  ;;  %v6865_v11 = vpop.xlane.xlu0 %6864 }
 0xed1   :  { %v6888_v40 = vmul.f32 0.0078125, %v6865_v11 }
 0xed2   :  { %v6905_v43 = vsub.f32 %v6889_v27, %v6897_v24 }
 0xed3   :  { %v6904_v18 = vsub.f32 %v6888_v40, %v6896_v21  ;;  %v6847_v52 = vpop.xlane.xlu1 %6846 }
 0xed4   :  { %v6913_v48 = vmax.f32 %v6905_v43, 0.0  ;;  %v16706_v32 = vmul.f32 0.0078125, %v6847_v52  ;;  %v6845_v31 = vpop.xlane.xlu0 %6844 }
 0xed5   :  { %v6912_v14 = vmax.f32 %v6904_v18, 0.0  ;;  %v16708_v37 = vmul.f32 0.0078125, %v6845_v31 }
 0xed6   :  { %v6929_v3 = vadd.f32 1e-05, %v6913_v48  ;;  %v6899_v46 = vmul.f32 %v16706_v32, %v16706_v32 }
 0xed7   :  { %v6928_v16 = vadd.f32 1e-05, %v6912_v14  ;;  %v6871_v2 = vpop.xlane.xlu1 %6870  ;;  %v6898_v40 = vmul.f32 %v16708_v37, %v16708_v37 }
 0xed8   :  { %12642 = vrsqrt.f32 %v6929_v3  ;;  %v6891_v59 = vmul.f32 0.0078125, %v6871_v2  ;;  %v6869_v60 = vpop.xlane.xlu0 %6868 }
 0xed9   :  { %12644 = vrsqrt.f32 %v6928_v16  ;;  %v6890_v43 = vmul.f32 0.0078125, %v6869_v60  ;;  %v6921_v60 = vsub.f32 %v16425_v4, %v6881_v45 }
 0xeda   :  { %v6907_v52 = vsub.f32 %v6891_v59, %v6899_v46 }
 0xedb   :  { %v6906_v21 = vsub.f32 %v6890_v43, %v6898_v40  ;;  %v6851_v11 = vpop.xlane.xlu1 %6850  ;;  %v6920_v43 = vsub.f32 %v16427_v7, %v6880_v15  ;;  %v6923_v7 = vsub.f32 %v16435_v22, %v16706_v32  ;;  %v6922_v22 = vsub.f32 %v16437_v62, %v16708_v37 }
 0xedc   :  { %v6915_v18 = vmax.f32 %v6907_v52, 0.0  ;;  %v16714_v31 = vmul.f32 0.0078125, %v6851_v11  ;;  %v6849_v48 = vpop.xlane.xlu0 %6848 }
 0xedd   :  { %v6914_v27 = vmax.f32 %v6906_v21, 0.0  ;;  %v16716_v24 = vmul.f32 0.0078125, %v6849_v48 }
 0xede   :  { %v6931_v14 = vadd.f32 1e-05, %v6915_v18  ;;  %v6901_v2 = vmul.f32 %v16714_v31, %v16714_v31 }
 0xedf   :  { %v6930_v3 = vadd.f32 1e-05, %v6914_v27  ;;  %v6875_v17 = vpop.xlane.xlu1 %6874  ;;  %v6900_v46 = vmul.f32 %v16716_v24, %v16716_v24 }
 0xee0   :  { %12646 = vrsqrt.f32 %v6931_v14  ;;  %v6893_v16 = vmul.f32 0.0078125, %v6875_v17  ;;  %v6873_v12 = vpop.xlane.xlu0 %6872 }
 0xee1   :  { %12648 = vrsqrt.f32 %v6930_v3  ;;  %v6892_v59 = vmul.f32 0.0078125, %v6873_v12  ;;  %v17399_v12 = vld [vmem:[#allocation30_spill] sm:$0xff] }
 0xee2   :  { %v12643_v40 = vpop.eup %12642  ;;  %v6909_v52 = vsub.f32 %v6893_v16, %v6901_v2 }
 0xee3   :  { %v12645_v21 = vpop.eup %12644  ;;  %v6945_v11 = vmul.f32 %v12643_v40, %v6921_v60  ;;  %v6908_v18 = vsub.f32 %v6892_v59, %v6900_v46  ;;  %v6855_v48 = vpop.xlane.xlu1 %6854 }
 0xee4   :  { %v6917_v27 = vmax.f32 %v6909_v52, 0.0  ;;  %v16724_v14 = vmul.f32 0.0078125, %v6855_v48  ;;  %v6853_v17 = vpop.xlane.xlu0 %6852  ;;  %v6944_v39 = vmul.f32 %v12645_v21, %v6920_v43 }
 0xee5   :  { %v6953_v4 = vadd.f32 %v6945_v11, %v17398_v56  ;;  %v6916_v45 = vmax.f32 %v6908_v18, 0.0  ;;  %v16727_v3 = vmul.f32 0.0078125, %v6853_v17 }
 0xee6   :  { %v6933_v42 = vadd.f32 1e-05, %v6917_v27  ;;  %v6952_v0 = vadd.f32 %v6944_v39, %v17399_v12  ;;  %v6903_v16 = vmul.f32 %v16724_v14, %v16724_v14 }
 0xee7   :  { %v6961_v55 = vmax.f32 %v6953_v4, 0.0  ;;  %v6932_v15 = vadd.f32 1e-05, %v6916_v45  ;;  %v6879_v2 = vpop.xlane.xlu1 %6878  ;;  %v6902_v40 = vmul.f32 %v16727_v3, %v16727_v3  ;;  %v17400_v45 = vld [vmem:[#allocation31_spill] sm:$0xff] }
 0xee8   :  { %12650 = vrsqrt.f32 %v6933_v42  ;;  %v6895_v60 = vmul.f32 0.0078125, %v6879_v2  ;;  %v6877_v46 = vpop.xlane.xlu0 %6876  ;;  %v6960_v59 = vmax.f32 %v6952_v0, 0.0 }
 0xee9   :  { %v16734_v56 = vand.u32 4294901760, %v6961_v55  ;;  %12652 = vrsqrt.f32 %v6932_v15  ;;  %v6894_v39 = vmul.f32 0.0078125, %v6877_v46  ;;  %v17401_v15 = vld [vmem:[#allocation32_spill] sm:$0xff] }
 0xeea   :  { %v12647_v43 = vpop.eup %12646  ;;  %v6911_v32 = vsub.f32 %v6895_v60, %v6903_v16  ;;  %v16740_v52 = vand.u32 4294901760, %v6960_v59 }
 0xeeb   :  { %v12649_v42 = vpop.eup %12648  ;;  %v6910_v21 = vsub.f32 %v6894_v39, %v6902_v40  ;;  %v16743_v11 = vsub.f32 %v6961_v55, %v16734_v56  ;;  %v6947_v0 = vmul.f32 %v12647_v43, %v6923_v7  ;;  %v6924_v43 = vsub.f32 %v16447_v49, %v16716_v24  ;;  %v17403_v24 = vld [vmem:[#allocation16_spill] sm:$0xff] }
 0xeec   :  { %v6919_v18 = vmax.f32 %v6911_v32, 0.0  ;;  %v16746_v48 = vsub.f32 %v6960_v59, %v16740_v52  ;;  %v6946_v27 = vmul.f32 %v12649_v42, %v6922_v22  ;;  %v6925_v59 = vsub.f32 %v16445_v54, %v16714_v31 }
 0xeed   :  { %v6918_v17 = vmax.f32 %v6910_v21, 0.0  ;;  %v7084_v4 = vand.u32 4294901760, %v16743_v11  ;;  %v6955_v12 = vadd.f32 %v6947_v0, %v17400_v45 }
 0xeee   :  { %v6935_v62 = vadd.f32 1e-05, %v6919_v18  ;;  %v7074_v37 = vand.u32 4294901760, %v16746_v48  ;;  %v6954_v2 = vadd.f32 %v6946_v27, %v17401_v15 }
 0xeef   :  { %v6934_v16 = vadd.f32 1e-05, %v6918_v17  ;;  %v7085_v55 = vsub.f32 %v16743_v11, %v7084_v4  ;;  %v6963_v7 = vmax.f32 %v6955_v12, 0.0  ;;  %v17402_v17 = vld [vmem:[#allocation17_spill] sm:$0xff] }
 0xef0   :  { %12654 = vrsqrt.f32 %v6935_v62  ;;  %v7075_v60 = vsub.f32 %v16746_v48, %v7074_v37  ;;  %v6962_v46 = vmax.f32 %v6954_v2, 0.0 }
 0xef1   :  { %12656 = vrsqrt.f32 %v6934_v16  ;;  %v16760_v40 = vand.u32 4294901760, %v6963_v7  ;;  %v7086_v21 = vand.u32 4294901760, %v7085_v55  ;;  %v6927_v55 = vsub.f32 %v16461_v23, %v16724_v14 }
 0xef2   :  { %v12651_v39 = vpop.eup %12650  ;;  %v7076_v22 = vand.u32 4294901760, %v7075_v60  ;;  %v16764_v32 = vand.u32 4294901760, %v6962_v46  ;;  %v6926_v60 = vsub.f32 %v16466_v41, %v16727_v3 }
 0xef3   :  { %v12653_v42 = vpop.eup %12652  ;;  %v16767_v0 = vsub.f32 %v6963_v7, %v16760_v40  ;;  %v6949_v18 = vmul.f32 %v12651_v39, %v6925_v59 }
 0xef4   :  { %10595 = vmatprep.mubr.f32.mxu0 %v7076_v22  ;;  %v16770_v27 = vsub.f32 %v6962_v46, %v16764_v32  ;;  %v6948_v54 = vmul.f32 %v12653_v42, %v6924_v43 }
 0xef5   :  { %10596 = vmatmul.mubr.f32.vlgmr.msra.gmra.mrb[24].mxu0 %v7086_v21  ;;  %v7104_v31 = vand.u32 4294901760, %v16767_v0  ;;  %v6957_v45 = vadd.f32 %v6949_v18, %v17402_v17  ;;  %v17405_v18 = vld [vmem:[#allocation18_spill] sm:$0xff] }
 0xef6   :  { %12014 = vmatpush3.bf16.msra.mxu0 %v16561_v33  ;;  %v7094_v49 = vand.u32 4294901760, %v16770_v27  ;;  %v6956_v12 = vadd.f32 %v6948_v54, %v17403_v24 }
 0xef7   :  { %12016 = vmatprep.subr.bf16.mxu0 %v16578_v53  ;;  %v7105_v62 = vsub.f32 %v16767_v0, %v7104_v31  ;;  %v6965_v15 = vmax.f32 %v6957_v45, 0.0 }
 0xef8   :  { %v7095_v2 = vsub.f32 %v16770_v27, %v7094_v49  ;;  %v6964_v16 = vmax.f32 %v6956_v12, 0.0 }
 0xef9   :  { %v16786_v33 = vand.u32 4294901760, %v6965_v15  ;;  %v7106_v43 = vand.u32 4294901760, %v7105_v62 }
 0xefa   :  { %v12655_v7 = vpop.eup %12654  ;;  %12018 = vmatpush3.bf16.msra.mxu0 %v16578_v53  ;;  %v7096_v46 = vand.u32 4294901760, %v7095_v2  ;;  %v16791_v59 = vand.u32 4294901760, %v6964_v16  ;;  %v17404_v53 = vld [vmem:[#allocation19_spill] sm:$0xff] }
 0xefb   :  { %v12657_v39 = vpop.eup %12656  ;;  %12020 = vmatprep.subr.bf16.mxu0 %v16592_v29  ;;  %v16795_v22 = vsub.f32 %v6965_v15, %v16786_v33  ;;  %v6951_v42 = vmul.f32 %v12655_v7, %v6927_v55 }
 0xefc   :  { %10598 = vmatprep.mubr.f32.mxu0 %v7096_v46  ;;  %v16798_v23 = vsub.f32 %v6964_v16, %v16791_v59  ;;  %v6950_v14 = vmul.f32 %v12657_v39, %v6926_v60 }
 0xefd   :  { %10599 = vmatmul.mubr.f32.gmra.mrb[26].mxu0 %v7106_v43  ;;  %v7124_v41 = vand.u32 4294901760, %v16795_v22  ;;  %v6959_v3 = vadd.f32 %v6951_v42, %v17404_v53 }
 0xefe   :  { %12022 = vmatpush3.bf16.msra.mxu0 %v16592_v29  ;;  %v7114_v21 = vand.u32 4294901760, %v16798_v23  ;;  %v6958_v54 = vadd.f32 %v6950_v14, %v17405_v18 }
 0xeff   :  { %12024 = vmatprep.subr.bf16.mxu0 %v16620_v26  ;;  %v7125_v17 = vsub.f32 %v16795_v22, %v7124_v41  ;;  %v6967_v45 = vmax.f32 %v6959_v3, 0.0 }
 0xf00   :  { %v7115_v24 = vsub.f32 %v16798_v23, %v7114_v21  ;;  %v6966_v12 = vmax.f32 %v6958_v54, 0.0  ;;  %v17432_v54 = vld [vmem:[#allocation34_spill] sm:$0xff] }
 0xf01   :  { %v16812_v62 = vand.u32 4294901760, %v6967_v45  ;;  %v7126_v2 = vand.u32 4294901760, %v7125_v17  ;;  %v17433_v17 = vand.u32 4294901760, %v17432_v54 }
 0xf02   :  { %12026 = vmatpush3.bf16.msra.mxu0 %v16620_v26  ;;  %v7116_v29 = vand.u32 4294901760, %v7115_v24  ;;  %v16815_v15 = vand.u32 4294901760, %v6966_v12 }
 0xf03   :  { %12028 = vmatprep.subr.bf16.mxu0 %v16624_v61  ;;  %v16819_v16 = vsub.f32 %v6967_v45, %v16812_v62 }
 0xf04   :  { %10601 = vmatprep.mubr.f32.mxu0 %v7116_v29  ;;  %v16822_v55 = vsub.f32 %v6966_v12, %v16815_v15 }
 0xf05   :  { %10602 = vmatmul.mubr.f32.gmra.mrb[28].mxu0 %v7126_v2  ;;  %v7144_v7 = vand.u32 4294901760, %v16819_v16 }
 0xf06   :  { %12030 = vmatpush3.bf16.msra.mxu0 %v16624_v61  ;;  %v7134_v26 = vand.u32 4294901760, %v16822_v55  ;;  %v17406_v61 = vand.u32 4294901760, %v16525_v38  ;;  %v17410_v38 = vld [vmem:[#allocation21_spill] sm:$0xff] }
 0xf07   :  { %12032 = vmatprep.subr.bf16.mxu0 %v16644_v34  ;;  %v7145_v60 = vsub.f32 %v16819_v16, %v7144_v7 }
 0xf08   :  { %v7135_v46 = vsub.f32 %v16822_v55, %v7134_v26 }
 0xf09   :  { %v7146_v43 = vand.u32 4294901760, %v7145_v60 }
 0xf0a   :  { %12034 = vmatpush3.bf16.msra.mxu0 %v16644_v34  ;;  %v7136_v39 = vand.u32 4294901760, %v7135_v46  ;;  %v17407_v34 = vand.u32 4294901760, %v16527_v1  ;;  %v17412_v1 = vld [vmem:[#allocation20_spill] sm:$0xff] }
 0xf0b   :  { %12036 = vmatprep.subr.bf16.mxu0 %v16670_v36 }
 0xf0c   :  { %10604 = vmatprep.mubr.f32.mxu0 %v7136_v39 }
 0xf0d   :  { %10605 = vmatmul.mubr.f32.gmra.mrb[30].mxu0 %v7146_v43 }
 0xf0e   :  { %12038 = vmatpush3.bf16.msra.mxu0 %v16670_v36  ;;  %10639 = vmatprep.mubr.f32.mxu0 %v16740_v52  ;;  %v17408_v36 = vand.u32 4294901760, %v16552_v10  ;;  %v17414_v10 = vld [vmem:[#allocation23_spill] sm:$0xff] }
 0xf0f   :  { %12040 = vmatprep.subr.bf16.mxu0 %v16672_v44 }
 0xf12   :  { %12042 = vmatpush3.bf16.msra.mxu0 %v16672_v44  ;;  %v17409_v44 = vand.u32 4294901760, %v16555_v51  ;;  %v17415_v51 = vand.u32 4294901760, %v17414_v10 }
 0xf13   :  { %12044 = vmatprep.subr.bf16.mxu0 %v16676_v5 }
 0xf15   :  { %10640 = vmatmul.mubr.f32.vlgmr.msra.gmra.mrb[24].mxu0 %v16734_v56 }
 0xf16   :  { %10642 = vmatprep.mubr.f32.mxu0 %v16764_v32  ;;  %12046 = vmatpush3.bf16.msra.mxu0 %v16676_v5  ;;  %v12111_v5 = vpack.c.bf16 %v17409_v44, %v17408_v36 }
 0xf17   :  { %12048 = vmatprep.subr.bf16.mxu0 %v16680_v50 }
 0xf19   :  { %10643 = vmatmul.mubr.f32.gmra.mrb[26].mxu0 %v16760_v40 }
 0xf1a   :  { %10645 = vmatprep.mubr.f32.mxu0 %v16791_v59  ;;  %12050 = vmatpush3.bf16.msra.mxu0 %v16680_v50  ;;  %v17411_v50 = vand.u32 4294901760, %v17410_v38 }
 0xf1b   :  { %12052 = vmatprep.subr.bf16.mxu0 %v16684_v57 }
 0xf1d   :  { %10646 = vmatmul.mubr.f32.gmra.mrb[28].mxu0 %v16786_v33 }
 0xf1e   :  { %10648 = vmatprep.mubr.f32.mxu0 %v16815_v15  ;;  %12054 = vmatpush3.bf16.msra.mxu0 %v16684_v57  ;;  %v12107_v57 = vpack.c.bf16 %v17407_v34, %v17406_v61 }
 0xf1f   :  { %12056 = vmatprep.subr.bf16.mxu0 %v16688_v8 }
 0xf21   :  { %10649 = vmatmul.mubr.f32.gmra.mrb[30].mxu0 %v16812_v62 }
 0xf22   :  { %12058 = vmatpush3.bf16.msra.mxu0 %v16688_v8  ;;  %10683 = vmatprep.mubr.f32.mxu0 %v16746_v48  ;;  %v17413_v8 = vand.u32 4294901760, %v17412_v1 }
 0xf23   :  { %12060 = vmatprep.subr.bf16.mxu0 %v16692_v47 }
 0xf26   :  { %12062 = vmatpush3.bf16.msra.mxu0 %v16692_v47  ;;  %v12115_v47 = vpack.c.bf16 %v17413_v8, %v17411_v50 }
 0xf27   :  { %12064 = vmatprep.subr.bf16.mxu0 %v16696_v35 }
 0xf2a   :  { %12066 = vmatpush3.bf16.msra.mxu0 %v16696_v35  ;;  %v17416_v35 = vld [vmem:[#allocation22_spill] sm:$0xff] }
 0xf2b   :  { %12068 = vmatprep.subr.bf16.mxu0 %v16700_v13 }
 0xf2e   :  { %12070 = vmatpush3.bf16.msra.mxu0 %v16700_v13  ;;  %v17417_v13 = vand.u32 4294901760, %v17416_v35 }
 0xf2f   :  { %12072 = vmatprep.subr.bf16.mxu0 %v16704_v9 }
 0xf32   :  { %12074 = vmatpush3.bf16.msra.mxu0 %v16704_v9  ;;  %v12119_v9 = vpack.c.bf16 %v17417_v13, %v17415_v51 }
 0xf33   :  { %12076 = vmatprep.subr.bf16.mxu0 %v16455_v6 }
 0xf35   :  { %10684 = vmatmul.mubr.f32.vlgmr.msra.gmra.mrb[24].mxu0 %v16743_v11  ;;  %v17418_v11 = vld [vmem:[#allocation15_spill] sm:$0xff] }
 0xf36   :  { %10686 = vmatprep.mubr.f32.mxu0 %v16770_v27  ;;  %12078 = vmatpush3.bf16.msra.mxu0 %v16455_v6  ;;  %v17419_v48 = vand.u32 4294901760, %v17418_v11  ;;  %v17422_v27 = vld [vmem:[#allocation25_spill] sm:$0xff] }
 0xf37   :  { %12080 = vmatprep.subr.bf16.mxu0 %v16470_v58 }
 0xf39   :  { %10687 = vmatmul.mubr.f32.gmra.mrb[26].mxu0 %v16767_v0 }
 0xf3a   :  { %10689 = vmatprep.mubr.f32.mxu0 %v16798_v23  ;;  %12082 = vmatpush3.bf16.msra.mxu0 %v16470_v58  ;;  %v17426_v23 = vld [vmem:[#allocation27_spill] sm:$0xff] }
 0xf3b   :  { %12084 = vmatprep.subr.bf16.mxu0 %v16485_v30  ;;  %v17427_v14 = vand.u32 4294901760, %v17426_v23 }
 0xf3d   :  { %10690 = vmatmul.mubr.f32.gmra.mrb[28].mxu0 %v16795_v22 }
 0xf3e   :  { %10692 = vmatprep.mubr.f32.mxu0 %v16822_v55  ;;  %12086 = vmatpush3.bf16.msra.mxu0 %v16485_v30 }
 0xf3f   :  { %12088 = vmatprep.subr.bf16.mxu0 %v16489_v63 }
 0xf41   :  { %10693 = vmatmul.mubr.f32.gmra.mrb[30].mxu0 %v16819_v16 }
 0xf42   :  { %12090 = vmatpush3.bf16.msra.mxu0 %v16489_v63  ;;  %10727 = vmatprep.mubr.f32.mxu0 %v7074_v37 }
 0xf43   :  { %12092 = vmatprep.subr.bf16.mxu0 %v16499_v28 }
 0xf46   :  { %12094 = vmatpush3.bf16.msra.mxu0 %v16499_v28 }
 0xf47   :  { %12096 = vmatprep.subr.bf16.mxu0 %v16509_v25 }
 0xf4a   :  { %12098 = vmatpush3.bf16.msra.mxu0 %v16509_v25 }
 0xf4b   :  { %12100 = vmatprep.subr.bf16.mxu0 %v16523_v19 }
 0xf4e   :  { %12102 = vmatpush3.bf16.msra.mxu0 %v16523_v19 }
 0xf4f   :  { %12104 = vmatprep.subr.bf16.mxu0 %v16543_v20 }
 0xf52   :  { %12106 = vmatpush3.bf16.msra.mxu0 %v16543_v20 }
 0xf53   :  { %12108 = vmatprep.subr.bf16.mxu0 %v12107_v57 }
 0xf55   :  { %10728 = vmatmul.mubr.f32.vlgmr.msra.gmra.mrb[24].mxu0 %v7084_v4  ;;  %v17420_v4 = vld [vmem:[#allocation24_spill] sm:$0xff] }
 0xf56   :  { %10730 = vmatprep.mubr.f32.mxu0 %v7094_v49  ;;  %12110 = vmatpush3.bf16.msra.mxu0 %v12107_v57  ;;  %v17421_v37 = vand.u32 4294901760, %v17420_v4  ;;  %v17424_v49 = vld [vmem:[#allocation26_spill] sm:$0xff] }
 0xf57   :  { %12112 = vmatprep.subr.bf16.mxu0 %v12111_v5  ;;  %v17425_v22 = vand.u32 4294901760, %v17424_v49 }
 0xf58   :  { %v12123_v0 = vpack.c.bf16 %v17421_v37, %v17419_v48 }
 0xf59   :  { %10731 = vmatmul.mubr.f32.gmra.mrb[26].mxu0 %v7104_v31  ;;  %v17423_v31 = vand.u32 4294901760, %v17422_v27 }
 0xf5a   :  { %10733 = vmatprep.mubr.f32.mxu0 %v7114_v21  ;;  %12114 = vmatpush3.bf16.msra.mxu0 %v12111_v5  ;;  %v17430_v21 = vld [vmem:[#allocation33_spill] sm:$0xff] }
 0xf5b   :  { %12116 = vmatprep.subr.bf16.mxu0 %v12115_v47  ;;  %v12127_v42 = vpack.c.bf16 %v17425_v22, %v17423_v31  ;;  %v17431_v18 = vand.u32 4294901760, %v17430_v21 }
 0xf5d   :  { %10734 = vmatmul.mubr.f32.gmra.mrb[28].mxu0 %v7124_v41  ;;  %v17428_v41 = vld [vmem:[#allocation28_spill] sm:$0xff]  ;;  %v12135_v45 = vpack.c.bf16 %v17433_v17, %v17431_v18 }
 0xf5e   :  { %10736 = vmatprep.mubr.f32.mxu0 %v7134_v26  ;;  %12118 = vmatpush3.bf16.msra.mxu0 %v12115_v47  ;;  %v17429_v53 = vand.u32 4294901760, %v17428_v41 }
 0xf5f   :  { %12120 = vmatprep.subr.bf16.mxu0 %v12119_v9 }
 0xf60   :  { %v12131_v3 = vpack.c.bf16 %v17429_v53, %v17427_v14 }
 0xf61   :  { %10737 = vmatmul.mubr.f32.gmra.mrb[30].mxu0 %v7144_v7 }
 0xf62   :  { %12122 = vmatpush3.bf16.msra.mxu0 %v12119_v9  ;;  %10771 = vmatprep.mubr.f32.mxu0 %v16740_v52 }
 0xf63   :  { %12124 = vmatprep.subr.bf16.mxu0 %v12123_v0 }
 0xf66   :  { %12126 = vmatpush3.bf16.msra.mxu0 %v12123_v0 }
 0xf67   :  { %12128 = vmatprep.subr.bf16.mxu0 %v12127_v42 }
 0xf6a   :  { %12130 = vmatpush3.bf16.msra.mxu0 %v12127_v42 }
 0xf6b   :  { %12132 = vmatprep.subr.bf16.mxu0 %v12131_v3 }
 0xf6e   :  { %12134 = vmatpush3.bf16.msra.mxu0 %v12131_v3 }
 0xf6f   :  { %12136 = vmatprep.subr.bf16.mxu0 %v12135_v45 }
 0xf72   :  { %12138 = vmatpush3.bf16.msra.mxu0 %v12135_v45 }
 0xf73   :  { %12140 = vmatprep.subr.bf16.mxu0 %v16455_v6 }
 0xf75   :  { %10772 = vmatmul.mubr.f32.vlgmr.msra.gmra.mrb[24].mxu0 %v16734_v56 }
 0xf76   :  { %10774 = vmatprep.mubr.f32.mxu0 %v16764_v32  ;;  %12142 = vmatpush3.bf16.msra.mxu0 %v16455_v6  ;;  %v7970_v6 = vld [vmem:[%s16991_s6] ss:$0 sm:$0xff]  ;;  %s12746_s6 = scalar_lea.vmem %s7947_s27, 1024 }
 0xf77   :  { %12144 = vmatprep.subr.bf16.mxu0 %v16470_v58  ;;  %p12747_p4 = scmp.ne.s32.totalorder %s7947_s27, %s12746_s6  ;;  %p12752_p6 = scmp.lt.s32.totalorder %s12746_s6, %s12746_s6 }
 0xf79   :  { %10775 = vmatmul.mubr.f32.gmra.mrb[26].mxu0 %v16760_v40  ;;  %p12753_p7 = por %p12752_p6, %p12751_p5 }
 0xf7a   :  { %10777 = vmatprep.mubr.f32.mxu0 %v16791_v59  ;;  %12146 = vmatpush3.bf16.msra.mxu0 %v16470_v58 }
 0xf7b   :  { %12148 = vmatprep.subr.bf16.mxu0 %v16485_v30  ;;  %p12754_p8 = pnand %p12753_p7, %p12747_p4 }
 0xf7d   :  { %10778 = vmatmul.mubr.f32.gmra.mrb[28].mxu0 %v16786_v33 }
 0xf7e   :  { %10780 = vmatprep.mubr.f32.mxu0 %v16815_v15  ;;  %12150 = vmatpush3.bf16.msra.mxu0 %v16485_v30 }
 0xf7f   :  { %12152 = vmatprep.subr.bf16.mxu0 %v16489_v63 }
 0xf81   :  { %10781 = vmatmul.mubr.f32.gmra.mrb[30].mxu0 %v16812_v62 }
 0xf82   :  { %12154 = vmatpush3.bf16.msra.mxu0 %v16489_v63  ;;  %10815 = vmatprep.mubr.f32.mxu0 %v16740_v52 }
 0xf83   :  { %12156 = vmatprep.subr.bf16.mxu0 %v16499_v28 }
 0xf86   :  { %12158 = vmatpush3.bf16.msra.mxu0 %v16499_v28 }
 0xf87   :  { %12160 = vmatprep.subr.bf16.mxu0 %v16509_v25 }
 0xf8a   :  { %12162 = vmatpush3.bf16.msra.mxu0 %v16509_v25 }
 0xf8b   :  { %12164 = vmatprep.subr.bf16.mxu0 %v16523_v19 }
 0xf8e   :  { %12166 = vmatpush3.bf16.msra.mxu0 %v16523_v19 }
 0xf8f   :  { %12168 = vmatprep.subr.bf16.mxu0 %v16543_v20 }
 0xf92   :  { %12170 = vmatpush3.bf16.msra.mxu0 %v16543_v20 }
 0xf95   :  { %10816 = vmatmul.mubr.f32.vlgmr.msra.gmra.mrb[24].mxu0 %v16734_v56 }
 0xf96   :  { %10818 = vmatprep.mubr.f32.mxu0 %v16764_v32 }
 0xf99   :  { %10819 = vmatmul.mubr.f32.gmra.mrb[26].mxu0 %v16760_v40 }
 0xf9a   :  { %10821 = vmatprep.mubr.f32.mxu0 %v16791_v59 }
 0xf9d   :  { %10822 = vmatmul.mubr.f32.gmra.mrb[28].mxu0 %v16786_v33 }
 0xf9e   :  { %10824 = vmatprep.mubr.f32.mxu0 %v16815_v15 }
 0xfa1   :  { %10825 = vmatmul.mubr.f32.gmra.mrb[30].mxu0 %v16812_v62 }
0x1068   :  { %v10817_v58 = vpop.f32.mrb[24].mxu0 }
0x1069   :  { %v12227_v30 = vadd.f32 %v10817_v58, %v7970_v6  ;;  %v7887_v63 = vpop.f32.mrb[25].mxu0 }
0x106a   :  { %v12228_v28 = vadd.f32 %v7970_v6, %v7887_v63 }
0x106b   :  { %7934 = vst [vmem:[#allocation10 + $0x8] sm:$0xff] %v12227_v30 }
0x106c   :  { %7933 = vst [vmem:[#allocation10] sm:$0xff] %v12228_v28  ;;  %v10820_v25 = vpop.f32.mrb[26].mxu0 }
0x106d   :  { %v12229_v19 = vadd.f32 %v10820_v25, %v7970_v6  ;;  %v7899_v20 = vpop.f32.mrb[27].mxu0 }
0x106e   :  { %v12230_v56 = vadd.f32 %v7970_v6, %v7899_v20 }
0x106f   :  { %7936 = vst [vmem:[#allocation10 + $0x18] sm:$0xff] %v12229_v19 }
0x1070   :  { %7935 = vst [vmem:[#allocation10 + $0x10] sm:$0xff] %v12230_v56  ;;  %v10823_v52 = vpop.f32.mrb[28].mxu0 }
0x1071   :  { %v12231_v40 = vadd.f32 %v10823_v52, %v7970_v6  ;;  %v7911_v32 = vpop.f32.mrb[29].mxu0 }
0x1072   :  { %v12232_v33 = vadd.f32 %v7970_v6, %v7911_v32 }
0x1073   :  { %7938 = vst [vmem:[#allocation10 + $0x28] sm:$0xff] %v12231_v40 }
0x1074   :  { %7937 = vst [vmem:[#allocation10 + $0x20] sm:$0xff] %v12232_v33  ;;  %v10826_v59 = vpop.f32.mrb[30].mxu0 }
0x1075   :  { %v12233_v24 = vadd.f32 %v10826_v59, %v7970_v6  ;;  %v7923_v12 = vpop.f32.mrb[31].mxu0 }
0x1076   :  { %v12234_v62 = vadd.f32 %v7970_v6, %v7923_v12 }
0x1077   :  { %7940 = vst [vmem:[#allocation10 + $0x38] sm:$0xff] %v12233_v24 }
0x1078   :  { %7939 = vst [vmem:[#allocation10 + $0x30] sm:$0xff] %v12234_v62 }
0x1079   :  { %12757 = shalt.err (!%p12754_p8)
}
0x107a   :  { %s12758_s19 = scalar_lea.hbm %s16992_s7, 1024 }
0x107b   :  { %p12759_p9 = scmp.ne.s32.totalorder %s16992_s7, %s12758_s19  ;;  %p12762_p10 = scmp.lt.u32.totalorder %s12758_s19, %s16992_s7 }
0x107d   :  { %p12764_p11 = pnand %p12762_p10, %p12759_p9 }
0x107f   :  { %12767 = shalt.err (!%p12764_p11)
}
0x1080   :  { %7952 = dma.vmem_to_hbm [thread:$0]  %s7947_s27, 1024, %s16992_s7, [#allocation4], %s12778_s13, %s12778_s13, %s12779_s14  }
0x1081   :  { %12774 = dma.done.wait [#allocation4], 1024  }
0x1082   :  { %12775 = vsyncadd [#allocation4], 4294966272 }
0x1083   :  { %7956 = vsyncpa [#allocation3], 1 }
0x1084   :  { %7957 = vsyncpa [#allocation6], 1 }
0x1085   :  { %7958 = vsyncpa [#allocation9], 1 }
0x1086   :  { %7959 = vsyncpa [#allocation4], 1 }

</bundles_post_ra>
